<compile_context>
chip_gen: v6e
topology: v6e:2x2x1
jax: 0.10.0
libtpu: 0.0.40
codegen_flags: <defaults>
</compile_context>

<pallas_src>
import math

import jax
import jax.numpy as jnp
import numpy as np
from jax import lax
from jax.experimental import pallas as pl
from jax.experimental.pallas import tpu as pltpu


def _resblock_kernel(xpad_ref, w1_ref, w2_ref, b1_ref, b2_ref, alpha_ref,
                     out_ref, mid_ref):
    # xpad_ref : (H+2, W+2, C) zero-padded input (NHWC, batch squeezed), f32
    # w1_ref/w2_ref : (9, C, C) f32 conv weights (BN scale folded), tap = dy*3+dx
    # b1_ref/b2_ref : (1, C) f32 folded batch-norm biases
    # alpha_ref     : (1,) PReLU slope in SMEM
    # out_ref       : (H, W, C) f32
    # mid_ref       : (H+2, W+2, C) f32 VMEM scratch for the padded intermediate
    H, W, C = out_ref.shape
    taps = [(dy, dx) for dy in range(3) for dx in range(3)]

    def conv3x3(src_ref, w_ref):
        # 9 accumulated K=C MXU matmuls; each tap is ref-sliced so the live set
        # stays at one (H*W, C) tap + the f32 accumulator (no im2col concat).
        acc = None
        for t, (dy, dx) in enumerate(taps):
            tap = src_ref[dy:dy + H, dx:dx + W, :].reshape(H * W, C)
            p = jnp.dot(tap, w_ref[t], preferred_element_type=jnp.float32)
            acc = p if acc is None else acc + p
        return acc                                     # (H*W, C) f32

    # ---- conv1 (BN1 scale folded into w1) + bias + PReLU ----
    y = conv3x3(xpad_ref, w1_ref) + b1_ref[...]
    alpha = alpha_ref[0]
    y = jnp.where(y > 0, y, alpha * y)                 # (H*W, C) f32

    # ---- re-pad intermediate: zero only the 1-px halo, interior overwritten ----
    zrow = jnp.zeros((1, W + 2, C), mid_ref.dtype)
    zcol = jnp.zeros((H + 2, 1, C), mid_ref.dtype)
    mid_ref[0:1, :, :] = zrow
    mid_ref[H + 1:H + 2, :, :] = zrow
    mid_ref[:, 0:1, :] = zcol
    mid_ref[:, W + 1:W + 2, :] = zcol
    mid_ref[1:1 + H, 1:1 + W, :] = y.reshape(H, W, C)

    # ---- conv2 (BN2 scale folded into w2) + bias + residual add ----
    z = conv3x3(mid_ref, w2_ref) + b2_ref[...]
    z = z + xpad_ref[1:1 + H, 1:1 + W, :].reshape(H * W, C)   # residual from ref
    out_ref[...] = z.reshape(H, W, C).astype(out_ref.dtype)


def residual_block(x_nchw, w1, w2, bn1, bn2, alpha, eps=1e-5):
    """x_nchw: (N, 64, H, W); w1/w2: (64, 64, 3, 3) PyTorch (Cout, Cin, kh, kw);
    bn1/bn2: dict with gamma, beta, mean, var of shape (64,)."""
    N, C, H, W = x_nchw.shape
    assert C == 64

    # NCHW -> NHWC, zero pad spatial dims by 1 (f32: taps + residual from same ref).
    x_nhwc = jnp.transpose(x_nchw, (0, 2, 3, 1)).astype(jnp.float32)
    x_pad = jnp.pad(x_nhwc, ((0, 0), (1, 1), (1, 1), (0, 0)))

    def fold(bn):
        scale = (bn["gamma"] / jnp.sqrt(bn["var"] + eps)).astype(jnp.float32)
        bias = (bn["beta"] - bn["mean"] * scale).astype(jnp.float32)
        return scale, bias

    s1, b1 = fold(bn1)
    s2, b2 = fold(bn2)

    def prep_w(w, scale):
        # (Cout,Cin,kh,kw) -> (kh,kw,Cin,Cout), fold BN scale per Cout, -> (9,Cin,Cout) f32.
        wk = jnp.transpose(w, (2, 3, 1, 0)).astype(jnp.float32) * scale[None, None, None, :]
        return wk.reshape(9, C, C)

    w1_k = prep_w(w1, s1)
    w2_k = prep_w(w2, s2)
    b1 = b1.reshape(1, C)
    b2 = b2.reshape(1, C)
    alpha_arr = jnp.asarray([alpha], dtype=jnp.float32)

    # Advisory cost for XLA's scheduler: two 3x3 convs over the whole batch.
    flops = int(2 * 2 * N * H * W * (9 * C) * C)
    bytes_accessed = int(x_pad.size * 4 + N * H * W * C * 4
                         + (w1_k.size + w2_k.size) * 4 + 2 * C * 4 + 4)

    out_nhwc = pl.pallas_call(
        _resblock_kernel,
        out_shape=jax.ShapeDtypeStruct((N, H, W, C), jnp.float32),
        grid_spec=pltpu.PrefetchScalarGridSpec(
            num_scalar_prefetch=0,
            grid=(N,),
            in_specs=[
                pl.BlockSpec((None, H + 2, W + 2, C), lambda b: (b, 0, 0, 0)),
                pl.BlockSpec((9, C, C), lambda b: (0, 0, 0)),   # grid-invariant
                pl.BlockSpec((9, C, C), lambda b: (0, 0, 0)),   # grid-invariant
                pl.BlockSpec((1, C), lambda b: (0, 0)),
                pl.BlockSpec((1, C), lambda b: (0, 0)),
                pl.BlockSpec(memory_space=pltpu.MemorySpace.SMEM),
            ],
            out_specs=pl.BlockSpec((None, H, W, C), lambda b: (b, 0, 0, 0)),
            scratch_shapes=[pltpu.VMEM((H + 2, W + 2, C), jnp.float32)],
        ),
        compiler_params=pltpu.CompilerParams(
            dimension_semantics=("parallel",)),
        cost_estimate=pl.CostEstimate(flops=flops, transcendentals=0,
                                      bytes_accessed=bytes_accessed),
    )(x_pad, w1_k, w2_k, b1, b2, alpha_arr)

    # NHWC -> NCHW to match PyTorch output convention.
    return jnp.transpose(out_nhwc, (0, 3, 1, 2))


def _reference(x_nchw, w1, w2, bn1, bn2, alpha, eps=1e-5):
    """Pure-JAX reference (lax conv, NCHW, full f32) mirroring the PyTorch forward."""
    def conv(x, w):
        return lax.conv_general_dilated(
            x.astype(jnp.float32), w.astype(jnp.float32),
            window_strides=(1, 1), padding=((1, 1), (1, 1)),
            dimension_numbers=("NCHW", "OIHW", "NCHW"),
            precision=lax.Precision.HIGHEST,
            preferred_element_type=jnp.float32)

    def bn(x, p):
        scale = p["gamma"] / jnp.sqrt(p["var"] + eps)
        bias = p["beta"] - p["mean"] * scale
        return x * scale[None, :, None, None] + bias[None, :, None, None]

    o = conv(x_nchw, w1)
    o = bn(o, bn1)
    o = jnp.where(o > 0, o, alpha * o)
    o = conv(o, w2)
    o = bn(o, bn2)
    return o + x_nchw


if __name__ == "__main__":
    key = jax.random.PRNGKey(0)
    kx, kw1, kw2, kg1, kb1, km1, kv1, kg2, kb2, km2, kv2 = jax.random.split(key, 11)

    N, C, H, W = 2, 64, 16, 16
    x = jax.random.normal(kx, (N, C, H, W), dtype=jnp.float32)

    fan_in = C * 3 * 3
    std = math.sqrt(2.0 / fan_in)
    w1 = jax.random.normal(kw1, (C, C, 3, 3), dtype=jnp.float32) * std
    w2 = jax.random.normal(kw2, (C, C, 3, 3), dtype=jnp.float32) * std

    bn1 = dict(
        gamma=1.0 + 0.1 * jax.random.normal(kg1, (C,), dtype=jnp.float32),
        beta=0.1 * jax.random.normal(kb1, (C,), dtype=jnp.float32),
        mean=0.1 * jax.random.normal(km1, (C,), dtype=jnp.float32),
        var=jnp.abs(jax.random.normal(kv1, (C,), dtype=jnp.float32)) + 0.5,
    )
    bn2 = dict(
        gamma=1.0 + 0.1 * jax.random.normal(kg2, (C,), dtype=jnp.float32),
        beta=0.1 * jax.random.normal(kb2, (C,), dtype=jnp.float32),
        mean=0.1 * jax.random.normal(km2, (C,), dtype=jnp.float32),
        var=jnp.abs(jax.random.normal(kv2, (C,), dtype=jnp.float32)) + 0.5,
    )
    alpha = 0.2  # PReLU(num_parameters=1, init=0.2)

    out = jax.block_until_ready(residual_block(x, w1, w2, bn1, bn2, alpha))

    ref = jax.block_until_ready(_reference(x, w1, w2, bn1, bn2, alpha))
    # Tolerance covers TPU matmul-pass decomposition differences (<= bf16-pass level).
    np.testing.assert_allclose(np.asarray(out), np.asarray(ref),
                               rtol=2e-2, atol=2e-2)
    print("KERNEL_OK")
</pallas_src>

<mosaic_0001>
module attributes {stable_mosaic.version = 11 : i64} {
  func.func @_resblock_kernel(%arg0: i32, %arg1: memref<1x18x18x64xf32, #tpu.memory_space<vmem>>, %arg2: memref<9x64x64xf32, #tpu.memory_space<vmem>>, %arg3: memref<9x64x64xf32, #tpu.memory_space<vmem>>, %arg4: memref<1x64xf32, #tpu.memory_space<vmem>>, %arg5: memref<1x64xf32, #tpu.memory_space<vmem>>, %arg6: memref<1xf32, #tpu.memory_space<smem>>, %arg7: memref<1x16x16x64xf32, #tpu.memory_space<vmem>>, %arg8: memref<18x18x64xf32, #tpu.memory_space<vmem>>) attributes {dimension_semantics = [#tpu.dimension_semantics<parallel>], iteration_bounds = array<i64: 2>, scalar_prefetch = 0 : i64, scratch_operands = 1 : i64, tpu.core_type = #tpu.core_type<tc>, window_params = [{transform_indices = @transform_0, window_bounds = array<i64: 1, 18, 18, 64>}, {pipeline_mode = #tpu.pipeline_mode<synchronous>, transform_indices = @transform_1, window_bounds = array<i64: 9, 64, 64>}, {pipeline_mode = #tpu.pipeline_mode<synchronous>, transform_indices = @transform_2, window_bounds = array<i64: 9, 64, 64>}, {pipeline_mode = #tpu.pipeline_mode<synchronous>, transform_indices = @transform_3, window_bounds = array<i64: 1, 64>}, {pipeline_mode = #tpu.pipeline_mode<synchronous>, transform_indices = @transform_4, window_bounds = array<i64: 1, 64>}, {transform_indices = @transform_5, window_bounds = array<i64: 1>}, {transform_indices = @transform_6, window_bounds = array<i64: 1, 16, 16, 64>}]} {
    %c0 = arith.constant 0 : index
    %c0_0 = arith.constant 0 : index
    %c0_1 = arith.constant 0 : index
    %c0_2 = arith.constant 0 : index
    %0 = vector.load %arg1[%c0, %c0_0, %c0_1, %c0_2] : memref<1x18x18x64xf32, #tpu.memory_space<vmem>>, vector<1x16x16x64xf32>
    %1 = vector.shape_cast %0 : vector<1x16x16x64xf32> to vector<16x16x64xf32>
    %2 = vector.shape_cast %1 : vector<16x16x64xf32> to vector<256x64xf32>
    %c0_3 = arith.constant 0 : index
    %c0_4 = arith.constant 0 : index
    %c0_5 = arith.constant 0 : index
    %3 = vector.load %arg2[%c0_3, %c0_4, %c0_5] : memref<9x64x64xf32, #tpu.memory_space<vmem>>, vector<1x64x64xf32>
    %4 = vector.shape_cast %3 : vector<1x64x64xf32> to vector<64x64xf32>
    %cst = arith.constant dense<0.000000e+00> : vector<256x64xf32>
    %5 = tpu.matmul %2, %4, %cst {dimension_numbers = #tpu.dot_dimension_numbers<[1], [0], [0], [1], [0, 0, 1, 1], [], []>} : vector<256x64xf32>, vector<64x64xf32>, vector<256x64xf32> -> vector<256x64xf32>
    %c0_6 = arith.constant 0 : index
    %c0_7 = arith.constant 0 : index
    %c1 = arith.constant 1 : index
    %c0_8 = arith.constant 0 : index
    %6 = vector.load %arg1[%c0_6, %c0_7, %c1, %c0_8] : memref<1x18x18x64xf32, #tpu.memory_space<vmem>>, vector<1x16x16x64xf32>
    %7 = vector.shape_cast %6 : vector<1x16x16x64xf32> to vector<16x16x64xf32>
    %8 = vector.shape_cast %7 : vector<16x16x64xf32> to vector<256x64xf32>
    %c1_9 = arith.constant 1 : index
    %c0_10 = arith.constant 0 : index
    %c0_11 = arith.constant 0 : index
    %9 = vector.load %arg2[%c1_9, %c0_10, %c0_11] : memref<9x64x64xf32, #tpu.memory_space<vmem>>, vector<1x64x64xf32>
    %10 = vector.shape_cast %9 : vector<1x64x64xf32> to vector<64x64xf32>
    %cst_12 = arith.constant dense<0.000000e+00> : vector<256x64xf32>
    %11 = tpu.matmul %8, %10, %cst_12 {dimension_numbers = #tpu.dot_dimension_numbers<[1], [0], [0], [1], [0, 0, 1, 1], [], []>} : vector<256x64xf32>, vector<64x64xf32>, vector<256x64xf32> -> vector<256x64xf32>
    %12 = arith.addf %5, %11 : vector<256x64xf32>
    %c0_13 = arith.constant 0 : index
    %c0_14 = arith.constant 0 : index
    %c2 = arith.constant 2 : index
    %c0_15 = arith.constant 0 : index
    %13 = vector.load %arg1[%c0_13, %c0_14, %c2, %c0_15] : memref<1x18x18x64xf32, #tpu.memory_space<vmem>>, vector<1x16x16x64xf32>
    %14 = vector.shape_cast %13 : vector<1x16x16x64xf32> to vector<16x16x64xf32>
    %15 = vector.shape_cast %14 : vector<16x16x64xf32> to vector<256x64xf32>
    %c2_16 = arith.constant 2 : index
    %c0_17 = arith.constant 0 : index
    %c0_18 = arith.constant 0 : index
    %16 = vector.load %arg2[%c2_16, %c0_17, %c0_18] : memref<9x64x64xf32, #tpu.memory_space<vmem>>, vector<1x64x64xf32>
    %17 = vector.shape_cast %16 : vector<1x64x64xf32> to vector<64x64xf32>
    %cst_19 = arith.constant dense<0.000000e+00> : vector<256x64xf32>
    %18 = tpu.matmul %15, %17, %cst_19 {dimension_numbers = #tpu.dot_dimension_numbers<[1], [0], [0], [1], [0, 0, 1, 1], [], []>} : vector<256x64xf32>, vector<64x64xf32>, vector<256x64xf32> -> vector<256x64xf32>
    %19 = arith.addf %12, %18 : vector<256x64xf32>
    %c0_20 = arith.constant 0 : index
    %c1_21 = arith.constant 1 : index
    %c0_22 = arith.constant 0 : index
    %c0_23 = arith.constant 0 : index
    %20 = vector.load %arg1[%c0_20, %c1_21, %c0_22, %c0_23] : memref<1x18x18x64xf32, #tpu.memory_space<vmem>>, vector<1x16x16x64xf32>
    %21 = vector.shape_cast %20 : vector<1x16x16x64xf32> to vector<16x16x64xf32>
    %22 = vector.shape_cast %21 : vector<16x16x64xf32> to vector<256x64xf32>
    %c3 = arith.constant 3 : index
    %c0_24 = arith.constant 0 : index
    %c0_25 = arith.constant 0 : index
    %23 = vector.load %arg2[%c3, %c0_24, %c0_25] : memref<9x64x64xf32, #tpu.memory_space<vmem>>, vector<1x64x64xf32>
    %24 = vector.shape_cast %23 : vector<1x64x64xf32> to vector<64x64xf32>
    %cst_26 = arith.constant dense<0.000000e+00> : vector<256x64xf32>
    %25 = tpu.matmul %22, %24, %cst_26 {dimension_numbers = #tpu.dot_dimension_numbers<[1], [0], [0], [1], [0, 0, 1, 1], [], []>} : vector<256x64xf32>, vector<64x64xf32>, vector<256x64xf32> -> vector<256x64xf32>
    %26 = arith.addf %19, %25 : vector<256x64xf32>
    %c0_27 = arith.constant 0 : index
    %c1_28 = arith.constant 1 : index
    %c1_29 = arith.constant 1 : index
    %c0_30 = arith.constant 0 : index
    %27 = vector.load %arg1[%c0_27, %c1_28, %c1_29, %c0_30] : memref<1x18x18x64xf32, #tpu.memory_space<vmem>>, vector<1x16x16x64xf32>
    %28 = vector.shape_cast %27 : vector<1x16x16x64xf32> to vector<16x16x64xf32>
    %29 = vector.shape_cast %28 : vector<16x16x64xf32> to vector<256x64xf32>
    %c4 = arith.constant 4 : index
    %c0_31 = arith.constant 0 : index
    %c0_32 = arith.constant 0 : index
    %30 = vector.load %arg2[%c4, %c0_31, %c0_32] : memref<9x64x64xf32, #tpu.memory_space<vmem>>, vector<1x64x64xf32>
    %31 = vector.shape_cast %30 : vector<1x64x64xf32> to vector<64x64xf32>
    %cst_33 = arith.constant dense<0.000000e+00> : vector<256x64xf32>
    %32 = tpu.matmul %29, %31, %cst_33 {dimension_numbers = #tpu.dot_dimension_numbers<[1], [0], [0], [1], [0, 0, 1, 1], [], []>} : vector<256x64xf32>, vector<64x64xf32>, vector<256x64xf32> -> vector<256x64xf32>
    %33 = arith.addf %26, %32 : vector<256x64xf32>
    %c0_34 = arith.constant 0 : index
    %c1_35 = arith.constant 1 : index
    %c2_36 = arith.constant 2 : index
    %c0_37 = arith.constant 0 : index
    %34 = vector.load %arg1[%c0_34, %c1_35, %c2_36, %c0_37] : memref<1x18x18x64xf32, #tpu.memory_space<vmem>>, vector<1x16x16x64xf32>
    %35 = vector.shape_cast %34 : vector<1x16x16x64xf32> to vector<16x16x64xf32>
    %36 = vector.shape_cast %35 : vector<16x16x64xf32> to vector<256x64xf32>
    %c5 = arith.constant 5 : index
    %c0_38 = arith.constant 0 : index
    %c0_39 = arith.constant 0 : index
    %37 = vector.load %arg2[%c5, %c0_38, %c0_39] : memref<9x64x64xf32, #tpu.memory_space<vmem>>, vector<1x64x64xf32>
    %38 = vector.shape_cast %37 : vector<1x64x64xf32> to vector<64x64xf32>
    %cst_40 = arith.constant dense<0.000000e+00> : vector<256x64xf32>
    %39 = tpu.matmul %36, %38, %cst_40 {dimension_numbers = #tpu.dot_dimension_numbers<[1], [0], [0], [1], [0, 0, 1, 1], [], []>} : vector<256x64xf32>, vector<64x64xf32>, vector<256x64xf32> -> vector<256x64xf32>
    %40 = arith.addf %33, %39 : vector<256x64xf32>
    %c0_41 = arith.constant 0 : index
    %c2_42 = arith.constant 2 : index
    %c0_43 = arith.constant 0 : index
    %c0_44 = arith.constant 0 : index
    %41 = vector.load %arg1[%c0_41, %c2_42, %c0_43, %c0_44] : memref<1x18x18x64xf32, #tpu.memory_space<vmem>>, vector<1x16x16x64xf32>
    %42 = vector.shape_cast %41 : vector<1x16x16x64xf32> to vector<16x16x64xf32>
    %43 = vector.shape_cast %42 : vector<16x16x64xf32> to vector<256x64xf32>
    %c6 = arith.constant 6 : index
    %c0_45 = arith.constant 0 : index
    %c0_46 = arith.constant 0 : index
    %44 = vector.load %arg2[%c6, %c0_45, %c0_46] : memref<9x64x64xf32, #tpu.memory_space<vmem>>, vector<1x64x64xf32>
    %45 = vector.shape_cast %44 : vector<1x64x64xf32> to vector<64x64xf32>
    %cst_47 = arith.constant dense<0.000000e+00> : vector<256x64xf32>
    %46 = tpu.matmul %43, %45, %cst_47 {dimension_numbers = #tpu.dot_dimension_numbers<[1], [0], [0], [1], [0, 0, 1, 1], [], []>} : vector<256x64xf32>, vector<64x64xf32>, vector<256x64xf32> -> vector<256x64xf32>
    %47 = arith.addf %40, %46 : vector<256x64xf32>
    %c0_48 = arith.constant 0 : index
    %c2_49 = arith.constant 2 : index
    %c1_50 = arith.constant 1 : index
    %c0_51 = arith.constant 0 : index
    %48 = vector.load %arg1[%c0_48, %c2_49, %c1_50, %c0_51] : memref<1x18x18x64xf32, #tpu.memory_space<vmem>>, vector<1x16x16x64xf32>
    %49 = vector.shape_cast %48 : vector<1x16x16x64xf32> to vector<16x16x64xf32>
    %50 = vector.shape_cast %49 : vector<16x16x64xf32> to vector<256x64xf32>
    %c7 = arith.constant 7 : index
    %c0_52 = arith.constant 0 : index
    %c0_53 = arith.constant 0 : index
    %51 = vector.load %arg2[%c7, %c0_52, %c0_53] : memref<9x64x64xf32, #tpu.memory_space<vmem>>, vector<1x64x64xf32>
    %52 = vector.shape_cast %51 : vector<1x64x64xf32> to vector<64x64xf32>
    %cst_54 = arith.constant dense<0.000000e+00> : vector<256x64xf32>
    %53 = tpu.matmul %50, %52, %cst_54 {dimension_numbers = #tpu.dot_dimension_numbers<[1], [0], [0], [1], [0, 0, 1, 1], [], []>} : vector<256x64xf32>, vector<64x64xf32>, vector<256x64xf32> -> vector<256x64xf32>
    %54 = arith.addf %47, %53 : vector<256x64xf32>
    %c0_55 = arith.constant 0 : index
    %c2_56 = arith.constant 2 : index
    %c2_57 = arith.constant 2 : index
    %c0_58 = arith.constant 0 : index
    %55 = vector.load %arg1[%c0_55, %c2_56, %c2_57, %c0_58] : memref<1x18x18x64xf32, #tpu.memory_space<vmem>>, vector<1x16x16x64xf32>
    %56 = vector.shape_cast %55 : vector<1x16x16x64xf32> to vector<16x16x64xf32>
    %57 = vector.shape_cast %56 : vector<16x16x64xf32> to vector<256x64xf32>
    %c8 = arith.constant 8 : index
    %c0_59 = arith.constant 0 : index
    %c0_60 = arith.constant 0 : index
    %58 = vector.load %arg2[%c8, %c0_59, %c0_60] : memref<9x64x64xf32, #tpu.memory_space<vmem>>, vector<1x64x64xf32>
    %59 = vector.shape_cast %58 : vector<1x64x64xf32> to vector<64x64xf32>
    %cst_61 = arith.constant dense<0.000000e+00> : vector<256x64xf32>
    %60 = tpu.matmul %57, %59, %cst_61 {dimension_numbers = #tpu.dot_dimension_numbers<[1], [0], [0], [1], [0, 0, 1, 1], [], []>} : vector<256x64xf32>, vector<64x64xf32>, vector<256x64xf32> -> vector<256x64xf32>
    %61 = arith.addf %54, %60 : vector<256x64xf32>
    %c0_62 = arith.constant 0 : index
    %c0_63 = arith.constant 0 : index
    %62 = vector.load %arg4[%c0_62, %c0_63] : memref<1x64xf32, #tpu.memory_space<vmem>>, vector<1x64xf32>
    %63 = vector.broadcast %62 : vector<1x64xf32> to vector<256x64xf32>
    %64 = arith.addf %61, %63 : vector<256x64xf32>
    %c0_64 = arith.constant 0 : index
    %65 = memref.load %arg6[%c0_64] : memref<1xf32, #tpu.memory_space<smem>>
    %cst_65 = arith.constant 0.000000e+00 : f32
    %66 = vector.broadcast %cst_65 : f32 to vector<256x64xf32>
    %67 = arith.cmpf ogt, %64, %66 : vector<256x64xf32>
    %68 = vector.broadcast %65 : f32 to vector<256x64xf32>
    %69 = arith.mulf %68, %64 : vector<256x64xf32>
    %70 = arith.select %67, %64, %69 : vector<256x64xi1>, vector<256x64xf32>
    %cst_66 = arith.constant 0.000000e+00 : f32
    %71 = vector.broadcast %cst_66 : f32 to vector<1x18x64xf32>
    %cst_67 = arith.constant 0.000000e+00 : f32
    %72 = vector.broadcast %cst_67 : f32 to vector<18x1x64xf32>
    %c0_68 = arith.constant 0 : index
    %c0_69 = arith.constant 0 : index
    %c0_70 = arith.constant 0 : index
    %73 = vector.load %arg8[%c0_68, %c0_69, %c0_70] : memref<18x18x64xf32, #tpu.memory_space<vmem>>, vector<1x18x64xf32>
    tpu.vector_store %arg8[%c0_68, %c0_69, %c0_70], %71 {strides = array<i32>} : memref<18x18x64xf32, #tpu.memory_space<vmem>>, vector<1x18x64xf32>,
    %c17 = arith.constant 17 : index
    %c0_71 = arith.constant 0 : index
    %c0_72 = arith.constant 0 : index
    %74 = vector.load %arg8[%c17, %c0_71, %c0_72] : memref<18x18x64xf32, #tpu.memory_space<vmem>>, vector<1x18x64xf32>
    tpu.vector_store %arg8[%c17, %c0_71, %c0_72], %71 {strides = array<i32>} : memref<18x18x64xf32, #tpu.memory_space<vmem>>, vector<1x18x64xf32>,
    %c0_73 = arith.constant 0 : index
    %c0_74 = arith.constant 0 : index
    %c0_75 = arith.constant 0 : index
    %75 = vector.load %arg8[%c0_73, %c0_74, %c0_75] : memref<18x18x64xf32, #tpu.memory_space<vmem>>, vector<18x1x64xf32>
    tpu.vector_store %arg8[%c0_73, %c0_74, %c0_75], %72 {strides = array<i32>} : memref<18x18x64xf32, #tpu.memory_space<vmem>>, vector<18x1x64xf32>,
    %c0_76 = arith.constant 0 : index
    %c17_77 = arith.constant 17 : index
    %c0_78 = arith.constant 0 : index
    %76 = vector.load %arg8[%c0_76, %c17_77, %c0_78] : memref<18x18x64xf32, #tpu.memory_space<vmem>>, vector<18x1x64xf32>
    tpu.vector_store %arg8[%c0_76, %c17_77, %c0_78], %72 {strides = array<i32>} : memref<18x18x64xf32, #tpu.memory_space<vmem>>, vector<18x1x64xf32>,
    %77 = vector.shape_cast %70 : vector<256x64xf32> to vector<16x16x64xf32>
    %c1_79 = arith.constant 1 : index
    %c1_80 = arith.constant 1 : index
    %c0_81 = arith.constant 0 : index
    %78 = vector.load %arg8[%c1_79, %c1_80, %c0_81] : memref<18x18x64xf32, #tpu.memory_space<vmem>>, vector<16x16x64xf32>
    tpu.vector_store %arg8[%c1_79, %c1_80, %c0_81], %77 {strides = array<i32>} : memref<18x18x64xf32, #tpu.memory_space<vmem>>, vector<16x16x64xf32>,
    %c0_82 = arith.constant 0 : index
    %c0_83 = arith.constant 0 : index
    %c0_84 = arith.constant 0 : index
    %79 = vector.load %arg8[%c0_82, %c0_83, %c0_84] : memref<18x18x64xf32, #tpu.memory_space<vmem>>, vector<16x16x64xf32>
    %80 = vector.shape_cast %79 : vector<16x16x64xf32> to vector<256x64xf32>
    %c0_85 = arith.constant 0 : index
    %c0_86 = arith.constant 0 : index
    %c0_87 = arith.constant 0 : index
    %81 = vector.load %arg3[%c0_85, %c0_86, %c0_87] : memref<9x64x64xf32, #tpu.memory_space<vmem>>, vector<1x64x64xf32>
    %82 = vector.shape_cast %81 : vector<1x64x64xf32> to vector<64x64xf32>
    %cst_88 = arith.constant dense<0.000000e+00> : vector<256x64xf32>
    %83 = tpu.matmul %80, %82, %cst_88 {dimension_numbers = #tpu.dot_dimension_numbers<[1], [0], [0], [1], [0, 0, 1, 1], [], []>} : vector<256x64xf32>, vector<64x64xf32>, vector<256x64xf32> -> vector<256x64xf32>
    %c0_89 = arith.constant 0 : index
    %c1_90 = arith.constant 1 : index
    %c0_91 = arith.constant 0 : index
    %84 = vector.load %arg8[%c0_89, %c1_90, %c0_91] : memref<18x18x64xf32, #tpu.memory_space<vmem>>, vector<16x16x64xf32>
    %85 = vector.shape_cast %84 : vector<16x16x64xf32> to vector<256x64xf32>
    %c1_92 = arith.constant 1 : index
    %c0_93 = arith.constant 0 : index
    %c0_94 = arith.constant 0 : index
    %86 = vector.load %arg3[%c1_92, %c0_93, %c0_94] : memref<9x64x64xf32, #tpu.memory_space<vmem>>, vector<1x64x64xf32>
    %87 = vector.shape_cast %86 : vector<1x64x64xf32> to vector<64x64xf32>
    %cst_95 = arith.constant dense<0.000000e+00> : vector<256x64xf32>
    %88 = tpu.matmul %85, %87, %cst_95 {dimension_numbers = #tpu.dot_dimension_numbers<[1], [0], [0], [1], [0, 0, 1, 1], [], []>} : vector<256x64xf32>, vector<64x64xf32>, vector<256x64xf32> -> vector<256x64xf32>
    %89 = arith.addf %83, %88 : vector<256x64xf32>
    %c0_96 = arith.constant 0 : index
    %c2_97 = arith.constant 2 : index
    %c0_98 = arith.constant 0 : index
    %90 = vector.load %arg8[%c0_96, %c2_97, %c0_98] : memref<18x18x64xf32, #tpu.memory_space<vmem>>, vector<16x16x64xf32>
    %91 = vector.shape_cast %90 : vector<16x16x64xf32> to vector<256x64xf32>
    %c2_99 = arith.constant 2 : index
    %c0_100 = arith.constant 0 : index
    %c0_101 = arith.constant 0 : index
    %92 = vector.load %arg3[%c2_99, %c0_100, %c0_101] : memref<9x64x64xf32, #tpu.memory_space<vmem>>, vector<1x64x64xf32>
    %93 = vector.shape_cast %92 : vector<1x64x64xf32> to vector<64x64xf32>
    %cst_102 = arith.constant dense<0.000000e+00> : vector<256x64xf32>
    %94 = tpu.matmul %91, %93, %cst_102 {dimension_numbers = #tpu.dot_dimension_numbers<[1], [0], [0], [1], [0, 0, 1, 1], [], []>} : vector<256x64xf32>, vector<64x64xf32>, vector<256x64xf32> -> vector<256x64xf32>
    %95 = arith.addf %89, %94 : vector<256x64xf32>
    %c1_103 = arith.constant 1 : index
    %c0_104 = arith.constant 0 : index
    %c0_105 = arith.constant 0 : index
    %96 = vector.load %arg8[%c1_103, %c0_104, %c0_105] : memref<18x18x64xf32, #tpu.memory_space<vmem>>, vector<16x16x64xf32>
    %97 = vector.shape_cast %96 : vector<16x16x64xf32> to vector<256x64xf32>
    %c3_106 = arith.constant 3 : index
    %c0_107 = arith.constant 0 : index
    %c0_108 = arith.constant 0 : index
    %98 = vector.load %arg3[%c3_106, %c0_107, %c0_108] : memref<9x64x64xf32, #tpu.memory_space<vmem>>, vector<1x64x64xf32>
    %99 = vector.shape_cast %98 : vector<1x64x64xf32> to vector<64x64xf32>
    %cst_109 = arith.constant dense<0.000000e+00> : vector<256x64xf32>
    %100 = tpu.matmul %97, %99, %cst_109 {dimension_numbers = #tpu.dot_dimension_numbers<[1], [0], [0], [1], [0, 0, 1, 1], [], []>} : vector<256x64xf32>, vector<64x64xf32>, vector<256x64xf32> -> vector<256x64xf32>
    %101 = arith.addf %95, %100 : vector<256x64xf32>
    %c1_110 = arith.constant 1 : index
    %c1_111 = arith.constant 1 : index
    %c0_112 = arith.constant 0 : index
    %102 = vector.load %arg8[%c1_110, %c1_111, %c0_112] : memref<18x18x64xf32, #tpu.memory_space<vmem>>, vector<16x16x64xf32>
    %103 = vector.shape_cast %102 : vector<16x16x64xf32> to vector<256x64xf32>
    %c4_113 = arith.constant 4 : index
    %c0_114 = arith.constant 0 : index
    %c0_115 = arith.constant 0 : index
    %104 = vector.load %arg3[%c4_113, %c0_114, %c0_115] : memref<9x64x64xf32, #tpu.memory_space<vmem>>, vector<1x64x64xf32>
    %105 = vector.shape_cast %104 : vector<1x64x64xf32> to vector<64x64xf32>
    %cst_116 = arith.constant dense<0.000000e+00> : vector<256x64xf32>
    %106 = tpu.matmul %103, %105, %cst_116 {dimension_numbers = #tpu.dot_dimension_numbers<[1], [0], [0], [1], [0, 0, 1, 1], [], []>} : vector<256x64xf32>, vector<64x64xf32>, vector<256x64xf32> -> vector<256x64xf32>
    %107 = arith.addf %101, %106 : vector<256x64xf32>
    %c1_117 = arith.constant 1 : index
    %c2_118 = arith.constant 2 : index
    %c0_119 = arith.constant 0 : index
    %108 = vector.load %arg8[%c1_117, %c2_118, %c0_119] : memref<18x18x64xf32, #tpu.memory_space<vmem>>, vector<16x16x64xf32>
    %109 = vector.shape_cast %108 : vector<16x16x64xf32> to vector<256x64xf32>
    %c5_120 = arith.constant 5 : index
    %c0_121 = arith.constant 0 : index
    %c0_122 = arith.constant 0 : index
    %110 = vector.load %arg3[%c5_120, %c0_121, %c0_122] : memref<9x64x64xf32, #tpu.memory_space<vmem>>, vector<1x64x64xf32>
    %111 = vector.shape_cast %110 : vector<1x64x64xf32> to vector<64x64xf32>
    %cst_123 = arith.constant dense<0.000000e+00> : vector<256x64xf32>
    %112 = tpu.matmul %109, %111, %cst_123 {dimension_numbers = #tpu.dot_dimension_numbers<[1], [0], [0], [1], [0, 0, 1, 1], [], []>} : vector<256x64xf32>, vector<64x64xf32>, vector<256x64xf32> -> vector<256x64xf32>
    %113 = arith.addf %107, %112 : vector<256x64xf32>
    %c2_124 = arith.constant 2 : index
    %c0_125 = arith.constant 0 : index
    %c0_126 = arith.constant 0 : index
    %114 = vector.load %arg8[%c2_124, %c0_125, %c0_126] : memref<18x18x64xf32, #tpu.memory_space<vmem>>, vector<16x16x64xf32>
    %115 = vector.shape_cast %114 : vector<16x16x64xf32> to vector<256x64xf32>
    %c6_127 = arith.constant 6 : index
    %c0_128 = arith.constant 0 : index
    %c0_129 = arith.constant 0 : index
    %116 = vector.load %arg3[%c6_127, %c0_128, %c0_129] : memref<9x64x64xf32, #tpu.memory_space<vmem>>, vector<1x64x64xf32>
    %117 = vector.shape_cast %116 : vector<1x64x64xf32> to vector<64x64xf32>
    %cst_130 = arith.constant dense<0.000000e+00> : vector<256x64xf32>
    %118 = tpu.matmul %115, %117, %cst_130 {dimension_numbers = #tpu.dot_dimension_numbers<[1], [0], [0], [1], [0, 0, 1, 1], [], []>} : vector<256x64xf32>, vector<64x64xf32>, vector<256x64xf32> -> vector<256x64xf32>
    %119 = arith.addf %113, %118 : vector<256x64xf32>
    %c2_131 = arith.constant 2 : index
    %c1_132 = arith.constant 1 : index
    %c0_133 = arith.constant 0 : index
    %120 = vector.load %arg8[%c2_131, %c1_132, %c0_133] : memref<18x18x64xf32, #tpu.memory_space<vmem>>, vector<16x16x64xf32>
    %121 = vector.shape_cast %120 : vector<16x16x64xf32> to vector<256x64xf32>
    %c7_134 = arith.constant 7 : index
    %c0_135 = arith.constant 0 : index
    %c0_136 = arith.constant 0 : index
    %122 = vector.load %arg3[%c7_134, %c0_135, %c0_136] : memref<9x64x64xf32, #tpu.memory_space<vmem>>, vector<1x64x64xf32>
    %123 = vector.shape_cast %122 : vector<1x64x64xf32> to vector<64x64xf32>
    %cst_137 = arith.constant dense<0.000000e+00> : vector<256x64xf32>
    %124 = tpu.matmul %121, %123, %cst_137 {dimension_numbers = #tpu.dot_dimension_numbers<[1], [0], [0], [1], [0, 0, 1, 1], [], []>} : vector<256x64xf32>, vector<64x64xf32>, vector<256x64xf32> -> vector<256x64xf32>
    %125 = arith.addf %119, %124 : vector<256x64xf32>
    %c2_138 = arith.constant 2 : index
    %c2_139 = arith.constant 2 : index
    %c0_140 = arith.constant 0 : index
    %126 = vector.load %arg8[%c2_138, %c2_139, %c0_140] : memref<18x18x64xf32, #tpu.memory_space<vmem>>, vector<16x16x64xf32>
    %127 = vector.shape_cast %126 : vector<16x16x64xf32> to vector<256x64xf32>
    %c8_141 = arith.constant 8 : index
    %c0_142 = arith.constant 0 : index
    %c0_143 = arith.constant 0 : index
    %128 = vector.load %arg3[%c8_141, %c0_142, %c0_143] : memref<9x64x64xf32, #tpu.memory_space<vmem>>, vector<1x64x64xf32>
    %129 = vector.shape_cast %128 : vector<1x64x64xf32> to vector<64x64xf32>
    %cst_144 = arith.constant dense<0.000000e+00> : vector<256x64xf32>
    %130 = tpu.matmul %127, %129, %cst_144 {dimension_numbers = #tpu.dot_dimension_numbers<[1], [0], [0], [1], [0, 0, 1, 1], [], []>} : vector<256x64xf32>, vector<64x64xf32>, vector<256x64xf32> -> vector<256x64xf32>
    %131 = arith.addf %125, %130 : vector<256x64xf32>
    %c0_145 = arith.constant 0 : index
    %c0_146 = arith.constant 0 : index
    %132 = vector.load %arg5[%c0_145, %c0_146] : memref<1x64xf32, #tpu.memory_space<vmem>>, vector<1x64xf32>
    %133 = vector.broadcast %132 : vector<1x64xf32> to vector<256x64xf32>
    %134 = arith.addf %131, %133 : vector<256x64xf32>
    %c0_147 = arith.constant 0 : index
    %c1_148 = arith.constant 1 : index
    %c1_149 = arith.constant 1 : index
    %c0_150 = arith.constant 0 : index
    %135 = vector.load %arg1[%c0_147, %c1_148, %c1_149, %c0_150] : memref<1x18x18x64xf32, #tpu.memory_space<vmem>>, vector<1x16x16x64xf32>
    %136 = vector.shape_cast %135 : vector<1x16x16x64xf32> to vector<16x16x64xf32>
    %137 = vector.shape_cast %136 : vector<16x16x64xf32> to vector<256x64xf32>
    %138 = arith.addf %134, %137 : vector<256x64xf32>
    %139 = vector.shape_cast %138 : vector<256x64xf32> to vector<16x16x64xf32>
    %c0_151 = arith.constant 0 : index
    %c0_152 = arith.constant 0 : index
    %c0_153 = arith.constant 0 : index
    %c0_154 = arith.constant 0 : index
    %140 = vector.load %arg7[%c0_151, %c0_152, %c0_153, %c0_154] : memref<1x16x16x64xf32, #tpu.memory_space<vmem>>, vector<1x16x16x64xf32>
    %141 = vector.shape_cast %140 : vector<1x16x16x64xf32> to vector<16x16x64xf32>
    %142 = vector.shape_cast %139 : vector<16x16x64xf32> to vector<1x16x16x64xf32>
    tpu.vector_store %arg7[%c0_151, %c0_152, %c0_153, %c0_154], %142 {strides = array<i32>} : memref<1x16x16x64xf32, #tpu.memory_space<vmem>>, vector<1x16x16x64xf32>,
    return
  }
  func.func @transform_0(%arg0: i32) -> (i32, i32, i32, i32) {
    %c0_i32 = arith.constant 0 : i32
    %c0_i32_0 = arith.constant 0 : i32
    %c0_i32_1 = arith.constant 0 : i32
    %c0_i32_2 = arith.constant 0 : i32
    return %arg0, %c0_i32, %c0_i32_0, %c0_i32_1 : i32, i32, i32, i32
  }
  func.func @transform_1(%arg0: i32) -> (i32, i32, i32) {
    %c0_i32 = arith.constant 0 : i32
    %c0_i32_0 = arith.constant 0 : i32
    %c0_i32_1 = arith.constant 0 : i32
    %c0_i32_2 = arith.constant 0 : i32
    return %c0_i32, %c0_i32_0, %c0_i32_1 : i32, i32, i32
  }
  func.func @transform_2(%arg0: i32) -> (i32, i32, i32) {
    %c0_i32 = arith.constant 0 : i32
    %c0_i32_0 = arith.constant 0 : i32
    %c0_i32_1 = arith.constant 0 : i32
    %c0_i32_2 = arith.constant 0 : i32
    return %c0_i32, %c0_i32_0, %c0_i32_1 : i32, i32, i32
  }
  func.func @transform_3(%arg0: i32) -> (i32, i32) {
    %c0_i32 = arith.constant 0 : i32
    %c0_i32_0 = arith.constant 0 : i32
    %c0_i32_1 = arith.constant 0 : i32
    return %c0_i32, %c0_i32_0 : i32, i32
  }
  func.func @transform_4(%arg0: i32) -> (i32, i32) {
    %c0_i32 = arith.constant 0 : i32
    %c0_i32_0 = arith.constant 0 : i32
    %c0_i32_1 = arith.constant 0 : i32
    return %c0_i32, %c0_i32_0 : i32, i32
  }
  func.func @transform_5(%arg0: i32) -> i32 {
    %c0_i32 = arith.constant 0 : i32
    %c0_i32_0 = arith.constant 0 : i32
    return %c0_i32 : i32
  }
  func.func @transform_6(%arg0: i32) -> (i32, i32, i32, i32) {
    %c0_i32 = arith.constant 0 : i32
    %c0_i32_0 = arith.constant 0 : i32
    %c0_i32_1 = arith.constant 0 : i32
    %c0_i32_2 = arith.constant 0 : i32
    return %arg0, %c0_i32, %c0_i32_0, %c0_i32_1 : i32, i32, i32, i32
  }
}

</mosaic_0001>

<bundles_post_ra>
// kernel: tpu_custom_call.1
= control target key start
LH: loop header
LB: loop body
LE: loop exit
PB: predicated region body
PF: predicated region fallthrough
CT: control target
= control target key end

     0   :  { %s14226_s0 = inlined_call_operand.vmem [shape: f32[2,18,18,64], index: 0, kind: input, shape index: {}]   ;;  %s14227_s1 = inlined_call_operand.vmem [shape: f32[9,64,64], index: 1, kind: input, shape index: {}]   ;;  %s14228_s2 = inlined_call_operand.vmem [shape: f32[9,64,64], index: 2, kind: input, shape index: {}]   ;;  %s14229_s3 = inlined_call_operand.vmem [shape: f32[1,64], index: 3, kind: input, shape index: {}]   ;;  %s14230_s4 = inlined_call_operand.vmem [shape: f32[1,64], index: 4, kind: input, shape index: {}]   ;;  %s14231_s5 = inlined_call_operand.<no memory space> [shape: f32[1], index: 5, kind: input, shape index: {}]   ;;  %s14232_s6 = inlined_call_operand.hbm [shape: f32[2,16,16,64], index: 6, kind: output, shape index: {}]  }
   0x1   :  { %11 = sst [smem:[#allocation3]] %s14231_s5 }
   0x2   :  { %12 = vsyncpa [#allocation5], 0 }
   0x3   :  { %14 = vsyncpa [#allocation5 + $0x1], 0  ;;  %s10605_s23 = smov 0   ;;  %s10607_s24 = smov 0  }
   0x4   :  { %s10609_s25 = smov 0   ;;  %s10611_s26 = smov 0  }
   0x5 LB: > { %s10626_s5 = sadd.s32 4294967295, %s10561_s26   ;;  %s7643_s27 = sadd.s32 4294967294, %s10561_s26   ;;  %s10561_s26 = sphi %s10611_s26, %s14552_s26   ;;  %s10557_s25 = sphi %s10609_s25, %s14551_s25   ;;  %s10553_s24 = sphi %s10607_s24, %s14550_s24   ;;  %s10549_s23 = sphi %s10605_s23, %s14549_s23  }
   0x6   : > { %s10630_s28 = sadd.s32 1, %s10561_s26   ;;  %s158_s29 = sadd.s32 1, %s10557_s25 }
   0x7   : > { %s155_s30 = ssub.s32 %s10561_s26, %s10630_s28  ;;  %p168_p0 = scmp.ne.s32.totalorder %s10557_s25, %s10553_s24 }
   0x8   : > { %p156_p1 = scmp.eq.s32.totalorder %s155_s30, 0  ;;  %p169_p2 = scmp.eq.s32.totalorder %s10626_s5, 1 }
   0x9   : > { %p174_p3 = scmp.ne.s32.totalorder %s10553_s24, %s10549_s23  ;;  %p175_p4 = scmp.eq.s32.totalorder %s7643_s27, 1 }
   0xa   : > { %s10641_s7 = scalar_select %p156_p1, %s10557_s25, %s158_s29  }
   0xb   : > { %p10643_p5 = por %p169_p2, %p168_p0  ;;  %p10647_p6 = por %p175_p4, %p174_p3 }
   0xc   : > { %p7646_p7 = scmp.ge.s32.totalorder %s10561_s26, 1  ;;  %p216_p8 = scmp.lt.s32.totalorder %s10561_s26, 3 }
   0xe   : > { %p217_p9 = pnand %p7646_p7, %p216_p8 }
  0x10   : > { %220 = sbr.rel (%p217_p9) target bundleno = 1050 (0x41a), region = 44 }
  0x15   : > { %v7656_v0 = vld [vmem:[%s14227_s1 + $0x78] sm:$0xff]  ;;  %v7655_v2 = vld [vmem:[%s14227_s1 + $0x70] sm:$0xff]  ;;  %p246_p10 = scmp.lt.s32.totalorder %s10626_s5, 1  ;;  %v7654_v4 = vld [vmem:[%s14227_s1 + $0x68] sm:$0xff]  ;;  %vm332_vm0 = vcmask 523264   ;;  %vm3880_vm1 = vcmask 516096  }
  0x16   : > { %v290_v1 = vld [vmem:[%s14227_s1 + $0x38] sm:$0xff]  ;;  %9305 = vmatprep.subr.mxu0 %v7656_v0  ;;  %v289_v3 = vld [vmem:[%s14227_s1 + $0x30] sm:$0xff]  ;;  %v288_v5 = vld [vmem:[%s14227_s1 + $0x28] sm:$0xff]  ;;  %vm3874_vm2 = vcmask 517120   ;;  %s12327_s13 = sld [smem:[#allocation3]]  ;;  %s243_s21 = sand.u32 1, %s10553_s24  }
  0x17   : > { %9369 = vmatprep.subr.mxu1 %v290_v1  ;;  %9306 = vmatpush3.msra.mxu0 %v7656_v0  ;;  %s247_s22 = scalar_select %p246_p10, %s10626_s5, 1  ;;  %v7653_v6 = vld [vmem:[%s14227_s1 + $0x60] sm:$0xff]  ;;  %v7652_v8 = vld [vmem:[%s14227_s1 + $0x58] sm:$0xff]  ;;  %v7651_v10 = vld [vmem:[%s14227_s1 + $0x50] sm:$0xff] }
  0x18   : > { %9370 = vmatpush3.msra.mxu1 %v290_v1  ;;  %9307 = vmatprep.subr.mxu0 %v7655_v2  ;;  %v287_v7 = vld [vmem:[%s14227_s1 + $0x20] sm:$0xff]  ;;  %v286_v9 = vld [vmem:[%s14227_s1 + $0x18] sm:$0xff]  ;;  %v285_v11 = vld [vmem:[%s14227_s1 + $0x10] sm:$0xff]  ;;  %s7647_s29 = sshll.u32 %s243_s21, 8  ;;  %s8584_s11 = sshll.u32 %s10626_s5, 12 }
  0x19   : > { %9371 = vmatprep.subr.mxu1 %v289_v3  ;;  %9308 = vmatpush3.msra.mxu0 %v7655_v2  ;;  %s10457_s15 = smul.u32 432, %s247_s22  ;;  %v7650_v12 = vld [vmem:[%s14227_s1 + $0x48] sm:$0xff]  ;;  %v7649_v14 = vld [vmem:[%s14227_s1 + $0x40] sm:$0xff]  ;;  %v7728_v20 = vld [vmem:[%s14227_s1 + $0xb8] sm:$0xff]  ;;  %s13943_s30 = scalar_lea.vmem [#allocation4], %s7647_s29 }
  0x1a   : > { %9372 = vmatpush3.msra.mxu1 %v289_v3  ;;  %9309 = vmatprep.subr.mxu0 %v7654_v4  ;;  %v284_v13 = vld [vmem:[%s14227_s1 + $0x8] sm:$0xff]  ;;  %v283_v15 = vld [vmem:[%s14227_s1] sm:$0xff]  ;;  %v7727_v23 = vld [vmem:[%s14227_s1 + $0xb0] sm:$0xff]  ;;  %s7581_s12 = sshll.u32 %s13943_s30, 4  ;;  %s14186_s5 = scalar_lea.sflag [#allocation5], %s243_s21  ;;  %s14178_s12 = int_to_ptr.vmem [resolvable:$true] %s7581_s12 }
  0x1b   : > { %9373 = vmatprep.subr.mxu1 %v288_v5  ;;  %9310 = vmatpush3.msra.mxu0 %v7654_v4  ;;  %s10700_s10 = scalar_lea.vmem %s14226_s0, %s10457_s15  ;;  %v7726_v28 = vld [vmem:[%s14227_s1 + $0xa8] sm:$0xff]  ;;  %v7800_v33 = vld [vmem:[%s14227_s1 + $0xf8] sm:$0xff]  ;;  %v7725_v34 = vld [vmem:[%s14227_s1 + $0xa0] sm:$0xff]  ;;  %s14176_s15 = scalar_lea.hbm %s14232_s6, %s8584_s11 }
  0x1c   : > { %9374 = vmatpush3.msra.mxu1 %v288_v5  ;;  %9311 = vmatprep.subr.mxu0 %v7653_v6  ;;  %v291_v16 = vld [vmem:[%s10700_s10 + $0x1] sm:$0xff]  ;;  %v292_v18 = vld [vmem:[%s10700_s10 + $0x9] sm:$0xff]  ;;  %v10717_v21 = vld [vmem:[%s10700_s10 + $0x19] sm:$0xff]  ;;  %s10564_s16 = smov [#allocation4]  }
  0x1d   : > { %9375 = vmatprep.subr.mxu1 %v287_v7  ;;  %9312 = vmatpush3.msra.mxu0 %v7653_v6  ;;  %v251_v17 = vld [vmem:[%s10700_s10] sm:$0xff]  ;;  %v252_v19 = vld [vmem:[%s10700_s10 + $0x8] sm:$0xff]  ;;  %v10721_v22 = vld [vmem:[%s10700_s10 + $0x18] sm:$0xff]  ;;  %s10505_s17 = sshll.u32 %s10564_s16, 4  ;;  %s10506_s17 = int_to_ptr.vmem [resolvable:$false] %s10505_s17 }
  0x1e   : > { %9376 = vmatpush3.msra.mxu1 %v287_v7  ;;  %9313 = vmatprep.subr.mxu0 %v7652_v8  ;;  %v10731_v24 = vld [vmem:[%s10700_s10 + $0x21] sm:$0xff]  ;;  %v10739_v26 = vld [vmem:[%s10700_s10 + $0x31] sm:$0xff]  ;;  %v10756_v29 = vld [vmem:[%s10700_s10 + $0x39] sm:$0xff]  ;;  %s10507_s18 = scalar_lea.vmem %s10506_s17, 8192  ;;  %p10508_p0 = scmp.lt.s32.totalorder %s14178_s12, %s10506_s17 }
  0x1f   : > { %9377 = vmatprep.subr.mxu1 %v286_v9  ;;  %9314 = vmatpush3.msra.mxu0 %v7652_v8  ;;  %v10734_v25 = vld [vmem:[%s10700_s10 + $0x20] sm:$0xff]  ;;  %v10742_v27 = vld [vmem:[%s10700_s10 + $0x30] sm:$0xff]  ;;  %v10759_v30 = vld [vmem:[%s10700_s10 + $0x38] sm:$0xff] }
  0x20   : > { %9378 = vmatpush3.msra.mxu1 %v286_v9  ;;  %9315 = vmatprep.subr.mxu0 %v7651_v10  ;;  %14243 = vst [vmem:[#allocation7_spill] sm:$0xff] %v10742_v27  ;;  %14244 = vst [vmem:[#allocation8_spill] sm:$0xff] %v10759_v30  ;;  %v10762_v31 = vld [vmem:[%s10700_s10 + $0x49] sm:$0xff]  ;;  %v10782_v35 = vld [vmem:[%s10700_s10 + $0x51] sm:$0xff] }
  0x21   : > { %9379 = vmatprep.subr.mxu1 %v285_v11  ;;  %9316 = vmatpush3.msra.mxu0 %v7651_v10  ;;  %v10765_v32 = vld [vmem:[%s10700_s10 + $0x48] sm:$0xff]  ;;  %v10785_v36 = vld [vmem:[%s10700_s10 + $0x50] sm:$0xff]  ;;  %v10791_v38 = vld [vmem:[%s10700_s10 + $0x60] sm:$0xff] }
  0x22   : > { %9380 = vmatpush3.msra.mxu1 %v285_v11  ;;  %9317 = vmatprep.subr.mxu0 %v7650_v12  ;;  %v10788_v37 = vld [vmem:[%s10700_s10 + $0x61] sm:$0xff]  ;;  %v7799_v39 = vld [vmem:[%s14227_s1 + $0xf0] sm:$0xff]  ;;  %v7724_v40 = vld [vmem:[%s14227_s1 + $0x98] sm:$0xff] }
  0x23   : > { %9381 = vmatprep.subr.mxu1 %v284_v13  ;;  %9318 = vmatpush3.msra.mxu0 %v7650_v12  ;;  %v10808_v41 = vld [vmem:[%s10700_s10 + $0x69] sm:$0xff]  ;;  %v10814_v43 = vld [vmem:[%s10700_s10 + $0x79] sm:$0xff]  ;;  %v10834_v47 = vld [vmem:[%s10700_s10 + $0x81] sm:$0xff] }
  0x24   : > { %9382 = vmatpush3.msra.mxu1 %v284_v13  ;;  %9319 = vmatprep.subr.mxu0 %v7649_v14  ;;  %v10811_v42 = vld [vmem:[%s10700_s10 + $0x68] sm:$0xff]  ;;  %v10817_v44 = vld [vmem:[%s10700_s10 + $0x78] sm:$0xff]  ;;  %v7723_v46 = vld [vmem:[%s14227_s1 + $0x90] sm:$0xff] }
  0x25   : > { %9383 = vmatprep.subr.mxu1 %v283_v15  ;;  %9320 = vmatpush3.msra.mxu0 %v7649_v14  ;;  %v7798_v45 = vld [vmem:[%s14227_s1 + $0xe8] sm:$0xff]  ;;  %v10837_v48 = vld [vmem:[%s10700_s10 + $0x80] sm:$0xff]  ;;  %v10840_v49 = vld [vmem:[%s10700_s10 + $0x91] sm:$0xff] }
  0x26   : > { %9321 = vmatprep.mubr.msk.f32.mxu0 %vm332_vm0, %v291_v16  ;;  %9384 = vmatpush3.msra.mxu1 %v283_v15  ;;  %v10843_v50 = vld [vmem:[%s10700_s10 + $0x90] sm:$0xff]  ;;  %v7797_v51 = vld [vmem:[%s14227_s1 + $0xe0] sm:$0xff]  ;;  %v7722_v52 = vld [vmem:[%s14227_s1 + $0x88] sm:$0xff] }
  0x27   : > { %9385 = vmatprep.mubr.msk.f32.mxu1 %vm332_vm0, %v251_v17  ;;  %9322 = vmatmul.mubr.msk.f32.vlgmr.msra.gmra.mxu0 %vm332_vm0, %v292_v18  ;;  %v10860_v53 = vld [vmem:[%s10700_s10 + $0x99] sm:$0xff]  ;;  %v10866_v55 = vld [vmem:[%s10700_s10 + $0xa9] sm:$0xff]  ;;  %v10886_v59 = vld [vmem:[%s10700_s10 + $0xb1] sm:$0xff] }
  0x28   : > { %9386 = vmatmul.mubr.msk.f32.vlgmr.msra.gmra.mxu1 %vm332_vm0, %v252_v19  ;;  %9433 = vmatprep.subr.mxu0 %v7728_v20  ;;  %v10863_v54 = vld [vmem:[%s10700_s10 + $0x98] sm:$0xff]  ;;  %v10869_v56 = vld [vmem:[%s10700_s10 + $0xa8] sm:$0xff]  ;;  %v7721_v58 = vld [vmem:[%s14227_s1 + $0x80] sm:$0xff] }
  0x29   : > { %9324 = vmatprep.mubr.msk.f32.mxu0 %vm332_vm0, %v10717_v21  ;;  %9434 = vmatpush3.msra.mxu0 %v7728_v20  ;;  %v7796_v57 = vld [vmem:[%s14227_s1 + $0xd8] sm:$0xff]  ;;  %v10889_v60 = vld [vmem:[%s10700_s10 + $0xb0] sm:$0xff]  ;;  %v10892_v61 = vld [vmem:[%s10700_s10 + $0xc1] sm:$0xff] }
  0x2a   : > { %9388 = vmatprep.mubr.msk.f32.mxu1 %vm332_vm0, %v10721_v22  ;;  %9435 = vmatprep.subr.mxu0 %v7727_v23  ;;  %v10895_v62 = vld [vmem:[%s10700_s10 + $0xc0] sm:$0xff]  ;;  %v7795_v63 = vld [vmem:[%s14227_s1 + $0xd0] sm:$0xff]  ;;  %v10907_v0 = vld [vmem:[%s14227_s1 + $0x138] sm:$0xff] }
  0x2b   : > { %9325 = vmatmul.mubr.msk.f32.gmra.mxu0 %vm332_vm0, %v10731_v24  ;;  %9497 = vmatprep.subr.mxu1 %v7800_v33  ;;  %v10914_v1 = vld [vmem:[%s10700_s10 + $0xc9] sm:$0xff]  ;;  %v10920_v3 = vld [vmem:[%s10700_s10 + $0xd9] sm:$0xff]  ;;  %v10938_v6 = vld [vmem:[%s10700_s10 + $0xe1] sm:$0xff] }
  0x2c   : > { %9389 = vmatmul.mubr.msk.f32.gmra.mxu1 %vm332_vm0, %v10734_v25  ;;  %9327 = vmatprep.mubr.msk.f32.mxu0 %vm332_vm0, %v10739_v26  ;;  %v10917_v2 = vld [vmem:[%s10700_s10 + $0xc8] sm:$0xff]  ;;  %v10923_v4 = vld [vmem:[%s10700_s10 + $0xd8] sm:$0xff]  ;;  %v10941_v7 = vld [vmem:[%s10700_s10 + $0xe0] sm:$0xff] }
  0x2d   : > { %9391 = vmatprep.mubr.msk.f32.mxu1 %vm332_vm0, %v10742_v27  ;;  %9436 = vmatpush3.msra.mxu0 %v7727_v23  ;;  %v7794_v5 = vld [vmem:[%s14227_s1 + $0xc8] sm:$0xff]  ;;  %v10944_v8 = vld [vmem:[%s10700_s10 + $0xf1] sm:$0xff]  ;;  %v7793_v10 = vld [vmem:[%s14227_s1 + $0xc0] sm:$0xff] }
  0x2e   : > { %9437 = vmatprep.subr.mxu0 %v7726_v28  ;;  %9498 = vmatpush3.msra.mxu1 %v7800_v33  ;;  %v10947_v9 = vld [vmem:[%s10700_s10 + $0xf0] sm:$0xff]  ;;  %v10961_v11 = vld [vmem:[%s10700_s10 + $0xf9] sm:$0xff]  ;;  %v10970_v14 = vld [vmem:[%s10700_s10 + $0x108] sm:$0xff] }
  0x2f   : > { %9328 = vmatmul.mubr.msk.f32.gmra.mxu0 %vm332_vm0, %v10756_v29  ;;  %9499 = vmatprep.subr.mxu1 %v7799_v39  ;;  %v10964_v12 = vld [vmem:[%s10700_s10 + $0xf8] sm:$0xff]  ;;  %v10967_v13 = vld [vmem:[%s10700_s10 + $0x109] sm:$0xff]  ;;  %v10990_v18 = vld [vmem:[%s10700_s10 + $0x121] sm:$0xff] }
  0x30   : > { %9392 = vmatmul.mubr.msk.f32.gmra.mxu1 %vm332_vm0, %v10759_v30  ;;  %9330 = vmatprep.mubr.msk.f32.mxu0 %vm332_vm0, %v10762_v31  ;;  %v7944_v15 = vld [vmem:[%s14227_s1 + $0x178] sm:$0xff]  ;;  %v10987_v17 = vld [vmem:[%s10700_s10 + $0x110] sm:$0xff]  ;;  %v10993_v19 = vld [vmem:[%s10700_s10 + $0x120] sm:$0xff] }
  0x31   : > { %9394 = vmatprep.mubr.msk.f32.mxu1 %vm332_vm0, %v10765_v32  ;;  %9438 = vmatpush3.msra.mxu0 %v7726_v28  ;;  %v10984_v16 = vld [vmem:[%s10700_s10 + $0x111] sm:$0xff]  ;;  %v11004_v20 = vld [vmem:[%s10700_s10 + $0x129] sm:$0xff]  ;;  %v11010_v28 = vld [vmem:[%s10700_s10 + $0x139] sm:$0xff] }
  0x32   : > { %9439 = vmatprep.subr.mxu0 %v7725_v34  ;;  %9500 = vmatpush3.msra.mxu1 %v7799_v39  ;;  %v11007_v23 = vld [vmem:[%s10700_s10 + $0x128] sm:$0xff]  ;;  %v11013_v33 = vld [vmem:[%s10700_s10 + $0x138] sm:$0xff]  ;;  %v11027_v39 = vld [vmem:[%s10700_s10 + $0x140] sm:$0xff] }
  0x33   : > { %9331 = vmatmul.mubr.msk.f32.gmra.mxu0 %vm332_vm0, %v10782_v35  ;;  %9501 = vmatprep.subr.mxu1 %v7798_v45 }
  0x34   : > { %9395 = vmatmul.mubr.msk.f32.gmra.mxu1 %vm332_vm0, %v10785_v36  ;;  %9333 = vmatprep.mubr.msk.f32.mxu0 %vm332_vm0, %v10788_v37 }
  0x35   : > { %9397 = vmatprep.mubr.msk.f32.mxu1 %vm332_vm0, %v10791_v38  ;;  %9440 = vmatpush3.msra.mxu0 %v7725_v34  ;;  %v11024_v34 = vld [vmem:[%s10700_s10 + $0x141] sm:$0xff] }
  0x36   : > { %9441 = vmatprep.subr.mxu0 %v7724_v40  ;;  %9502 = vmatpush3.msra.mxu1 %v7798_v45  ;;  %v11033_v45 = vld [vmem:[%s10700_s10 + $0x150] sm:$0xff] }
  0x37   : > { %9334 = vmatmul.mubr.msk.f32.gmra.mxu0 %vm332_vm0, %v10808_v41  ;;  %9503 = vmatprep.subr.mxu1 %v7797_v51 }
  0x38   : > { %9398 = vmatmul.mubr.msk.f32.gmra.mxu1 %vm332_vm0, %v10811_v42  ;;  %9336 = vmatprep.mubr.msk.f32.mxu0 %vm332_vm0, %v10814_v43 }
  0x39   : > { %9400 = vmatprep.mubr.msk.f32.mxu1 %vm332_vm0, %v10817_v44  ;;  %9442 = vmatpush3.msra.mxu0 %v7724_v40  ;;  %v11030_v40 = vld [vmem:[%s10700_s10 + $0x151] sm:$0xff] }
  0x3a   : > { %9443 = vmatprep.subr.mxu0 %v7723_v46  ;;  %9504 = vmatpush3.msra.mxu1 %v7797_v51  ;;  %v11047_v51 = vld [vmem:[%s10700_s10 + $0x158] sm:$0xff] }
  0x3b   : > { %9337 = vmatmul.mubr.msk.f32.gmra.mxu0 %vm332_vm0, %v10834_v47  ;;  %9505 = vmatprep.subr.mxu1 %v7796_v57 }
  0x3c   : > { %9401 = vmatmul.mubr.msk.f32.gmra.mxu1 %vm332_vm0, %v10837_v48  ;;  %9339 = vmatprep.mubr.msk.f32.mxu0 %vm332_vm0, %v10840_v49 }
  0x3d   : > { %9403 = vmatprep.mubr.msk.f32.mxu1 %vm332_vm0, %v10843_v50  ;;  %9444 = vmatpush3.msra.mxu0 %v7723_v46  ;;  %v11044_v46 = vld [vmem:[%s10700_s10 + $0x159] sm:$0xff] }
  0x3e   : > { %9445 = vmatprep.subr.mxu0 %v7722_v52  ;;  %9506 = vmatpush3.msra.mxu1 %v7796_v57  ;;  %14245 = vst [vmem:[#allocation9_spill] sm:$0xff] %v11044_v46  ;;  %v11053_v57 = vld [vmem:[%s10700_s10 + $0x168] sm:$0xff] }
  0x3f   : > { %9340 = vmatmul.mubr.msk.f32.gmra.mxu0 %vm332_vm0, %v10860_v53  ;;  %9507 = vmatprep.subr.mxu1 %v7795_v63 }
  0x40   : > { %9404 = vmatmul.mubr.msk.f32.gmra.mxu1 %vm332_vm0, %v10863_v54  ;;  %9342 = vmatprep.mubr.msk.f32.mxu0 %vm332_vm0, %v10866_v55 }
  0x41   : > { %9406 = vmatprep.mubr.msk.f32.mxu1 %vm332_vm0, %v10869_v56  ;;  %9446 = vmatpush3.msra.mxu0 %v7722_v52  ;;  %v11050_v52 = vld [vmem:[%s10700_s10 + $0x169] sm:$0xff] }
  0x42   : > { %9447 = vmatprep.subr.mxu0 %v7721_v58  ;;  %9508 = vmatpush3.msra.mxu1 %v7795_v63  ;;  %14246 = vst [vmem:[#allocation10_spill] sm:$0xff] %v11050_v52  ;;  %v11067_v63 = vld [vmem:[%s10700_s10 + $0x170] sm:$0xff] }
  0x43   : > { %9343 = vmatmul.mubr.msk.f32.gmra.mxu0 %vm332_vm0, %v10886_v59  ;;  %9509 = vmatprep.subr.mxu1 %v7794_v5 }
  0x44   : > { %9407 = vmatmul.mubr.msk.f32.gmra.mxu1 %vm332_vm0, %v10889_v60  ;;  %9345 = vmatprep.mubr.msk.f32.mxu0 %vm332_vm0, %v10892_v61 }
  0x45   : > { %9409 = vmatprep.mubr.msk.f32.mxu1 %vm332_vm0, %v10895_v62  ;;  %9448 = vmatpush3.msra.mxu0 %v7721_v58  ;;  %v11064_v58 = vld [vmem:[%s10700_s10 + $0x171] sm:$0xff] }
  0x46   : > { %9561 = vmatprep.subr.mxu0 %v10907_v0  ;;  %9510 = vmatpush3.msra.mxu1 %v7794_v5  ;;  %v975_v5 = vld [vmem:[%s10700_s10 + $0x2] sm:$0xff] }
  0x47   : > { %9346 = vmatmul.mubr.msk.f32.gmra.mxu0 %vm332_vm0, %v10914_v1  ;;  %9511 = vmatprep.subr.mxu1 %v7793_v10 }
  0x48   : > { %9410 = vmatmul.mubr.msk.f32.gmra.mxu1 %vm332_vm0, %v10917_v2  ;;  %9348 = vmatprep.mubr.msk.f32.mxu0 %vm332_vm0, %v10920_v3 }
  0x49   : > { %9412 = vmatprep.mubr.msk.f32.mxu1 %vm332_vm0, %v10923_v4  ;;  %9512 = vmatpush3.msra.mxu1 %v7793_v10  ;;  %v976_v10 = vld [vmem:[%s10700_s10 + $0xa] sm:$0xff] }
  0x4a   : > { %9625 = vmatprep.subr.mxu1 %v7944_v15 }
  0x4b   : > { %9349 = vmatmul.mubr.msk.f32.gmra.mxu0 %vm332_vm0, %v10938_v6 }
  0x4c   : > { %9413 = vmatmul.mubr.msk.f32.gmra.mxu1 %vm332_vm0, %v10941_v7  ;;  %9351 = vmatprep.mubr.msk.f32.mxu0 %vm332_vm0, %v10944_v8 }
  0x4d   : > { %9415 = vmatprep.mubr.msk.f32.mxu1 %vm332_vm0, %v10947_v9 }
  0x4f   : > { %9352 = vmatmul.mubr.msk.f32.gmra.mxu0 %vm332_vm0, %v10961_v11 }
  0x50   : > { %9416 = vmatmul.mubr.msk.f32.gmra.mxu1 %vm332_vm0, %v10964_v12  ;;  %9354 = vmatprep.mubr.msk.f32.mxu0 %vm332_vm0, %v10967_v13 }
  0x51   : > { %9418 = vmatprep.mubr.msk.f32.mxu1 %vm332_vm0, %v10970_v14 }
  0x53   : > { %9355 = vmatmul.mubr.msk.f32.gmra.mxu0 %vm332_vm0, %v10984_v16 }
  0x54   : > { %9419 = vmatmul.mubr.msk.f32.gmra.mxu1 %vm332_vm0, %v10987_v17  ;;  %9357 = vmatprep.mubr.msk.f32.mxu0 %vm332_vm0, %v10990_v18 }
  0x55   : > { %9421 = vmatprep.mubr.msk.f32.mxu1 %vm332_vm0, %v10993_v19 }
  0x57   : > { %9358 = vmatmul.mubr.msk.f32.gmra.mxu0 %vm332_vm0, %v11004_v20 }
  0x58   : > { %9422 = vmatmul.mubr.msk.f32.gmra.mxu1 %vm332_vm0, %v11007_v23  ;;  %9360 = vmatprep.mubr.msk.f32.mxu0 %vm332_vm0, %v11010_v28 }
  0x59   : > { %9424 = vmatprep.mubr.msk.f32.mxu1 %vm332_vm0, %v11013_v33 }
  0x5b   : > { %9361 = vmatmul.mubr.msk.f32.gmra.mxu0 %vm332_vm0, %v11024_v34 }
  0x5c   : > { %9425 = vmatmul.mubr.msk.f32.gmra.mxu1 %vm332_vm0, %v11027_v39  ;;  %9363 = vmatprep.mubr.msk.f32.mxu0 %vm332_vm0, %v11030_v40 }
  0x5d   : > { %9427 = vmatprep.mubr.msk.f32.mxu1 %vm332_vm0, %v11033_v45 }
  0x5f   : > { %9364 = vmatmul.mubr.msk.f32.gmra.mxu0 %vm332_vm0, %v11044_v46  ;;  %v7871_v46 = vld [vmem:[%s14227_s1 + $0x130] sm:$0xff] }
  0x60   : > { %9428 = vmatmul.mubr.msk.f32.gmra.mxu1 %vm332_vm0, %v11047_v51  ;;  %9366 = vmatprep.mubr.msk.f32.mxu0 %vm332_vm0, %v11050_v52  ;;  %v11079_v52 = vld [vmem:[%s10700_s10 + $0x1a] sm:$0xff] }
  0x61   : > { %9430 = vmatprep.mubr.msk.f32.mxu1 %vm332_vm0, %v11053_v57 }
  0x63   : > { %9367 = vmatmul.mubr.msk.f32.gmra.mxu0 %vm332_vm0, %v11064_v58 }
  0x64   : > { %9431 = vmatmul.mubr.msk.f32.gmra.mxu1 %vm332_vm0, %v11067_v63  ;;  %9449 = vmatprep.mubr.msk.f32.mxu0 %vm332_vm0, %v975_v5  ;;  %v11091_v5 = vld [vmem:[%s10700_s10 + $0x22] sm:$0xff] }
  0x65   : > { %9513 = vmatprep.mubr.msk.f32.mxu1 %vm332_vm0, %v10721_v22  ;;  %v11096_v22 = vld [vmem:[%s10700_s10 + $0x32] sm:$0xff] }
  0x67   : > { %9450 = vmatmul.mubr.msk.f32.vlgmr.msra.gmra.mxu0 %vm332_vm0, %v976_v10  ;;  %v7870_v10 = vld [vmem:[%s14227_s1 + $0x128] sm:$0xff] }
  0x68   : > { %9514 = vmatmul.mubr.msk.f32.vlgmr.msra.gmra.mxu1 %vm332_vm0, %v10734_v25  ;;  %9562 = vmatpush3.msra.mxu0 %v10907_v0  ;;  %v7943_v25 = vld [vmem:[%s14227_s1 + $0x170] sm:$0xff]  ;;  %v11111_v0 = vld [vmem:[%s10700_s10 + $0x3a] sm:$0xff] }
  0x69   : > { %9452 = vmatprep.mubr.msk.f32.mxu0 %vm332_vm0, %v11079_v52  ;;  %9516 = vmatprep.mubr.msk.f32.mxu1 %vm332_vm0, %v10742_v27  ;;  %v11326_v27 = vld [vmem:[%s10700_s10 + $0x180] sm:$0xff] }
  0x6a   : > { %9563 = vmatprep.subr.mxu0 %v7871_v46  ;;  %9626 = vmatpush3.msra.mxu1 %v7944_v15  ;;  %v11116_v15 = vld [vmem:[%s10700_s10 + $0x4a] sm:$0xff] }
  0x6b   : > { %9564 = vmatpush3.msra.mxu0 %v7871_v46  ;;  %9627 = vmatprep.subr.mxu1 %v7943_v25  ;;  %v7869_v46 = vld [vmem:[%s14227_s1 + $0x120] sm:$0xff] }
  0x6c   : > { %9453 = vmatmul.mubr.msk.f32.gmra.mxu0 %vm332_vm0, %v11091_v5  ;;  %9517 = vmatmul.mubr.msk.f32.gmra.mxu1 %vm332_vm0, %v10759_v30  ;;  %v7942_v30 = vld [vmem:[%s14227_s1 + $0x168] sm:$0xff] }
  0x6d   : > { %9455 = vmatprep.mubr.msk.f32.mxu0 %vm332_vm0, %v11096_v22  ;;  %9519 = vmatprep.mubr.msk.f32.mxu1 %vm332_vm0, %v10765_v32  ;;  %v11131_v32 = vld [vmem:[%s10700_s10 + $0x52] sm:$0xff] }
  0x6e   : > { %9565 = vmatprep.subr.mxu0 %v7870_v10  ;;  %9628 = vmatpush3.msra.mxu1 %v7943_v25  ;;  %v7868_v25 = vld [vmem:[%s14227_s1 + $0x118] sm:$0xff] }
  0x6f   : > { %9566 = vmatpush3.msra.mxu0 %v7870_v10  ;;  %v11136_v10 = vld [vmem:[%s10700_s10 + $0x62] sm:$0xff]  ;;  %9629 = vmatprep.subr.mxu1 %v7942_v30 }
  0x70   : > { %9456 = vmatmul.mubr.msk.f32.gmra.mxu0 %vm332_vm0, %v11111_v0  ;;  %9520 = vmatmul.mubr.msk.f32.gmra.mxu1 %vm332_vm0, %v10785_v36  ;;  %v7941_v36 = vld [vmem:[%s14227_s1 + $0x160] sm:$0xff] }
  0x71   : > { %9458 = vmatprep.mubr.msk.f32.mxu0 %vm332_vm0, %v11116_v15  ;;  %9522 = vmatprep.mubr.msk.f32.mxu1 %vm332_vm0, %v10791_v38  ;;  %v11151_v38 = vld [vmem:[%s10700_s10 + $0x6a] sm:$0xff] }
  0x72   : > { %9567 = vmatprep.subr.mxu0 %v7869_v46  ;;  %9630 = vmatpush3.msra.mxu1 %v7942_v30  ;;  %v11156_v30 = vld [vmem:[%s10700_s10 + $0x7a] sm:$0xff] }
  0x73   : > { %9568 = vmatpush3.msra.mxu0 %v7869_v46  ;;  %9631 = vmatprep.subr.mxu1 %v7941_v36  ;;  %v7867_v46 = vld [vmem:[%s14227_s1 + $0x110] sm:$0xff] }
  0x74   : > { %9459 = vmatmul.mubr.msk.f32.gmra.mxu0 %vm332_vm0, %v11131_v32  ;;  %9523 = vmatmul.mubr.msk.f32.gmra.mxu1 %vm332_vm0, %v10811_v42  ;;  %v7940_v42 = vld [vmem:[%s14227_s1 + $0x158] sm:$0xff] }
  0x75   : > { %9461 = vmatprep.mubr.msk.f32.mxu0 %vm332_vm0, %v11136_v10  ;;  %9525 = vmatprep.mubr.msk.f32.mxu1 %vm332_vm0, %v10817_v44  ;;  %v11171_v44 = vld [vmem:[%s10700_s10 + $0x82] sm:$0xff] }
  0x76   : > { %9569 = vmatprep.subr.mxu0 %v7868_v25  ;;  %9632 = vmatpush3.msra.mxu1 %v7941_v36  ;;  %v7866_v36 = vld [vmem:[%s14227_s1 + $0x108] sm:$0xff] }
  0x77   : > { %9570 = vmatpush3.msra.mxu0 %v7868_v25  ;;  %v11176_v25 = vld [vmem:[%s10700_s10 + $0x92] sm:$0xff]  ;;  %9633 = vmatprep.subr.mxu1 %v7940_v42 }
  0x78   : > { %9462 = vmatmul.mubr.msk.f32.gmra.mxu0 %vm332_vm0, %v11151_v38  ;;  %9526 = vmatmul.mubr.msk.f32.gmra.mxu1 %vm332_vm0, %v10837_v48  ;;  %v7939_v48 = vld [vmem:[%s14227_s1 + $0x150] sm:$0xff] }
  0x79   : > { %9464 = vmatprep.mubr.msk.f32.mxu0 %vm332_vm0, %v11156_v30  ;;  %9528 = vmatprep.mubr.msk.f32.mxu1 %vm332_vm0, %v10843_v50  ;;  %v11191_v50 = vld [vmem:[%s10700_s10 + $0x9a] sm:$0xff] }
  0x7a   : > { %9571 = vmatprep.subr.mxu0 %v7867_v46  ;;  %9634 = vmatpush3.msra.mxu1 %v7940_v42  ;;  %v7865_v42 = vld [vmem:[%s14227_s1 + $0x100] sm:$0xff] }
  0x7b   : > { %9572 = vmatpush3.msra.mxu0 %v7867_v46  ;;  %v11196_v46 = vld [vmem:[%s10700_s10 + $0xaa] sm:$0xff]  ;;  %9635 = vmatprep.subr.mxu1 %v7939_v48 }
  0x7c   : > { %9465 = vmatmul.mubr.msk.f32.gmra.mxu0 %vm332_vm0, %v11171_v44  ;;  %9529 = vmatmul.mubr.msk.f32.gmra.mxu1 %vm332_vm0, %v10863_v54  ;;  %v7938_v54 = vld [vmem:[%s14227_s1 + $0x148] sm:$0xff] }
  0x7d   : > { %9467 = vmatprep.mubr.msk.f32.mxu0 %vm332_vm0, %v11176_v25  ;;  %9531 = vmatprep.mubr.msk.f32.mxu1 %vm332_vm0, %v10869_v56  ;;  %v11211_v56 = vld [vmem:[%s10700_s10 + $0xb2] sm:$0xff] }
  0x7e   : > { %9573 = vmatprep.subr.mxu0 %v7866_v36  ;;  %9636 = vmatpush3.msra.mxu1 %v7939_v48  ;;  %v8016_v48 = vld [vmem:[%s14227_s1 + $0x1b8] sm:$0xff] }
  0x7f   : > { %9574 = vmatpush3.msra.mxu0 %v7866_v36  ;;  %v11216_v36 = vld [vmem:[%s10700_s10 + $0xc2] sm:$0xff]  ;;  %9637 = vmatprep.subr.mxu1 %v7938_v54 }
  0x80   : > { %9468 = vmatmul.mubr.msk.f32.gmra.mxu0 %vm332_vm0, %v11191_v50  ;;  %9532 = vmatmul.mubr.msk.f32.gmra.mxu1 %vm332_vm0, %v10889_v60  ;;  %v7937_v60 = vld [vmem:[%s14227_s1 + $0x140] sm:$0xff] }
  0x81   : > { %9470 = vmatprep.mubr.msk.f32.mxu0 %vm332_vm0, %v11196_v46  ;;  %9534 = vmatprep.mubr.msk.f32.mxu1 %vm332_vm0, %v10895_v62  ;;  %v11231_v62 = vld [vmem:[%s10700_s10 + $0xca] sm:$0xff] }
  0x82   : > { %9575 = vmatprep.subr.mxu0 %v7865_v42  ;;  %9638 = vmatpush3.msra.mxu1 %v7938_v54  ;;  %v8088_v54 = vld [vmem:[%s14227_s1 + $0x1f8] sm:$0xff] }
  0x83   : > { %9576 = vmatpush3.msra.mxu0 %v7865_v42  ;;  %v11236_v42 = vld [vmem:[%s10700_s10 + $0xda] sm:$0xff]  ;;  %9639 = vmatprep.subr.mxu1 %v7937_v60 }
  0x84   : > { %9471 = vmatmul.mubr.msk.f32.gmra.mxu0 %vm332_vm0, %v11211_v56  ;;  %9535 = vmatmul.mubr.msk.f32.gmra.mxu1 %vm332_vm0, %v10917_v2  ;;  %v11248_v2 = vld [vmem:[%s10700_s10 + $0xe2] sm:$0xff] }
  0x85   : > { %9473 = vmatprep.mubr.msk.f32.mxu0 %vm332_vm0, %v11216_v36  ;;  %9537 = vmatprep.mubr.msk.f32.mxu1 %vm332_vm0, %v10923_v4  ;;  %v11253_v4 = vld [vmem:[%s10700_s10 + $0xf2] sm:$0xff] }
  0x86   : > { %9689 = vmatprep.subr.mxu0 %v8016_v48  ;;  %9640 = vmatpush3.msra.mxu1 %v7937_v60  ;;  %v11281_v60 = vld [vmem:[%s10700_s10 + $0x122] sm:$0xff] }
  0x87   : > { %9753 = vmatprep.subr.mxu1 %v8088_v54 }
  0x88   : > { %9474 = vmatmul.mubr.msk.f32.gmra.mxu0 %vm332_vm0, %v11231_v62  ;;  %9538 = vmatmul.mubr.msk.f32.gmra.mxu1 %vm332_vm0, %v10941_v7  ;;  %v11262_v7 = vld [vmem:[%s10700_s10 + $0xfa] sm:$0xff] }
  0x89   : > { %9476 = vmatprep.mubr.msk.f32.mxu0 %vm332_vm0, %v11236_v42  ;;  %9540 = vmatprep.mubr.msk.f32.mxu1 %vm332_vm0, %v10947_v9  ;;  %v11267_v9 = vld [vmem:[%s10700_s10 + $0x10a] sm:$0xff] }
  0x8c   : > { %9477 = vmatmul.mubr.msk.f32.gmra.mxu0 %vm332_vm0, %v11248_v2  ;;  %9541 = vmatmul.mubr.msk.f32.gmra.mxu1 %vm332_vm0, %v10964_v12  ;;  %v11276_v12 = vld [vmem:[%s10700_s10 + $0x112] sm:$0xff] }
  0x8d   : > { %9479 = vmatprep.mubr.msk.f32.mxu0 %vm332_vm0, %v11253_v4  ;;  %9543 = vmatprep.mubr.msk.f32.mxu1 %vm332_vm0, %v10970_v14  ;;  %v11290_v14 = vld [vmem:[%s10700_s10 + $0x12a] sm:$0xff] }
  0x90   : > { %9480 = vmatmul.mubr.msk.f32.gmra.mxu0 %vm332_vm0, %v11262_v7  ;;  %9544 = vmatmul.mubr.msk.f32.gmra.mxu1 %vm332_vm0, %v10987_v17  ;;  %v11295_v17 = vld [vmem:[%s10700_s10 + $0x13a] sm:$0xff] }
  0x91   : > { %9482 = vmatprep.mubr.msk.f32.mxu0 %vm332_vm0, %v11267_v9  ;;  %9546 = vmatprep.mubr.msk.f32.mxu1 %vm332_vm0, %v10993_v19  ;;  %v11304_v19 = vld [vmem:[%s10700_s10 + $0x142] sm:$0xff] }
  0x94   : > { %9483 = vmatmul.mubr.msk.f32.gmra.mxu0 %vm332_vm0, %v11276_v12  ;;  %9547 = vmatmul.mubr.msk.f32.gmra.mxu1 %vm332_vm0, %v11007_v23  ;;  %v11309_v23 = vld [vmem:[%s10700_s10 + $0x152] sm:$0xff] }
  0x95   : > { %9485 = vmatprep.mubr.msk.f32.mxu0 %vm332_vm0, %v11281_v60  ;;  %9549 = vmatprep.mubr.msk.f32.mxu1 %vm332_vm0, %v11013_v33  ;;  %v11318_v33 = vld [vmem:[%s10700_s10 + $0x15a] sm:$0xff] }
  0x98   : > { %9486 = vmatmul.mubr.msk.f32.gmra.mxu0 %vm332_vm0, %v11290_v14  ;;  %9550 = vmatmul.mubr.msk.f32.gmra.mxu1 %vm332_vm0, %v11027_v39  ;;  %v11323_v39 = vld [vmem:[%s10700_s10 + $0x16a] sm:$0xff] }
  0x99   : > { %9488 = vmatprep.mubr.msk.f32.mxu0 %vm332_vm0, %v11295_v17  ;;  %9552 = vmatprep.mubr.msk.f32.mxu1 %vm332_vm0, %v11033_v45  ;;  %v11335_v45 = vld [vmem:[%s10700_s10 + $0x172] sm:$0xff] }
  0x9c   : > { %9489 = vmatmul.mubr.msk.f32.gmra.mxu0 %vm332_vm0, %v11304_v19  ;;  %9553 = vmatmul.mubr.msk.f32.gmra.mxu1 %vm332_vm0, %v11047_v51  ;;  %v11340_v51 = vld [vmem:[%s10700_s10 + $0x188] sm:$0xff] }
  0x9d   : > { %9491 = vmatprep.mubr.msk.f32.mxu0 %vm332_vm0, %v11309_v23  ;;  %9555 = vmatprep.mubr.msk.f32.mxu1 %vm332_vm0, %v11053_v57  ;;  %v8015_v57 = vld [vmem:[%s14227_s1 + $0x1b0] sm:$0xff] }
  0xa0   : > { %9492 = vmatmul.mubr.msk.f32.gmra.mxu0 %vm332_vm0, %v11318_v33  ;;  %9556 = vmatmul.mubr.msk.f32.gmra.mxu1 %vm332_vm0, %v11067_v63 }
  0xa1   : > { %9494 = vmatprep.mubr.msk.f32.mxu0 %vm332_vm0, %v11323_v39  ;;  %9558 = vmatprep.mubr.msk.f32.mxu1 %vm332_vm0, %v11326_v27 }
  0xa4   : > { %9495 = vmatmul.mubr.msk.f32.gmra.mxu0 %vm332_vm0, %v11335_v45  ;;  %9559 = vmatmul.mubr.msk.f32.gmra.mxu1 %vm332_vm0, %v11340_v51 }
  0xa5   : > { %9577 = vmatprep.mubr.msk.f32.mxu0 %vm332_vm0, %v10717_v21  ;;  %9641 = vmatprep.mubr.msk.f32.mxu1 %vm332_vm0, %v11079_v52  ;;  %v8014_v21 = vld [vmem:[%s14227_s1 + $0x1a8] sm:$0xff] }
  0xa8   : > { %9578 = vmatmul.mubr.msk.f32.vlgmr.msra.gmra.mxu0 %vm332_vm0, %v10731_v24  ;;  %9642 = vmatmul.mubr.msk.f32.vlgmr.msra.gmra.mxu1 %vm332_vm0, %v11091_v5  ;;  %v8087_v24 = vld [vmem:[%s14227_s1 + $0x1f0] sm:$0xff] }
  0xa9   : > { %9690 = vmatpush3.msra.mxu0 %v8016_v48  ;;  %9580 = vmatprep.mubr.msk.f32.mxu0 %vm332_vm0, %v10739_v26  ;;  %v8013_v26 = vld [vmem:[%s14227_s1 + $0x1a0] sm:$0xff]  ;;  %v7980_v5 = vld [vmem:[%s10700_s10 + $0x50] sm:$0xff] }
  0xaa   : > { %9644 = vmatprep.mubr.msk.f32.mxu1 %vm332_vm0, %v11096_v22  ;;  %9691 = vmatprep.subr.mxu0 %v8015_v57  ;;  %v8052_v22 = vld [vmem:[%s10700_s10 + $0x51] sm:$0xff] }
  0xab   : > { %9692 = vmatpush3.msra.mxu0 %v8015_v57  ;;  %9754 = vmatpush3.msra.mxu1 %v8088_v54 }
  0xac   : > { %9581 = vmatmul.mubr.msk.f32.gmra.mxu0 %vm332_vm0, %v10756_v29  ;;  %9645 = vmatmul.mubr.msk.f32.gmra.mxu1 %vm332_vm0, %v11111_v0  ;;  %v8086_v29 = vld [vmem:[%s14227_s1 + $0x1e8] sm:$0xff] }
  0xad   : > { %9583 = vmatprep.mubr.msk.f32.mxu0 %vm332_vm0, %v10762_v31  ;;  %9647 = vmatprep.mubr.msk.f32.mxu1 %vm332_vm0, %v11116_v15  ;;  %v8012_v31 = vld [vmem:[%s14227_s1 + $0x198] sm:$0xff] }
  0xae   : > { %9693 = vmatprep.subr.mxu0 %v8014_v21  ;;  %9755 = vmatprep.subr.mxu1 %v8087_v24 }
  0xaf   : > { %9694 = vmatpush3.msra.mxu0 %v8014_v21  ;;  %9756 = vmatpush3.msra.mxu1 %v8087_v24  ;;  %v7986_v24 = vld [vmem:[%s10700_s10 + $0x98] sm:$0xff] }
  0xb0   : > { %9584 = vmatmul.mubr.msk.f32.gmra.mxu0 %vm332_vm0, %v10782_v35  ;;  %9648 = vmatmul.mubr.msk.f32.gmra.mxu1 %vm332_vm0, %v11131_v32  ;;  %v8085_v35 = vld [vmem:[%s14227_s1 + $0x1e0] sm:$0xff] }
  0xb1   : > { %9586 = vmatprep.mubr.msk.f32.mxu0 %vm332_vm0, %v10788_v37  ;;  %9650 = vmatprep.mubr.msk.f32.mxu1 %vm332_vm0, %v11136_v10  ;;  %v8011_v37 = vld [vmem:[%s14227_s1 + $0x190] sm:$0xff]  ;;  %v7981_v32 = vld [vmem:[%s10700_s10 + $0x60] sm:$0xff] }
  0xb2   : > { %9695 = vmatprep.subr.mxu0 %v8013_v26  ;;  %9757 = vmatprep.subr.mxu1 %v8086_v29  ;;  %v8053_v10 = vld [vmem:[%s10700_s10 + $0x61] sm:$0xff] }
  0xb3   : > { %9696 = vmatpush3.msra.mxu0 %v8013_v26  ;;  %9758 = vmatpush3.msra.mxu1 %v8086_v29  ;;  %v8058_v26 = vld [vmem:[%s10700_s10 + $0x99] sm:$0xff] }
  0xb4   : > { %9587 = vmatmul.mubr.msk.f32.gmra.mxu0 %vm332_vm0, %v10808_v41  ;;  %9651 = vmatmul.mubr.msk.f32.gmra.mxu1 %vm332_vm0, %v11151_v38  ;;  %v8084_v41 = vld [vmem:[%s14227_s1 + $0x1d8] sm:$0xff] }
  0xb5   : > { %9589 = vmatprep.mubr.msk.f32.mxu0 %vm332_vm0, %v10814_v43  ;;  %9653 = vmatprep.mubr.msk.f32.mxu1 %vm332_vm0, %v11156_v30  ;;  %v8010_v43 = vld [vmem:[%s14227_s1 + $0x188] sm:$0xff] }
  0xb6   : > { %9697 = vmatprep.subr.mxu0 %v8012_v31  ;;  %9759 = vmatprep.subr.mxu1 %v8085_v35  ;;  %v8158_v30 = vld [vmem:[%s14227_s1 + $0x228] sm:$0xff] }
  0xb7   : > { %9698 = vmatpush3.msra.mxu0 %v8012_v31  ;;  %9760 = vmatpush3.msra.mxu1 %v8085_v35  ;;  %v7987_v35 = vld [vmem:[%s10700_s10 + $0xa8] sm:$0xff] }
  0xb8   : > { %9590 = vmatmul.mubr.msk.f32.gmra.mxu0 %vm332_vm0, %v10834_v47  ;;  %9654 = vmatmul.mubr.msk.f32.gmra.mxu1 %vm332_vm0, %v11171_v44  ;;  %v8083_v47 = vld [vmem:[%s14227_s1 + $0x1d0] sm:$0xff] }
  0xb9   : > { %9592 = vmatprep.mubr.msk.f32.mxu0 %vm332_vm0, %v10840_v49  ;;  %9656 = vmatprep.mubr.msk.f32.mxu1 %vm332_vm0, %v11176_v25  ;;  %v8009_v49 = vld [vmem:[%s14227_s1 + $0x180] sm:$0xff] }
  0xba   : > { %9699 = vmatprep.subr.mxu0 %v8011_v37  ;;  %9761 = vmatprep.subr.mxu1 %v8084_v41 }
  0xbb   : > { %9700 = vmatpush3.msra.mxu0 %v8011_v37  ;;  %9762 = vmatpush3.msra.mxu1 %v8084_v41  ;;  %v8059_v37 = vld [vmem:[%s10700_s10 + $0xa9] sm:$0xff] }
  0xbc   : > { %9593 = vmatmul.mubr.msk.f32.gmra.mxu0 %vm332_vm0, %v10860_v53  ;;  %9657 = vmatmul.mubr.msk.f32.gmra.mxu1 %vm332_vm0, %v11191_v50  ;;  %v8082_v53 = vld [vmem:[%s14227_s1 + $0x1c8] sm:$0xff] }
  0xbd   : > { %9595 = vmatprep.mubr.msk.f32.mxu0 %vm332_vm0, %v10866_v55  ;;  %9659 = vmatprep.mubr.msk.f32.mxu1 %vm332_vm0, %v11196_v46  ;;  %v8081_v55 = vld [vmem:[%s14227_s1 + $0x1c0] sm:$0xff]  ;;  %v7982_v46 = vld [vmem:[%s10700_s10 + $0x68] sm:$0xff] }
  0xbe   : > { %9701 = vmatprep.subr.mxu0 %v8010_v43  ;;  %9763 = vmatprep.subr.mxu1 %v8083_v47 }
  0xbf   : > { %9702 = vmatpush3.msra.mxu0 %v8010_v43  ;;  %9764 = vmatpush3.msra.mxu1 %v8083_v47  ;;  %v8155_v43 = vld [vmem:[%s14227_s1 + $0x210] sm:$0xff] }
  0xc0   : > { %9596 = vmatmul.mubr.msk.f32.gmra.mxu0 %vm332_vm0, %v10886_v59  ;;  %9660 = vmatmul.mubr.msk.f32.gmra.mxu1 %vm332_vm0, %v11211_v56  ;;  %v8160_v59 = vld [vmem:[%s14227_s1 + $0x238] sm:$0xff]  ;;  %v8054_v56 = vld [vmem:[%s10700_s10 + $0x69] sm:$0xff] }
  0xc1   : > { %9598 = vmatprep.mubr.msk.f32.mxu0 %vm332_vm0, %v10892_v61  ;;  %9662 = vmatprep.mubr.msk.f32.mxu1 %vm332_vm0, %v11216_v36  ;;  %v14247_v61 = vld [vmem:[#allocation9_spill] sm:$0xff] }
  0xc2   : > { %9703 = vmatprep.subr.mxu0 %v8009_v49  ;;  %9765 = vmatprep.subr.mxu1 %v8082_v53 }
  0xc3   : > { %9704 = vmatpush3.msra.mxu0 %v8009_v49  ;;  %9766 = vmatpush3.msra.mxu1 %v8082_v53 }
  0xc4   : > { %9599 = vmatmul.mubr.msk.f32.gmra.mxu0 %vm332_vm0, %v10914_v1  ;;  %9663 = vmatmul.mubr.msk.f32.gmra.mxu1 %vm332_vm0, %v11231_v62  ;;  %v14248_v1 = vld [vmem:[#allocation10_spill] sm:$0xff]  ;;  %v7983_v62 = vld [vmem:[%s10700_s10 + $0x78] sm:$0xff] }
  0xc5   : > { %9601 = vmatprep.mubr.msk.f32.mxu0 %vm332_vm0, %v10920_v3  ;;  %9665 = vmatprep.mubr.msk.f32.mxu1 %vm332_vm0, %v11236_v42  ;;  %v11508_v3 = vld [vmem:[%s10700_s10 + $0x181] sm:$0xff]  ;;  %v8055_v42 = vld [vmem:[%s10700_s10 + $0x79] sm:$0xff] }
  0xc6   : > { %9767 = vmatprep.subr.mxu1 %v8081_v55  ;;  %9817 = vmatprep.subr.mxu0 %v8160_v59 }
  0xc7   : > { %9768 = vmatpush3.msra.mxu1 %v8081_v55  ;;  %v7988_v55 = vld [vmem:[%s10700_s10 + $0xb0] sm:$0xff] }
  0xc8   : > { %9602 = vmatmul.mubr.msk.f32.gmra.mxu0 %vm332_vm0, %v10938_v6  ;;  %9666 = vmatmul.mubr.msk.f32.gmra.mxu1 %vm332_vm0, %v11248_v2  ;;  %v11511_v6 = vld [vmem:[%s10700_s10 + $0x182] sm:$0xff] }
  0xc9   : > { %9604 = vmatprep.mubr.msk.f32.mxu0 %vm332_vm0, %v10944_v8  ;;  %9668 = vmatprep.mubr.msk.f32.mxu1 %vm332_vm0, %v11253_v4  ;;  %v11520_v8 = vld [vmem:[%s10700_s10 + $0x189] sm:$0xff]  ;;  %v8157_v2 = vld [vmem:[%s14227_s1 + $0x220] sm:$0xff] }
  0xcc   : > { %9605 = vmatmul.mubr.msk.f32.gmra.mxu0 %vm332_vm0, %v10961_v11  ;;  %9669 = vmatmul.mubr.msk.f32.gmra.mxu1 %vm332_vm0, %v11262_v7  ;;  %v11525_v11 = vld [vmem:[%s10700_s10 + $0x18a] sm:$0xff] }
  0xcd   : > { %9607 = vmatprep.mubr.msk.f32.mxu0 %vm332_vm0, %v10967_v13  ;;  %9671 = vmatprep.mubr.msk.f32.mxu1 %vm332_vm0, %v11267_v9  ;;  %v8049_v13 = vld [vmem:[%s10700_s10 + $0x31] sm:$0xff] }
  0xd0   : > { %9608 = vmatmul.mubr.msk.f32.gmra.mxu0 %vm332_vm0, %v10984_v16  ;;  %9672 = vmatmul.mubr.msk.f32.gmra.mxu1 %vm332_vm0, %v11276_v12  ;;  %v14249_v16 = vld [vmem:[#allocation7_spill] sm:$0xff]  ;;  %v7984_v12 = vld [vmem:[%s10700_s10 + $0x80] sm:$0xff] }
  0xd1   : > { %9610 = vmatprep.mubr.msk.f32.mxu0 %vm332_vm0, %v10990_v18  ;;  %9674 = vmatprep.mubr.msk.f32.mxu1 %vm332_vm0, %v11281_v60  ;;  %v8050_v18 = vld [vmem:[%s10700_s10 + $0x39] sm:$0xff]  ;;  %v8056_v60 = vld [vmem:[%s10700_s10 + $0x81] sm:$0xff] }
  0xd4   : > { %9611 = vmatmul.mubr.msk.f32.gmra.mxu0 %vm332_vm0, %v11004_v20  ;;  %9675 = vmatmul.mubr.msk.f32.gmra.mxu1 %vm332_vm0, %v11290_v14  ;;  %v7979_v20 = vld [vmem:[%s10700_s10 + $0x48] sm:$0xff] }
  0xd5   : > { %9613 = vmatprep.mubr.msk.f32.mxu0 %vm332_vm0, %v11010_v28  ;;  %9677 = vmatprep.mubr.msk.f32.mxu1 %vm332_vm0, %v11295_v17  ;;  %v8051_v28 = vld [vmem:[%s10700_s10 + $0x49] sm:$0xff] }
  0xd8   : > { %9614 = vmatmul.mubr.msk.f32.gmra.mxu0 %vm332_vm0, %v11024_v34  ;;  %9678 = vmatmul.mubr.msk.f32.gmra.mxu1 %vm332_vm0, %v11304_v19  ;;  %v8159_v34 = vld [vmem:[%s14227_s1 + $0x230] sm:$0xff] }
  0xd9   : > { %9616 = vmatprep.mubr.msk.f32.mxu0 %vm332_vm0, %v11030_v40  ;;  %9680 = vmatprep.mubr.msk.f32.mxu1 %vm332_vm0, %v11309_v23  ;;  %v7985_v19 = vld [vmem:[%s10700_s10 + $0x90] sm:$0xff] }
  0xda   : > { %v8057_v23 = vld [vmem:[%s10700_s10 + $0x91] sm:$0xff] }
  0xdc   : > { %9617 = vmatmul.mubr.msk.f32.gmra.mxu0 %vm332_vm0, %v14247_v61  ;;  %9681 = vmatmul.mubr.msk.f32.gmra.mxu1 %vm332_vm0, %v11318_v33 }
  0xdd   : > { %9619 = vmatprep.mubr.msk.f32.mxu0 %vm332_vm0, %v14248_v1  ;;  %9683 = vmatprep.mubr.msk.f32.mxu1 %vm332_vm0, %v11323_v39  ;;  %v8156_v39 = vld [vmem:[%s14227_s1 + $0x218] sm:$0xff] }
  0xe0   : > { %9620 = vmatmul.mubr.msk.f32.gmra.mxu0 %vm332_vm0, %v11064_v58  ;;  %9684 = vmatmul.mubr.msk.f32.gmra.mxu1 %vm332_vm0, %v11335_v45  ;;  %v14250_v58 = vld [vmem:[#allocation8_spill] sm:$0xff] }
  0xe1   : > { %9622 = vmatprep.mubr.msk.f32.mxu0 %vm332_vm0, %v11508_v3  ;;  %9686 = vmatprep.mubr.msk.f32.mxu1 %vm332_vm0, %v11511_v6 }
  0xe4   : > { %9623 = vmatmul.mubr.msk.f32.gmra.mxu0 %vm332_vm0, %v11520_v8  ;;  %9687 = vmatmul.mubr.msk.f32.gmra.mxu1 %vm332_vm0, %v11525_v11 }
  0xe5   : > { %9705 = vmatprep.mubr.msk.f32.mxu0 %vm332_vm0, %v14249_v16  ;;  %9769 = vmatprep.mubr.msk.f32.mxu1 %vm332_vm0, %v8049_v13  ;;  %v7989_v13 = vld [vmem:[%s10700_s10 + $0xc0] sm:$0xff] }
  0xe6   : > { %v8061_v16 = vld [vmem:[%s10700_s10 + $0xc1] sm:$0xff] }
  0xe7   : > { %v9323_v40 = vpop.f32.mrf.mxu0 }
  0xe8   : > { %v9387_v52 = vpop.f32.mrf.mxu1  ;;  %9706 = vmatmul.mubr.msk.f32.vlgmr.msra.gmra.mxu0 %vm332_vm0, %v14250_v58  ;;  %9770 = vmatmul.mubr.msk.f32.vlgmr.msra.gmra.mxu1 %vm332_vm0, %v8050_v18  ;;  %v8062_v58 = vld [vmem:[%s10700_s10 + $0xc9] sm:$0xff] }
  0xe9   : > { %v11544_v63 = vadd.f32 %v9387_v52, %v9323_v40  ;;  %9818 = vmatpush3.msra.mxu0 %v8160_v59  ;;  %9708 = vmatprep.mubr.msk.f32.mxu0 %vm332_vm0, %v7979_v20  ;;  %v495_v0 = vpop.f32.mrf.mxu0  ;;  %v8060_v59 = vld [vmem:[%s10700_s10 + $0xb1] sm:$0xff]  ;;  %v8154_v20 = vld [vmem:[%s14227_s1 + $0x208] sm:$0xff] }
  0xea   : > { %v816_v15 = vpop.f32.mrf.mxu1  ;;  %9772 = vmatprep.mubr.msk.f32.mxu1 %vm332_vm0, %v8051_v28  ;;  %9819 = vmatprep.subr.mxu0 %v8159_v34  ;;  %v7990_v52 = vld [vmem:[%s10700_s10 + $0xc8] sm:$0xff] }
  0xeb   : > { %v11552_v38 = vadd.f32 %v816_v15, %v495_v0  ;;  %9820 = vmatpush3.msra.mxu0 %v8159_v34  ;;  %v9326_v44 = vpop.f32.mrf.mxu0  ;;  %v7991_v0 = vld [vmem:[%s10700_s10 + $0xd8] sm:$0xff] }
  0xec   : > { %v9390_v25 = vpop.f32.mrf.mxu1  ;;  %9709 = vmatmul.mubr.msk.f32.gmra.mxu0 %vm332_vm0, %v7980_v5  ;;  %9773 = vmatmul.mubr.msk.f32.gmra.mxu1 %vm332_vm0, %v8052_v22  ;;  %v8063_v15 = vld [vmem:[%s10700_s10 + $0xd9] sm:$0xff] }
  0xed   : > { %v11559_v50 = vadd.f32 %v9390_v25, %v9326_v44  ;;  %9711 = vmatprep.mubr.msk.f32.mxu0 %vm332_vm0, %v7981_v32  ;;  %9775 = vmatprep.mubr.msk.f32.mxu1 %vm332_vm0, %v8053_v10  ;;  %v505_v36 = vpop.f32.mrf.mxu0  ;;  %v8153_v10 = vld [vmem:[%s14227_s1 + $0x200] sm:$0xff] }
  0xee   : > { %v826_v48 = vpop.f32.mrf.mxu1  ;;  %9821 = vmatprep.subr.mxu0 %v8158_v30 }
  0xef   : > { %v11567_v54 = vadd.f32 %v826_v48, %v505_v36  ;;  %9822 = vmatpush3.msra.mxu0 %v8158_v30  ;;  %v9329_v4 = vpop.f32.mrf.mxu0 }
  0xf0   : > { %v9393_v7 = vpop.f32.mrf.mxu1  ;;  %9712 = vmatmul.mubr.msk.f32.gmra.mxu0 %vm332_vm0, %v7982_v46  ;;  %9776 = vmatmul.mubr.msk.f32.gmra.mxu1 %vm332_vm0, %v8054_v56  ;;  %v7992_v46 = vld [vmem:[%s10700_s10 + $0xe0] sm:$0xff] }
  0xf1   : > { %v11574_v9 = vadd.f32 %v9393_v7, %v9329_v4  ;;  %9714 = vmatprep.mubr.msk.f32.mxu0 %vm332_vm0, %v7983_v62  ;;  %9778 = vmatprep.mubr.msk.f32.mxu1 %vm332_vm0, %v8055_v42  ;;  %v515_v14 = vpop.f32.mrf.mxu0  ;;  %v8064_v56 = vld [vmem:[%s10700_s10 + $0xe1] sm:$0xff]  ;;  %v7993_v62 = vld [vmem:[%s10700_s10 + $0xf0] sm:$0xff] }
  0xf2   : > { %v836_v17 = vpop.f32.mrf.mxu1  ;;  %9823 = vmatprep.subr.mxu0 %v8157_v2  ;;  %v8065_v42 = vld [vmem:[%s10700_s10 + $0xf1] sm:$0xff] }
  0xf3   : > { %v11582_v33 = vadd.f32 %v836_v17, %v515_v14  ;;  %9824 = vmatpush3.msra.mxu0 %v8157_v2  ;;  %v9332_v45 = vpop.f32.mrf.mxu0  ;;  %v8066_v14 = vld [vmem:[%s10700_s10 + $0xf9] sm:$0xff] }
  0xf4   : > { %v9396_v57 = vpop.f32.mrf.mxu1  ;;  %9715 = vmatmul.mubr.msk.f32.gmra.mxu0 %vm332_vm0, %v7984_v12  ;;  %9779 = vmatmul.mubr.msk.f32.gmra.mxu1 %vm332_vm0, %v8056_v60  ;;  %v7994_v60 = vld [vmem:[%s10700_s10 + $0xf8] sm:$0xff] }
  0xf5   : > { %v11589_v21 = vadd.f32 %v9396_v57, %v9332_v45  ;;  %9717 = vmatprep.mubr.msk.f32.mxu0 %vm332_vm0, %v7985_v19  ;;  %9781 = vmatprep.mubr.msk.f32.mxu1 %vm332_vm0, %v8057_v23  ;;  %v525_v29 = vpop.f32.mrf.mxu0  ;;  %v7995_v23 = vld [vmem:[%s10700_s10 + $0x108] sm:$0xff] }
  0xf6   : > { %v846_v31 = vpop.f32.mrf.mxu1  ;;  %9825 = vmatprep.subr.mxu0 %v8156_v39 }
  0xf7   : > { %v11597_v41 = vadd.f32 %v846_v31, %v525_v29  ;;  %9826 = vmatpush3.msra.mxu0 %v8156_v39  ;;  %v9335_v47 = vpop.f32.mrf.mxu0  ;;  %v8067_v39 = vld [vmem:[%s10700_s10 + $0x109] sm:$0xff]  ;;  %v8068_v31 = vld [vmem:[%s10700_s10 + $0x111] sm:$0xff] }
  0xf8   : > { %v9399_v49 = vpop.f32.mrf.mxu1  ;;  %9718 = vmatmul.mubr.msk.f32.gmra.mxu0 %vm332_vm0, %v7986_v24  ;;  %9782 = vmatmul.mubr.msk.f32.gmra.mxu1 %vm332_vm0, %v8058_v26  ;;  %v7996_v29 = vld [vmem:[%s10700_s10 + $0x110] sm:$0xff] }
  0xf9   : > { %v11604_v53 = vadd.f32 %v9399_v49, %v9335_v47  ;;  %9720 = vmatprep.mubr.msk.f32.mxu0 %vm332_vm0, %v7987_v35  ;;  %9784 = vmatprep.mubr.msk.f32.mxu1 %vm332_vm0, %v8059_v37  ;;  %v535_v61 = vpop.f32.mrf.mxu0  ;;  %v8069_v47 = vld [vmem:[%s10700_s10 + $0x121] sm:$0xff] }
  0xfa   : > { %v856_v1 = vpop.f32.mrf.mxu1  ;;  %9827 = vmatprep.subr.mxu0 %v8155_v43 }
  0xfb   : > { %v11612_v18 = vadd.f32 %v856_v1, %v535_v61  ;;  %9828 = vmatpush3.msra.mxu0 %v8155_v43  ;;  %v9338_v28 = vpop.f32.mrf.mxu0  ;;  %v7997_v43 = vld [vmem:[%s10700_s10 + $0x120] sm:$0xff]  ;;  %v7998_v61 = vld [vmem:[%s10700_s10 + $0x128] sm:$0xff] }
  0xfc   : > { %v9402_v34 = vpop.f32.mrf.mxu1  ;;  %9721 = vmatmul.mubr.msk.f32.gmra.mxu0 %vm332_vm0, %v7988_v55  ;;  %9785 = vmatmul.mubr.msk.f32.gmra.mxu1 %vm332_vm0, %v8060_v59  ;;  %v8070_v1 = vld [vmem:[%s10700_s10 + $0x129] sm:$0xff] }
  0xfd   : > { %v11619_v40 = vadd.f32 %v9402_v34, %v9338_v28  ;;  %9723 = vmatprep.mubr.msk.f32.mxu0 %vm332_vm0, %v7989_v13  ;;  %9787 = vmatprep.mubr.msk.f32.mxu1 %vm332_vm0, %v8061_v16  ;;  %v545_v5 = vpop.f32.mrf.mxu0  ;;  %v8071_v28 = vld [vmem:[%s10700_s10 + $0x139] sm:$0xff] }
  0xfe   : > { %v866_v22 = vpop.f32.mrf.mxu1  ;;  %9829 = vmatprep.subr.mxu0 %v8154_v20 }
  0xff   : > { %v11627_v32 = vadd.f32 %v866_v22, %v545_v5  ;;  %9830 = vmatpush3.msra.mxu0 %v8154_v20  ;;  %v9341_v30 = vpop.f32.mrf.mxu0  ;;  %v7999_v20 = vld [vmem:[%s10700_s10 + $0x138] sm:$0xff]  ;;  %v8000_v5 = vld [vmem:[%s10700_s10 + $0x140] sm:$0xff] }
 0x100   : > { %v9405_v44 = vpop.f32.mrf.mxu1  ;;  %9724 = vmatmul.mubr.msk.f32.gmra.mxu0 %vm332_vm0, %v7990_v52  ;;  %9788 = vmatmul.mubr.msk.f32.gmra.mxu1 %vm332_vm0, %v8062_v58  ;;  %v8072_v22 = vld [vmem:[%s10700_s10 + $0x141] sm:$0xff] }
 0x101   : > { %v11634_v25 = vadd.f32 %v9405_v44, %v9341_v30  ;;  %9726 = vmatprep.mubr.msk.f32.mxu0 %vm332_vm0, %v7991_v0  ;;  %9790 = vmatprep.mubr.msk.f32.mxu1 %vm332_vm0, %v8063_v15  ;;  %v555_v36 = vpop.f32.mrf.mxu0  ;;  %v8073_v30 = vld [vmem:[%s10700_s10 + $0x151] sm:$0xff] }
 0x102   : > { %v876_v48 = vpop.f32.mrf.mxu1  ;;  %9831 = vmatprep.subr.mxu0 %v8153_v10 }
 0x103   : > { %v11642_v2 = vadd.f32 %v876_v48, %v555_v36  ;;  %9832 = vmatpush3.msra.mxu0 %v8153_v10  ;;  %v9344_v4 = vpop.f32.mrf.mxu0  ;;  %v8001_v10 = vld [vmem:[%s10700_s10 + $0x150] sm:$0xff]  ;;  %v8002_v36 = vld [vmem:[%s10700_s10 + $0x158] sm:$0xff] }
 0x104   : > { %v9408_v7 = vpop.f32.mrf.mxu1  ;;  %9727 = vmatmul.mubr.msk.f32.gmra.mxu0 %vm332_vm0, %v7992_v46  ;;  %9791 = vmatmul.mubr.msk.f32.gmra.mxu1 %vm332_vm0, %v8064_v56  ;;  %v8074_v48 = vld [vmem:[%s10700_s10 + $0x159] sm:$0xff] }
 0x105   : > { %v11646_v12 = vadd.f32 %v9408_v7, %v9344_v4  ;;  %9729 = vmatprep.mubr.msk.f32.mxu0 %vm332_vm0, %v7993_v62  ;;  %9793 = vmatprep.mubr.msk.f32.mxu1 %vm332_vm0, %v8065_v42  ;;  %v565_v17 = vpop.f32.mrf.mxu0  ;;  %v8003_v4 = vld [vmem:[%s10700_s10 + $0x168] sm:$0xff] }
 0x106   : > { %v886_v19 = vpop.f32.mrf.mxu1  ;;  %v8075_v7 = vld [vmem:[%s10700_s10 + $0x169] sm:$0xff] }
 0x107   : > { %v11654_v45 = vadd.f32 %v886_v19, %v565_v17  ;;  %v9347_v57 = vpop.f32.mrf.mxu0  ;;  %v8004_v19 = vld [vmem:[%s10700_s10 + $0x170] sm:$0xff] }
 0x108   : > { %v9411_v24 = vpop.f32.mrf.mxu1  ;;  %9730 = vmatmul.mubr.msk.f32.gmra.mxu0 %vm332_vm0, %v7994_v60  ;;  %9794 = vmatmul.mubr.msk.f32.gmra.mxu1 %vm332_vm0, %v8066_v14 }
 0x109   : > { %v11658_v26 = vadd.f32 %v9411_v24, %v9347_v57  ;;  %9732 = vmatprep.mubr.msk.f32.mxu0 %vm332_vm0, %v7995_v23  ;;  %9796 = vmatprep.mubr.msk.f32.mxu1 %vm332_vm0, %v8067_v39  ;;  %v11664_v35 = vpop.f32.mrf.mxu0  ;;  %v8076_v23 = vld [vmem:[%s10700_s10 + $0x171] sm:$0xff] }
 0x10a   : > { %v11666_v37 = vpop.f32.mrf.mxu1 }
 0x10b   : > { %v9350_v49 = vpop.f32.mrf.mxu0 }
 0x10c   : > { %v9414_v55 = vpop.f32.mrf.mxu1  ;;  %9733 = vmatmul.mubr.msk.f32.gmra.mxu0 %vm332_vm0, %v7996_v29  ;;  %9797 = vmatmul.mubr.msk.f32.gmra.mxu1 %vm332_vm0, %v8068_v31 }
 0x10d   : > { %v11672_v59 = vadd.f32 %v9414_v55, %v9350_v49  ;;  %9735 = vmatprep.mubr.msk.f32.mxu0 %vm332_vm0, %v7997_v43  ;;  %9799 = vmatprep.mubr.msk.f32.mxu1 %vm332_vm0, %v8069_v47  ;;  %v11678_v13 = vpop.f32.mrf.mxu0  ;;  %v8007_v49 = vld [vmem:[%s10700_s10 + $0x198] sm:$0xff] }
 0x10e   : > { %v11680_v16 = vpop.f32.mrf.mxu1  ;;  %v8079_v55 = vld [vmem:[%s10700_s10 + $0x199] sm:$0xff] }
 0x10f   : > { %v9353_v34 = vpop.f32.mrf.mxu0 }
 0x110   : > { %v9417_v52 = vpop.f32.mrf.mxu1  ;;  %9736 = vmatmul.mubr.msk.f32.gmra.mxu0 %vm332_vm0, %v7998_v61  ;;  %9800 = vmatmul.mubr.msk.f32.gmra.mxu1 %vm332_vm0, %v8070_v1 }
 0x111   : > { %v11686_v58 = vadd.f32 %v9417_v52, %v9353_v34  ;;  %9738 = vmatprep.mubr.msk.f32.mxu0 %vm332_vm0, %v7999_v20  ;;  %9802 = vmatprep.mubr.msk.f32.mxu1 %vm332_vm0, %v8071_v28  ;;  %v11692_v0 = vpop.f32.mrf.mxu0  ;;  %v8080_v20 = vld [vmem:[%s10700_s10 + $0x1a1] sm:$0xff]  ;;  %v8121_v52 = vld [vmem:[%s10700_s10 + $0x32] sm:$0xff] }
 0x112   : > { %v11694_v15 = vpop.f32.mrf.mxu1 }
 0x113   : > { %v9356_v44 = vpop.f32.mrf.mxu0 }
 0x114   : > { %v9420_v46 = vpop.f32.mrf.mxu1  ;;  %9739 = vmatmul.mubr.msk.f32.gmra.mxu0 %vm332_vm0, %v8000_v5  ;;  %9803 = vmatmul.mubr.msk.f32.gmra.mxu1 %vm332_vm0, %v8072_v22  ;;  %v8122_v22 = vld [vmem:[%s10700_s10 + $0x3a] sm:$0xff] }
 0x115   : > { %v11700_v56 = vadd.f32 %v9420_v46, %v9356_v44  ;;  %9741 = vmatprep.mubr.msk.f32.mxu0 %vm332_vm0, %v8001_v10  ;;  %9805 = vmatprep.mubr.msk.f32.mxu1 %vm332_vm0, %v8073_v30  ;;  %v11706_v62 = vpop.f32.mrf.mxu0  ;;  %v8123_v44 = vld [vmem:[%s10700_s10 + $0x4a] sm:$0xff] }
 0x116   : > { %v11708_v42 = vpop.f32.mrf.mxu1 }
 0x117   : > { %v9359_v60 = vpop.f32.mrf.mxu0 }
 0x118   : > { %v9423_v14 = vpop.f32.mrf.mxu1  ;;  %9742 = vmatmul.mubr.msk.f32.gmra.mxu0 %vm332_vm0, %v8002_v36  ;;  %9806 = vmatmul.mubr.msk.f32.gmra.mxu1 %vm332_vm0, %v8074_v48 }
 0x119   : > { %v11714_v17 = vadd.f32 %v9423_v14, %v9359_v60  ;;  %9744 = vmatprep.mubr.msk.f32.mxu0 %vm332_vm0, %v8003_v4  ;;  %9808 = vmatprep.mubr.msk.f32.mxu1 %vm332_vm0, %v8075_v7  ;;  %v11720_v39 = vpop.f32.mrf.mxu0  ;;  %v8124_v4 = vld [vmem:[%s10700_s10 + $0x52] sm:$0xff]  ;;  %v8125_v14 = vld [vmem:[%s10700_s10 + $0x62] sm:$0xff] }
 0x11a   : > { %v11722_v57 = vpop.f32.mrf.mxu1 }
 0x11b   : > { %v9362_v24 = vpop.f32.mrf.mxu0 }
 0x11c   : > { %v9426_v29 = vpop.f32.mrf.mxu1  ;;  %9745 = vmatmul.mubr.msk.f32.gmra.mxu0 %vm332_vm0, %v8004_v19  ;;  %9809 = vmatmul.mubr.msk.f32.gmra.mxu1 %vm332_vm0, %v8076_v23 }
 0x11d   : > { %v11726_v31 = vadd.f32 %v9426_v29, %v9362_v24  ;;  %9747 = vmatprep.mubr.msk.f32.mxu0 %vm332_vm0, %v11326_v27  ;;  %9811 = vmatprep.mubr.msk.f32.mxu1 %vm332_vm0, %v11508_v3  ;;  %v11732_v43 = vpop.f32.mrf.mxu0  ;;  %v8008_v3 = vld [vmem:[%s10700_s10 + $0x1a0] sm:$0xff] }
 0x11e   : > { %v11734_v47 = vpop.f32.mrf.mxu1 }
 0x11f   : > { %v9365_v61 = vpop.f32.mrf.mxu0 }
 0x120   : > { %v9429_v1 = vpop.f32.mrf.mxu1  ;;  %9748 = vmatmul.mubr.msk.f32.gmra.mxu0 %vm332_vm0, %v11340_v51  ;;  %9812 = vmatmul.mubr.msk.f32.gmra.mxu1 %vm332_vm0, %v11520_v8 }
 0x121   : > { %v11742_v27 = vadd.f32 %v9429_v1, %v9365_v61  ;;  %9750 = vmatprep.mubr.msk.f32.mxu0 %vm332_vm0, %v8007_v49  ;;  %9814 = vmatprep.mubr.msk.f32.mxu1 %vm332_vm0, %v8079_v55  ;;  %v11748_v28 = vpop.f32.mrf.mxu0  ;;  %v8126_v49 = vld [vmem:[%s10700_s10 + $0x6a] sm:$0xff]  ;;  %v8127_v1 = vld [vmem:[%s10700_s10 + $0x7a] sm:$0xff] }
 0x122   : > { %v11750_v34 = vpop.f32.mrf.mxu1 }
 0x123   : > { %v9368_v51 = vpop.f32.mrf.mxu0 }
 0x124   : > { %v9432_v5 = vpop.f32.mrf.mxu1  ;;  %9751 = vmatmul.mubr.msk.f32.gmra.mxu0 %vm332_vm0, %v8008_v3  ;;  %9815 = vmatmul.mubr.msk.f32.gmra.mxu1 %vm332_vm0, %v8080_v20 }
 0x125   : > { %v11755_v8 = vadd.f32 %v9432_v5, %v9368_v51  ;;  %9833 = vmatprep.mubr.msk.f32.mxu0 %vm332_vm0, %v8121_v52  ;;  %v11759_v10 = vpop.f32.mrf.mxu0  ;;  %v8128_v51 = vld [vmem:[%s10700_s10 + $0x82] sm:$0xff] }
 0x126   : > { %v11761_v30 = vpop.f32.mrf.mxu1 }
 0x127   : > { %v9451_v46 = vpop.f32.mrf.mxu0 }
 0x128   : > { %9834 = vmatmul.mubr.msk.f32.vlgmr.msra.gmra.mxu0 %vm332_vm0, %v8122_v22  ;;  %v9515_v36 = vpop.f32.mrf.mxu1  ;;  %v1338_v48 = vadd.f32 %v9451_v46, %v11544_v63 }
 0x129   : > { %9836 = vmatprep.mubr.msk.f32.mxu0 %vm332_vm0, %v8123_v44  ;;  %v1178_v7 = vpop.f32.mrf.mxu0  ;;  %v8129_v44 = vld [vmem:[%s10700_s10 + $0x92] sm:$0xff] }
 0x12a   : > { %v11768_v60 = vpop.f32.mrf.mxu1  ;;  %v11772_v19 = vadd.f32 %v1178_v7, %v11552_v38  ;;  %v11774_v23 = vadd.f32 %v9515_v36, %v1338_v48 }
 0x12c   : > { %v9454_v24 = vpop.f32.mrf.mxu0  ;;  %9837 = vmatmul.mubr.msk.f32.gmra.mxu0 %vm332_vm0, %v8124_v4  ;;  %v9518_v29 = vpop.f32.mrf.mxu1  ;;  %v8130_v4 = vld [vmem:[%s10700_s10 + $0x9a] sm:$0xff] }
 0x12d   : > { %v1340_v63 = vadd.f32 %v9454_v24, %v11559_v50  ;;  %9839 = vmatprep.mubr.msk.f32.mxu0 %vm332_vm0, %v8125_v14  ;;  %v8131_v24 = vld [vmem:[%s10700_s10 + $0xaa] sm:$0xff] }
 0x12e   : > { %v1188_v55 = vpop.f32.mrf.mxu0  ;;  %v11780_v61 = vpop.f32.mrf.mxu1 }
 0x12f   : > { %v11784_v38 = vadd.f32 %v1188_v55, %v11567_v54  ;;  %v11786_v3 = vadd.f32 %v9518_v29, %v1340_v63  ;;  %v8201_v63 = vld [vmem:[%s14228_s2 + $0x78] sm:$0xff] }
 0x130   : > { %v9457_v20 = vpop.f32.mrf.mxu0  ;;  %9840 = vmatmul.mubr.msk.f32.gmra.mxu0 %vm332_vm0, %v8126_v49  ;;  %v9521_v52 = vpop.f32.mrf.mxu1  ;;  %9881 = vmatprep.subr.mxu1 %v8201_v63 }
 0x131   : > { %v1342_v50 = vadd.f32 %v9457_v20, %v11574_v9  ;;  %9842 = vmatprep.mubr.msk.f32.mxu0 %vm332_vm0, %v8127_v1  ;;  %v8132_v1 = vld [vmem:[%s10700_s10 + $0xb2] sm:$0xff]  ;;  %9882 = vmatpush3.msra.mxu1 %v8201_v63 }
 0x132   : > { %v1198_v5 = vpop.f32.mrf.mxu0  ;;  %v11792_v22 = vpop.f32.mrf.mxu1 }
 0x133   : > { %v11796_v54 = vadd.f32 %v1198_v5, %v11582_v33  ;;  %v11798_v46 = vadd.f32 %v9521_v52, %v1342_v50  ;;  %v8133_v52 = vld [vmem:[%s10700_s10 + $0xc2] sm:$0xff] }
 0x134   : > { %v9460_v36 = vpop.f32.mrf.mxu0  ;;  %9843 = vmatmul.mubr.msk.f32.gmra.mxu0 %vm332_vm0, %v8128_v51  ;;  %v9524_v48 = vpop.f32.mrf.mxu1 }
 0x135   : > { %v1344_v9 = vadd.f32 %v9460_v36, %v11589_v21  ;;  %9845 = vmatprep.mubr.msk.f32.mxu0 %vm332_vm0, %v8129_v44  ;;  %v8134_v36 = vld [vmem:[%s10700_s10 + $0xca] sm:$0xff] }
 0x136   : > { %v1208_v7 = vpop.f32.mrf.mxu0  ;;  %v11804_v14 = vpop.f32.mrf.mxu1 }
 0x137   : > { %v11808_v33 = vadd.f32 %v1208_v7, %v11597_v41  ;;  %v11810_v29 = vadd.f32 %v9524_v48, %v1344_v9 }
 0x138   : > { %v9463_v49 = vpop.f32.mrf.mxu0  ;;  %9846 = vmatmul.mubr.msk.f32.gmra.mxu0 %vm332_vm0, %v8130_v4  ;;  %v9527_v21 = vpop.f32.mrf.mxu1  ;;  %v8135_v4 = vld [vmem:[%s10700_s10 + $0xda] sm:$0xff] }
 0x139   : > { %v1346_v55 = vadd.f32 %v9463_v49, %v11604_v53  ;;  %9848 = vmatprep.mubr.msk.f32.mxu0 %vm332_vm0, %v8131_v24  ;;  %v8200_v24 = vld [vmem:[%s14228_s2 + $0x70] sm:$0xff] }
 0x13a   : > { %v1218_v41 = vpop.f32.mrf.mxu0  ;;  %v11819_v20 = vpop.f32.mrf.mxu1  ;;  %9883 = vmatprep.subr.mxu1 %v8200_v24 }
 0x13b   : > { %v11823_v50 = vadd.f32 %v1218_v41, %v11612_v18  ;;  %v11825_v51 = vadd.f32 %v9527_v21, %v1346_v55  ;;  %v8136_v21 = vld [vmem:[%s10700_s10 + $0xe2] sm:$0xff]  ;;  %9884 = vmatpush3.msra.mxu1 %v8200_v24 }
 0x13c   : > { %v9466_v5 = vpop.f32.mrf.mxu0  ;;  %9849 = vmatmul.mubr.msk.f32.gmra.mxu0 %vm332_vm0, %v8132_v1  ;;  %v9530_v44 = vpop.f32.mrf.mxu1  ;;  %v8137_v1 = vld [vmem:[%s10700_s10 + $0xf2] sm:$0xff] }
 0x13d   : > { %v1348_v53 = vadd.f32 %v9466_v5, %v11619_v40  ;;  %9851 = vmatprep.mubr.msk.f32.mxu0 %vm332_vm0, %v8133_v52 }
 0x13e   : > { %v1228_v48 = vpop.f32.mrf.mxu0  ;;  %v11831_v9 = vpop.f32.mrf.mxu1 }
 0x13f   : > { %v11835_v18 = vadd.f32 %v1228_v48, %v11627_v32  ;;  %v11837_v7 = vadd.f32 %v9530_v44, %v1348_v53  ;;  %v8138_v53 = vld [vmem:[%s10700_s10 + $0xfa] sm:$0xff] }
 0x140   : > { %v9469_v63 = vpop.f32.mrf.mxu0  ;;  %9852 = vmatmul.mubr.msk.f32.gmra.mxu0 %vm332_vm0, %v8134_v36  ;;  %v9533_v40 = vpop.f32.mrf.mxu1 }
 0x141   : > { %v1350_v49 = vadd.f32 %v9469_v63, %v11634_v25  ;;  %9854 = vmatprep.mubr.msk.f32.mxu0 %vm332_vm0, %v8135_v4  ;;  %v8139_v4 = vld [vmem:[%s10700_s10 + $0x10a] sm:$0xff] }
 0x142   : > { %v1238_v32 = vpop.f32.mrf.mxu0  ;;  %v11846_v55 = vpop.f32.mrf.mxu1  ;;  %v8199_v63 = vld [vmem:[%s14228_s2 + $0x68] sm:$0xff] }
 0x143   : > { %v11850_v41 = vadd.f32 %v1238_v32, %v11642_v2  ;;  %v11852_v52 = vadd.f32 %v9533_v40, %v1350_v49  ;;  %9885 = vmatprep.subr.mxu1 %v8199_v63  ;;  %v897_v49 = vadd.f32 %v11666_v37, %v11664_v35  ;;  %v8142_v37 = vld [vmem:[%s10700_s10 + $0x12a] sm:$0xff] }
 0x144   : > { %v9472_v5 = vpop.f32.mrf.mxu0  ;;  %9855 = vmatmul.mubr.msk.f32.gmra.mxu0 %vm332_vm0, %v8136_v21  ;;  %v9536_v44 = vpop.f32.mrf.mxu1  ;;  %9886 = vmatpush3.msra.mxu1 %v8199_v63  ;;  %v8143_v63 = vld [vmem:[%s10700_s10 + $0x13a] sm:$0xff] }
 0x145   : > { %v1352_v25 = vadd.f32 %v9472_v5, %v11646_v12  ;;  %9857 = vmatprep.mubr.msk.f32.mxu0 %vm332_vm0, %v8137_v1  ;;  %v8141_v5 = vld [vmem:[%s10700_s10 + $0x122] sm:$0xff] }
 0x146   : > { %v1248_v36 = vpop.f32.mrf.mxu0  ;;  %v11858_v48 = vpop.f32.mrf.mxu1 }
 0x147   : > { %v11862_v2 = vadd.f32 %v1248_v36, %v11654_v45  ;;  %v11864_v24 = vadd.f32 %v9536_v44, %v1352_v25  ;;  %v8140_v45 = vld [vmem:[%s10700_s10 + $0x112] sm:$0xff] }
 0x148   : > { %v9475_v40 = vpop.f32.mrf.mxu0  ;;  %9858 = vmatmul.mubr.msk.f32.gmra.mxu0 %vm332_vm0, %v8138_v53  ;;  %v9539_v12 = vpop.f32.mrf.mxu1 }
 0x149   : > { %v1354_v21 = vadd.f32 %v9475_v40, %v11658_v26  ;;  %9860 = vmatprep.mubr.msk.f32.mxu0 %vm332_vm0, %v8139_v4 }
 0x14a   : > { %v1258_v32 = vpop.f32.mrf.mxu0  ;;  %v11875_v1 = vpop.f32.mrf.mxu1 }
 0x14b   : > { %14251 = vst [vmem:[#allocation9_spill] sm:$0xff] %v11875_v1  ;;  %v11878_v44 = vadd.f32 %v1258_v32, %v897_v49  ;;  %v11880_v25 = vadd.f32 %v9539_v12, %v1354_v21  ;;  %v8198_v12 = vld [vmem:[%s14228_s2 + $0x60] sm:$0xff] }
 0x14c   : > { %v9478_v53 = vpop.f32.mrf.mxu0  ;;  %9861 = vmatmul.mubr.msk.f32.gmra.mxu0 %vm332_vm0, %v8140_v45  ;;  %v9542_v35 = vpop.f32.mrf.mxu1  ;;  %9887 = vmatprep.subr.mxu1 %v8198_v12  ;;  %v8144_v45 = vld [vmem:[%s10700_s10 + $0x142] sm:$0xff] }
 0x14d   : > { %v1356_v26 = vadd.f32 %v9478_v53, %v11672_v59  ;;  %9863 = vmatprep.mubr.msk.f32.mxu0 %vm332_vm0, %v8141_v5  ;;  %9888 = vmatpush3.msra.mxu1 %v8198_v12  ;;  %v8145_v53 = vld [vmem:[%s10700_s10 + $0x152] sm:$0xff] }
 0x14e   : > { %v11886_v36 = vpop.f32.mrf.mxu0  ;;  %v11888_v4 = vpop.f32.mrf.mxu1 }
 0x14f   : > { %14252 = vst [vmem:[#allocation10_spill] sm:$0xff] %v11888_v4  ;;  %v11891_v40 = vadd.f32 %v9542_v35, %v1356_v26 }
 0x150   : > { %v9481_v49 = vpop.f32.mrf.mxu0  ;;  %9864 = vmatmul.mubr.msk.f32.gmra.mxu0 %vm332_vm0, %v8142_v37  ;;  %v9545_v59 = vpop.f32.mrf.mxu1 }
 0x151   : > { %v1358_v21 = vadd.f32 %v9481_v49, %v11686_v58  ;;  %9866 = vmatprep.mubr.msk.f32.mxu0 %vm332_vm0, %v8143_v63  ;;  %v8146_v58 = vld [vmem:[%s10700_s10 + $0x15a] sm:$0xff]  ;;  %v8147_v49 = vld [vmem:[%s10700_s10 + $0x16a] sm:$0xff] }
 0x152   : > { %v11900_v32 = vpop.f32.mrf.mxu0  ;;  %v11902_v5 = vpop.f32.mrf.mxu1 }
 0x153   : > { %14253 = vst [vmem:[#allocation7_spill] sm:$0xff] %v11902_v5  ;;  %v11905_v35 = vadd.f32 %v9545_v59, %v1358_v21  ;;  %v8197_v59 = vld [vmem:[%s14228_s2 + $0x58] sm:$0xff] }
 0x154   : > { %v9484_v26 = vpop.f32.mrf.mxu0  ;;  %9867 = vmatmul.mubr.msk.f32.gmra.mxu0 %vm332_vm0, %v8144_v45  ;;  %v9548_v37 = vpop.f32.mrf.mxu1  ;;  %9889 = vmatprep.subr.mxu1 %v8197_v59 }
 0x155   : > { %v1360_v4 = vadd.f32 %v9484_v26, %v11700_v56  ;;  %9869 = vmatprep.mubr.msk.f32.mxu0 %vm332_vm0, %v8145_v53  ;;  %v8148_v53 = vld [vmem:[%s10700_s10 + $0x172] sm:$0xff]  ;;  %9890 = vmatpush3.msra.mxu1 %v8197_v59  ;;  %v8151_v59 = vld [vmem:[%s10700_s10 + $0x19a] sm:$0xff] }
 0x156   : > { %v11911_v63 = vpop.f32.mrf.mxu0  ;;  %v11913_v12 = vpop.f32.mrf.mxu1 }
 0x157   : > { %14254 = vst [vmem:[#allocation8_spill] sm:$0xff] %v11913_v12  ;;  %v11916_v1 = vadd.f32 %v9548_v37, %v1360_v4 }
 0x158   : > { %v9487_v21 = vpop.f32.mrf.mxu0  ;;  %9870 = vmatmul.mubr.msk.f32.gmra.mxu0 %vm332_vm0, %v8146_v58  ;;  %v9551_v45 = vpop.f32.mrf.mxu1 }
 0x159   : > { %v1362_v56 = vadd.f32 %v9487_v21, %v11714_v17  ;;  %9872 = vmatprep.mubr.msk.f32.mxu0 %vm332_vm0, %v8147_v49 }
 0x15a   : > { %v11925_v26 = vpop.f32.mrf.mxu0  ;;  %v11927_v4 = vpop.f32.mrf.mxu1 }
 0x15b   : > { %14255 = vst [vmem:[#allocation11_spill] sm:$0xff] %v11927_v4  ;;  %v11929_v37 = vadd.f32 %v9551_v45, %v1362_v56  ;;  %v8196_v45 = vld [vmem:[%s14228_s2 + $0x50] sm:$0xff] }
 0x15c   : > { %v9490_v12 = vpop.f32.mrf.mxu0  ;;  %9873 = vmatmul.mubr.msk.f32.gmra.mxu0 %vm332_vm0, %v8148_v53  ;;  %v9554_v58 = vpop.f32.mrf.mxu1  ;;  %9891 = vmatprep.subr.mxu1 %v8196_v45 }
 0x15d   : > { %v1364_v5 = vadd.f32 %v9490_v12, %v11726_v31  ;;  %9875 = vmatprep.mubr.msk.f32.mxu0 %vm332_vm0, %v11511_v6  ;;  %v8152_v6 = vld [vmem:[%s10700_s10 + $0x1a2] sm:$0xff]  ;;  %9892 = vmatpush3.msra.mxu1 %v8196_v45 }
 0x15e   : > { %v11935_v17 = vpop.f32.mrf.mxu0  ;;  %v11937_v49 = vpop.f32.mrf.mxu1 }
 0x15f   : > { %14256 = vst [vmem:[#allocation12_spill] sm:$0xff] %v11937_v49  ;;  %v11940_v21 = vadd.f32 %v9554_v58, %v1364_v5 }
 0x160   : > { %v9493_v56 = vpop.f32.mrf.mxu0  ;;  %9876 = vmatmul.mubr.msk.f32.gmra.mxu0 %vm332_vm0, %v11525_v11  ;;  %v9557_v53 = vpop.f32.mrf.mxu1  ;;  %v3989_v11 = vld [vmem:[%s14228_s2 + $0x38] sm:$0xff] }
 0x161   : > { %v1366_v31 = vadd.f32 %v9493_v56, %v11742_v27  ;;  %9878 = vmatprep.mubr.msk.f32.mxu0 %vm332_vm0, %v8151_v59  ;;  %9945 = vmatprep.subr.mxu0 %v3989_v11  ;;  %v3988_v56 = vld [vmem:[%s14228_s2 + $0x30] sm:$0xff] }
 0x162   : > { %v11950_v12 = vpop.f32.mrf.mxu0  ;;  %v11952_v5 = vpop.f32.mrf.mxu1  ;;  %9946 = vmatpush3.msra.mxu0 %v3989_v11 }
 0x163   : > { %14257 = vst [vmem:[#allocation13_spill] sm:$0xff] %v11952_v5  ;;  %v11954_v58 = vadd.f32 %v9557_v53, %v1366_v31  ;;  %v8195_v31 = vld [vmem:[%s14228_s2 + $0x48] sm:$0xff]  ;;  %9947 = vmatprep.subr.mxu0 %v3988_v56 }
 0x164   : > { %v9496_v49 = vpop.f32.mrf.mxu0  ;;  %9879 = vmatmul.mubr.msk.f32.gmra.mxu0 %vm332_vm0, %v8152_v6  ;;  %v9560_v4 = vpop.f32.mrf.mxu1  ;;  %9893 = vmatprep.subr.mxu1 %v8195_v31 }
 0x165   : > { %v1368_v27 = vadd.f32 %v9496_v49, %v11755_v8  ;;  %9948 = vmatpush3.msra.mxu0 %v3988_v56  ;;  %v3987_v8 = vld [vmem:[%s14228_s2 + $0x28] sm:$0xff]  ;;  %9894 = vmatpush3.msra.mxu1 %v8195_v31  ;;  %v3985_v31 = vld [vmem:[%s14228_s2 + $0x18] sm:$0xff] }
 0x166   : > { %v11961_v59 = vpop.f32.mrf.mxu0  ;;  %v11963_v45 = vpop.f32.mrf.mxu1  ;;  %9949 = vmatprep.subr.mxu0 %v3987_v8 }
 0x167   : > { %14258 = vst [vmem:[#allocation14_spill] sm:$0xff] %v11963_v45  ;;  %v11968_v53 = vadd.f32 %v9560_v4, %v1368_v27  ;;  %9950 = vmatpush3.msra.mxu0 %v3987_v8  ;;  %v3986_v27 = vld [vmem:[%s14228_s2 + $0x20] sm:$0xff]  ;;  %v3984_v8 = vld [vmem:[%s14228_s2 + $0x10] sm:$0xff] }
 0x168   : > { %v9579_v6 = vpop.f32.mrf.mxu0  ;;  %v11973_v5 = vpop.f32.mrf.mxu1  ;;  %9951 = vmatprep.subr.mxu0 %v3986_v27 }
 0x169   : > { %14259 = vst [vmem:[#allocation15_spill] sm:$0xff] %v11973_v5  ;;  %v11979_v49 = vadd.f32 %v9579_v6, %v11774_v23  ;;  %9952 = vmatpush3.msra.mxu0 %v3986_v27  ;;  %v10563_v5 = vmov 0.0  }
 0x16a   : > { %v11981_v4 = vpop.f32.mrf.mxu0  ;;  %v11983_v11 = vpop.f32.mrf.mxu1  ;;  %3872 = vst.msk [vmem:[#allocation2] sm:$0xff] %vm332_vm0, %v10563_v5  ;;  %3873 = vst.msk [vmem:[#allocation2 + $0x8] sm:$0xff] %vm332_vm0, %v10563_v5  ;;  %9953 = vmatprep.subr.mxu0 %v3985_v31 }
 0x16b   : > { %14260 = vst [vmem:[#allocation16_spill] sm:$0xff] %v11979_v49  ;;  %14261 = vst [vmem:[#allocation17_spill] sm:$0xff] %v11983_v11  ;;  %9954 = vmatpush3.msra.mxu0 %v3985_v31  ;;  %v3983_v31 = vld [vmem:[%s14228_s2 + $0x8] sm:$0xff] }
 0x16c   : > { %v9582_v56 = vpop.f32.mrf.mxu0  ;;  %v11988_v45 = vpop.f32.mrf.mxu1  ;;  %3877 = vst.msk [vmem:[#allocation2 + $0x198] sm:$0xff] %vm332_vm0, %v10563_v5  ;;  %3878 = vst.msk [vmem:[#allocation2 + $0x1a0] sm:$0xff] %vm332_vm0, %v10563_v5  ;;  %9955 = vmatprep.subr.mxu0 %v3984_v8 }
 0x16d   : > { %14262 = vst [vmem:[#allocation18_spill] sm:$0xff] %v11988_v45  ;;  %v11995_v23 = vadd.f32 %v9582_v56, %v11786_v3  ;;  %3881 = vst.msk [vmem:[#allocation2] sm:$0x1] %vm3880_vm1, %v10563_v5  ;;  %9956 = vmatpush3.msra.mxu0 %v3984_v8 }
 0x16e   : > { %3882 = vst.msk [vmem:[#allocation2 + $0x18] sm:$0x1] %vm3880_vm1, %v10563_v5  ;;  %3883 = vst.msk [vmem:[#allocation2 + $0x30] sm:$0x1] %vm3880_vm1, %v10563_v5  ;;  %v12034_v3 = vpop.f32.mrf.mxu0  ;;  %v12036_v6 = vpop.f32.mrf.mxu1  ;;  %9957 = vmatprep.subr.mxu0 %v3983_v31 }
 0x16f   : > { %14263 = vst [vmem:[#allocation19_spill] sm:$0xff] %v11995_v23  ;;  %3884 = vst.msk [vmem:[#allocation2 + $0x48] sm:$0x1] %vm3880_vm1, %v10563_v5  ;;  %9958 = vmatpush3.msra.mxu0 %v3983_v31 }
 0x170   : > { %3885 = vst.msk [vmem:[#allocation2 + $0x60] sm:$0x1] %vm3880_vm1, %v10563_v5  ;;  %3886 = vst.msk [vmem:[#allocation2 + $0x78] sm:$0x1] %vm3880_vm1, %v10563_v5  ;;  %v9585_v27 = vpop.f32.mrf.mxu0  ;;  %v12043_v56 = vpop.f32.mrf.mxu1 }
 0x171   : > { %3887 = vst.msk [vmem:[#allocation2 + $0x90] sm:$0x1] %vm3880_vm1, %v10563_v5  ;;  %3888 = vst.msk [vmem:[#allocation2 + $0xa8] sm:$0x1] %vm3880_vm1, %v10563_v5  ;;  %v12046_v45 = vadd.f32 %v9585_v27, %v11798_v46  ;;  %v3982_v46 = vld [vmem:[%s14228_s2] sm:$0xff] }
 0x172   : > { %3889 = vst.msk [vmem:[#allocation2 + $0xc0] sm:$0x1] %vm3880_vm1, %v10563_v5  ;;  %3890 = vst.msk [vmem:[#allocation2 + $0xd8] sm:$0x1] %vm3880_vm1, %v10563_v5  ;;  %v12053_v23 = vpop.f32.mrf.mxu1  ;;  %9959 = vmatprep.subr.mxu0 %v3982_v46 }
 0x173   : > { %3891 = vst.msk [vmem:[#allocation2 + $0xf0] sm:$0x1] %vm3880_vm1, %v10563_v5  ;;  %3892 = vst.msk [vmem:[#allocation2 + $0x108] sm:$0x1] %vm3880_vm1, %v10563_v5  ;;  %9960 = vmatpush3.msra.mxu0 %v3982_v46 }
 0x174   : > { %3893 = vst.msk [vmem:[#allocation2 + $0x120] sm:$0x1] %vm3880_vm1, %v10563_v5  ;;  %3894 = vst.msk [vmem:[#allocation2 + $0x138] sm:$0x1] %vm3880_vm1, %v10563_v5  ;;  %v12061_v8 = vpop.f32.mrf.mxu1 }
 0x175   : > { %3895 = vst.msk [vmem:[#allocation2 + $0x150] sm:$0x1] %vm3880_vm1, %v10563_v5  ;;  %3896 = vst.msk [vmem:[#allocation2 + $0x168] sm:$0x1] %vm3880_vm1, %v10563_v5 }
 0x176   : > { %3897 = vst.msk [vmem:[#allocation2 + $0x180] sm:$0x1] %vm3880_vm1, %v10563_v5  ;;  %3898 = vst.msk [vmem:[#allocation2 + $0x198] sm:$0x1] %vm3880_vm1, %v10563_v5  ;;  %v12069_v49 = vpop.f32.mrf.mxu1 }
 0x177   : > { %3900 = vst.msk [vmem:[#allocation2 + $0x29] sm:$0x1] %vm3880_vm1, %v10563_v5  ;;  %3901 = vst.msk [vmem:[#allocation2 + $0x41] sm:$0x1] %vm3880_vm1, %v10563_v5 }
 0x178   : > { %3902 = vst.msk [vmem:[#allocation2 + $0x59] sm:$0x1] %vm3880_vm1, %v10563_v5  ;;  %3903 = vst.msk [vmem:[#allocation2 + $0x71] sm:$0x1] %vm3880_vm1, %v10563_v5 }
 0x179   : > { %3904 = vst.msk [vmem:[#allocation2 + $0x89] sm:$0x1] %vm3880_vm1, %v10563_v5  ;;  %3905 = vst.msk [vmem:[#allocation2 + $0xa1] sm:$0x1] %vm3880_vm1, %v10563_v5 }
 0x17a   : > { %3906 = vst.msk [vmem:[#allocation2 + $0xb9] sm:$0x1] %vm3880_vm1, %v10563_v5  ;;  %3907 = vst.msk [vmem:[#allocation2 + $0xd1] sm:$0x1] %vm3880_vm1, %v10563_v5 }
 0x17b   : > { %3908 = vst.msk [vmem:[#allocation2 + $0xe9] sm:$0x1] %vm3880_vm1, %v10563_v5  ;;  %3909 = vst.msk [vmem:[#allocation2 + $0x101] sm:$0x1] %vm3880_vm1, %v10563_v5 }
 0x17c   : > { %3910 = vst.msk [vmem:[#allocation2 + $0x119] sm:$0x1] %vm3880_vm1, %v10563_v5  ;;  %3911 = vst.msk [vmem:[#allocation2 + $0x131] sm:$0x1] %vm3880_vm1, %v10563_v5 }
 0x17d   : > { %3912 = vst.msk [vmem:[#allocation2 + $0x149] sm:$0x1] %vm3880_vm1, %v10563_v5  ;;  %3913 = vst.msk [vmem:[#allocation2 + $0x161] sm:$0x1] %vm3880_vm1, %v10563_v5 }
 0x17e   : > { %3914 = vst.msk [vmem:[#allocation2 + $0x179] sm:$0x1] %vm3880_vm1, %v10563_v5  ;;  %3915 = vst.msk [vmem:[#allocation2 + $0x191] sm:$0x1] %vm3880_vm1, %v10563_v5 }
 0x17f   : > { %14264 = vst [vmem:[#allocation20_spill] sm:$0xff] %v12034_v3  ;;  %14265 = vst [vmem:[#allocation21_spill] sm:$0xff] %v12036_v6  ;;  %v12051_v6 = vpop.f32.mrf.mxu0  ;;  %v12074_v3 = vpop.f32.mrf.mxu1 }
 0x180   : > { %3875 = vst.msk [vmem:[#allocation2 + $0x10] sm:$0x3] %vm3874_vm2, %v10563_v5  ;;  %3879 = vst.msk [vmem:[#allocation2 + $0x1a8] sm:$0x3] %vm3874_vm2, %v10563_v5 }
 0x181   : > { %3899 = vst.msk [vmem:[#allocation2 + $0x11] sm:$0x1] %vm3880_vm1, %v10563_v5  ;;  %3916 = vst.msk [vmem:[#allocation2 + $0x1a9] sm:$0x1] %vm3880_vm1, %v10563_v5  ;;  %v8194_v5 = vld [vmem:[%s14228_s2 + $0x40] sm:$0xff]  ;;  %v9588_v27 = vpop.f32.mrf.mxu0 }
 0x182   : > { %14266 = vst [vmem:[#allocation22_spill] sm:$0xff] %v12043_v56  ;;  %14267 = vst [vmem:[#allocation23_spill] sm:$0xff] %v12046_v45  ;;  %9895 = vmatprep.subr.mxu1 %v8194_v5  ;;  %v3990_v56 = vld [vmem:[#allocation2 + $0x1] sm:$0xff]  ;;  %v12064_v11 = vadd.f32 %v9588_v27, %v11810_v29 }
 0x183   : > { %14268 = vst [vmem:[#allocation24_spill] sm:$0xff] %v12051_v6  ;;  %14269 = vst [vmem:[#allocation25_spill] sm:$0xff] %v12053_v23  ;;  %v3950_v45 = vld [vmem:[#allocation2] sm:$0xff]  ;;  %9896 = vmatpush3.msra.mxu1 %v8194_v5  ;;  %9897 = vmatprep.mubr.msk.f32.mxu1 %vm332_vm0, %v3990_v56  ;;  %v3951_v6 = vld [vmem:[#allocation2 + $0x8] sm:$0xff]  ;;  %v12067_v31 = vpop.f32.mrf.mxu0  ;;  %v12081_v5 = vpop.f32.mrf.mxu1 }
 0x184   : > { %14270 = vst [vmem:[#allocation26_spill] sm:$0xff] %v12061_v8  ;;  %14271 = vst [vmem:[#allocation27_spill] sm:$0xff] %v12064_v11  ;;  %9961 = vmatprep.mubr.msk.f32.mxu0 %vm332_vm0, %v3950_v45 }
 0x185   : > { %9962 = vmatmul.mubr.msk.f32.vlgmr.msra.gmra.mxu0 %vm332_vm0, %v3951_v6  ;;  %v9591_v8 = vpop.f32.mrf.mxu0  ;;  %14272 = vst [vmem:[#allocation28_spill] sm:$0xff] %v12074_v3  ;;  %14274 = vst [vmem:[#allocation30_spill] sm:$0xff] %v12081_v5  ;;  %v12083_v11 = vpop.f32.mrf.mxu1  ;;  %v8273_v6 = vld [vmem:[%s14228_s2 + $0xb8] sm:$0xff] }
 0x186   : > { %v12077_v29 = vadd.f32 %v9591_v8, %v11825_v51  ;;  %14275 = vst [vmem:[#allocation31_spill] sm:$0xff] %v12083_v11  ;;  %10009 = vmatprep.subr.mxu1 %v8273_v6 }
 0x187   : > { %v3991_v23 = vld [vmem:[#allocation2 + $0x9] sm:$0xff]  ;;  %v12079_v56 = vpop.f32.mrf.mxu0 }
 0x188   : > { %9898 = vmatmul.mubr.msk.f32.vlgmr.msra.gmra.mxu1 %vm332_vm0, %v3991_v23  ;;  %14273 = vst [vmem:[#allocation29_spill] sm:$0xff] %v12077_v29  ;;  %v12090_v23 = vpop.f32.mrf.mxu1 }
 0x189   : > { %v9594_v27 = vpop.f32.mrf.mxu0  ;;  %14277 = vst [vmem:[#allocation33_spill] sm:$0xff] %v12090_v23  ;;  %10010 = vmatpush3.msra.mxu1 %v8273_v6 }
 0x18a   : > { %v12086_v46 = vadd.f32 %v9594_v27, %v11837_v7  ;;  %v12095_v8 = vpop.f32.mrf.mxu1 }
 0x18b   : > { %v12088_v45 = vpop.f32.mrf.mxu0  ;;  %14278 = vst [vmem:[#allocation34_spill] sm:$0xff] %v12095_v8 }
 0x18c   : > { %14276 = vst [vmem:[#allocation32_spill] sm:$0xff] %v12086_v46  ;;  %v12102_v7 = vpop.f32.mrf.mxu1 }
 0x18d   : > { %v9597_v51 = vpop.f32.mrf.mxu0  ;;  %14280 = vst [vmem:[#allocation36_spill] sm:$0xff] %v12102_v7 }
 0x18e   : > { %v12098_v5 = vadd.f32 %v9597_v51, %v11852_v52  ;;  %v12104_v46 = vpop.f32.mrf.mxu1  ;;  %v8272_v52 = vld [vmem:[%s14228_s2 + $0xb0] sm:$0xff] }
 0x18f   : > { %v12100_v11 = vpop.f32.mrf.mxu0  ;;  %14281 = vst [vmem:[#allocation37_spill] sm:$0xff] %v12104_v46  ;;  %10011 = vmatprep.subr.mxu1 %v8272_v52 }
 0x190   : > { %14279 = vst [vmem:[#allocation35_spill] sm:$0xff] %v12098_v5  ;;  %v12111_v29 = vpop.f32.mrf.mxu1  ;;  %10012 = vmatpush3.msra.mxu1 %v8272_v52 }
 0x191   : > { %v9600_v27 = vpop.f32.mrf.mxu0  ;;  %14283 = vst [vmem:[#allocation39_spill] sm:$0xff] %v12111_v29 }
 0x192   : > { %v12107_v23 = vadd.f32 %v9600_v27, %v11864_v24  ;;  %v12116_v6 = vpop.f32.mrf.mxu1 }
 0x193   : > { %v12109_v3 = vpop.f32.mrf.mxu0  ;;  %14284 = vst [vmem:[#allocation40_spill] sm:$0xff] %v12116_v6 }
 0x194   : > { %14282 = vst [vmem:[#allocation38_spill] sm:$0xff] %v12107_v23  ;;  %v12123_v24 = vpop.f32.mrf.mxu1 }
 0x195   : > { %v9603_v51 = vpop.f32.mrf.mxu0  ;;  %14286 = vst [vmem:[#allocation42_spill] sm:$0xff] %v12123_v24 }
 0x196   : > { %v12119_v7 = vadd.f32 %v9603_v51, %v11880_v25  ;;  %v12125_v23 = vpop.f32.mrf.mxu1  ;;  %v8271_v25 = vld [vmem:[%s14228_s2 + $0xa8] sm:$0xff] }
 0x197   : > { %v12121_v46 = vpop.f32.mrf.mxu0  ;;  %14287 = vst [vmem:[#allocation43_spill] sm:$0xff] %v12125_v23  ;;  %10013 = vmatprep.subr.mxu1 %v8271_v25 }
 0x198   : > { %14285 = vst [vmem:[#allocation41_spill] sm:$0xff] %v12119_v7  ;;  %v12132_v5 = vpop.f32.mrf.mxu1  ;;  %10014 = vmatpush3.msra.mxu1 %v8271_v25 }
 0x199   : > { %v9606_v27 = vpop.f32.mrf.mxu0  ;;  %14289 = vst [vmem:[#allocation45_spill] sm:$0xff] %v12132_v5 }
 0x19a   : > { %v12128_v29 = vadd.f32 %v9606_v27, %v11891_v40  ;;  %v12137_v52 = vpop.f32.mrf.mxu1 }
 0x19b   : > { %v12130_v8 = vpop.f32.mrf.mxu0  ;;  %14290 = vst [vmem:[#allocation46_spill] sm:$0xff] %v12137_v52 }
 0x19c   : > { %14288 = vst [vmem:[#allocation44_spill] sm:$0xff] %v12128_v29  ;;  %v12144_v40 = vpop.f32.mrf.mxu1 }
 0x19d   : > { %v9609_v51 = vpop.f32.mrf.mxu0  ;;  %14293 = vst [vmem:[#allocation49_spill] sm:$0xff] %v12144_v40 }
 0x19e   : > { %v12140_v24 = vadd.f32 %v9609_v51, %v11905_v35  ;;  %v12146_v29 = vpop.f32.mrf.mxu1  ;;  %v8270_v35 = vld [vmem:[%s14228_s2 + $0xa0] sm:$0xff] }
 0x19f   : > { %v12142_v23 = vpop.f32.mrf.mxu0  ;;  %14294 = vst [vmem:[#allocation50_spill] sm:$0xff] %v12146_v29  ;;  %10015 = vmatprep.subr.mxu1 %v8270_v35 }
 0x1a0   : > { %14291 = vst [vmem:[#allocation47_spill] sm:$0xff] %v12140_v24  ;;  %14292 = vst [vmem:[#allocation48_spill] sm:$0xff] %v12142_v23  ;;  %v12153_v7 = vpop.f32.mrf.mxu1  ;;  %10016 = vmatpush3.msra.mxu1 %v8270_v35 }
 0x1a1   : > { %v9612_v27 = vpop.f32.mrf.mxu0  ;;  %14297 = vst [vmem:[#allocation53_spill] sm:$0xff] %v12153_v7 }
 0x1a2   : > { %v12149_v5 = vadd.f32 %v9612_v27, %v11916_v1  ;;  %v12158_v25 = vpop.f32.mrf.mxu1 }
 0x1a3   : > { %v12151_v6 = vpop.f32.mrf.mxu0  ;;  %14298 = vst [vmem:[#allocation54_spill] sm:$0xff] %v12158_v25 }
 0x1a4   : > { %14295 = vst [vmem:[#allocation51_spill] sm:$0xff] %v12149_v5  ;;  %14296 = vst [vmem:[#allocation52_spill] sm:$0xff] %v12151_v6  ;;  %v12165_v1 = vpop.f32.mrf.mxu1 }
 0x1a5   : > { %v9615_v51 = vpop.f32.mrf.mxu0  ;;  %14301 = vst [vmem:[#allocation57_spill] sm:$0xff] %v12165_v1 }
 0x1a6   : > { %v12161_v40 = vadd.f32 %v9615_v51, %v11929_v37  ;;  %v12167_v5 = vpop.f32.mrf.mxu1  ;;  %v8269_v37 = vld [vmem:[%s14228_s2 + $0x98] sm:$0xff] }
 0x1a7   : > { %v12163_v29 = vpop.f32.mrf.mxu0  ;;  %14302 = vst [vmem:[#allocation58_spill] sm:$0xff] %v12167_v5  ;;  %10017 = vmatprep.subr.mxu1 %v8269_v37 }
 0x1a8   : > { %14299 = vst [vmem:[#allocation55_spill] sm:$0xff] %v12161_v40  ;;  %14300 = vst [vmem:[#allocation56_spill] sm:$0xff] %v12163_v29  ;;  %v12174_v52 = vpop.f32.mrf.mxu1  ;;  %10018 = vmatpush3.msra.mxu1 %v8269_v37  ;;  %v8313_v37 = vld [vmem:[%s14228_s2 + $0xf8] sm:$0xff]  ;;  %v8307_v29 = vld [vmem:[%s14228_s2 + $0xc8] sm:$0xff] }
 0x1a9   : > { %v9618_v27 = vpop.f32.mrf.mxu0  ;;  %14305 = vst [vmem:[#allocation61_spill] sm:$0xff] %v12174_v52  ;;  %10073 = vmatprep.subr.mxu0 %v8313_v37 }
 0x1aa   : > { %v12170_v7 = vadd.f32 %v9618_v27, %v11940_v21  ;;  %v12179_v35 = vpop.f32.mrf.mxu1  ;;  %10074 = vmatpush3.msra.mxu0 %v8313_v37 }
 0x1ab   : > { %v12172_v6 = vpop.f32.mrf.mxu0  ;;  %14306 = vst [vmem:[#allocation62_spill] sm:$0xff] %v12179_v35  ;;  %v8309_v35 = vld [vmem:[%s14228_s2 + $0xd8] sm:$0xff] }
 0x1ac   : > { %14303 = vst [vmem:[#allocation59_spill] sm:$0xff] %v12170_v7  ;;  %14304 = vst [vmem:[#allocation60_spill] sm:$0xff] %v12172_v6  ;;  %v12186_v21 = vpop.f32.mrf.mxu1 }
 0x1ad   : > { %v9621_v51 = vpop.f32.mrf.mxu0  ;;  %14309 = vst [vmem:[#allocation65_spill] sm:$0xff] %v12186_v21 }
 0x1ae   : > { %v12182_v1 = vadd.f32 %v9621_v51, %v11954_v58  ;;  %v12188_v7 = vpop.f32.mrf.mxu1  ;;  %v8268_v58 = vld [vmem:[%s14228_s2 + $0x90] sm:$0xff] }
 0x1af   : > { %v12184_v5 = vpop.f32.mrf.mxu0  ;;  %14310 = vst [vmem:[#allocation66_spill] sm:$0xff] %v12188_v7  ;;  %10019 = vmatprep.subr.mxu1 %v8268_v58  ;;  %v8311_v7 = vld [vmem:[%s14228_s2 + $0xe8] sm:$0xff] }
 0x1b0   : > { %14307 = vst [vmem:[#allocation63_spill] sm:$0xff] %v12182_v1  ;;  %14308 = vst [vmem:[#allocation64_spill] sm:$0xff] %v12184_v5  ;;  %v12195_v25 = vpop.f32.mrf.mxu1  ;;  %10020 = vmatpush3.msra.mxu1 %v8268_v58  ;;  %v8310_v58 = vld [vmem:[%s14228_s2 + $0xe0] sm:$0xff]  ;;  %v8308_v5 = vld [vmem:[%s14228_s2 + $0xd0] sm:$0xff] }
 0x1b1   : > { %v9624_v27 = vpop.f32.mrf.mxu0  ;;  %14313 = vst [vmem:[#allocation69_spill] sm:$0xff] %v12195_v25 }
 0x1b2   : > { %v12191_v52 = vadd.f32 %v9624_v27, %v11968_v53  ;;  %v12205_v21 = vpop.f32.mrf.mxu1  ;;  %v8312_v53 = vld [vmem:[%s14228_s2 + $0xf0] sm:$0xff] }
 0x1b3   : > { %v12193_v6 = vpop.f32.mrf.mxu0  ;;  %10075 = vmatprep.subr.mxu0 %v8312_v53 }
 0x1b4   : > { %14311 = vst [vmem:[#allocation67_spill] sm:$0xff] %v12191_v52  ;;  %14312 = vst [vmem:[#allocation68_spill] sm:$0xff] %v12193_v6  ;;  %v12212_v25 = vpop.f32.mrf.mxu1  ;;  %10076 = vmatpush3.msra.mxu0 %v8312_v53  ;;  %v8267_v53 = vld [vmem:[%s14228_s2 + $0x88] sm:$0xff] }
 0x1b5   : > { %v12203_v51 = vpop.f32.mrf.mxu0  ;;  %10077 = vmatprep.subr.mxu0 %v8311_v7  ;;  %10021 = vmatprep.subr.mxu1 %v8267_v53 }
 0x1b6   : > { %10078 = vmatpush3.msra.mxu0 %v8311_v7  ;;  %v12224_v6 = vpop.f32.mrf.mxu1  ;;  %v8266_v7 = vld [vmem:[%s14228_s2 + $0x80] sm:$0xff]  ;;  %10022 = vmatpush3.msra.mxu1 %v8267_v53 }
 0x1b7   : > { %v12210_v27 = vpop.f32.mrf.mxu0  ;;  %10079 = vmatprep.subr.mxu0 %v8310_v58  ;;  %14314 = vst [vmem:[#allocation70_spill] sm:$0xff] %v12224_v6  ;;  %10023 = vmatprep.subr.mxu1 %v8266_v7 }
 0x1b8   : > { %10080 = vmatpush3.msra.mxu0 %v8310_v58  ;;  %v12242_v58 = vpop.f32.mrf.mxu1  ;;  %10024 = vmatpush3.msra.mxu1 %v8266_v7 }
 0x1b9   : > { %v12217_v52 = vpop.f32.mrf.mxu0  ;;  %10081 = vmatprep.subr.mxu0 %v8309_v35  ;;  %14317 = vst [vmem:[#allocation73_spill] sm:$0xff] %v12242_v58 }
 0x1ba   : > { %10082 = vmatpush3.msra.mxu0 %v8309_v35  ;;  %v8306_v35 = vld [vmem:[%s14228_s2 + $0xc0] sm:$0xff] }
 0x1bb   : > { %v12222_v37 = vpop.f32.mrf.mxu0  ;;  %10083 = vmatprep.subr.mxu0 %v8308_v5 }
 0x1bc   : > { %10084 = vmatpush3.msra.mxu0 %v8308_v5  ;;  %v8353_v5 = vld [vmem:[%s14228_s2 + $0x138] sm:$0xff] }
 0x1bd   : > { %v12232_v1 = vpop.f32.mrf.mxu0  ;;  %10085 = vmatprep.subr.mxu0 %v8307_v29  ;;  %10137 = vmatprep.subr.mxu1 %v8353_v5 }
 0x1be   : > { %14315 = vst [vmem:[#allocation71_spill] sm:$0xff] %v12232_v1  ;;  %10086 = vmatpush3.msra.mxu0 %v8307_v29 }
 0x1bf   : > { %v12240_v40 = vpop.f32.mrf.mxu0  ;;  %10087 = vmatprep.subr.mxu0 %v8306_v35 }
 0x1c0   : > { %14316 = vst [vmem:[#allocation72_spill] sm:$0xff] %v12240_v40  ;;  %v12254_v40 = vpop.f32.mrf.mxu1  ;;  %10088 = vmatpush3.msra.mxu0 %v8306_v35 }
 0x1c1   : > { %v12247_v24 = vpop.f32.mrf.mxu0  ;;  %14320 = vst [vmem:[#allocation76_spill] sm:$0xff] %v12254_v40 }
 0x1c2   : > { %14318 = vst [vmem:[#allocation74_spill] sm:$0xff] %v12247_v24  ;;  %v12263_v29 = vpop.f32.mrf.mxu1 }
 0x1c3   : > { %v12252_v53 = vpop.f32.mrf.mxu0  ;;  %14323 = vst [vmem:[#allocation79_spill] sm:$0xff] %v12263_v29 }
 0x1c4   : > { %14319 = vst [vmem:[#allocation75_spill] sm:$0xff] %v12252_v53  ;;  %v12269_v53 = vpop.f32.mrf.mxu1 }
 0x1c5   : > { %v12256_v7 = vpop.f32.mrf.mxu0  ;;  %14326 = vst [vmem:[#allocation82_spill] sm:$0xff] %v12269_v53 }
 0x1c6   : > { %14321 = vst [vmem:[#allocation77_spill] sm:$0xff] %v12256_v7  ;;  %v12275_v7 = vpop.f32.mrf.mxu1 }
 0x1c7   : > { %v12261_v24 = vpop.f32.mrf.mxu0  ;;  %14329 = vst [vmem:[#allocation85_spill] sm:$0xff] %v12275_v7 }
 0x1c8   : > { %14322 = vst [vmem:[#allocation78_spill] sm:$0xff] %v12261_v24  ;;  %v12281_v5 = vpop.f32.mrf.mxu1 }
 0x1c9   : > { %v12265_v58 = vpop.f32.mrf.mxu0  ;;  %14332 = vst [vmem:[#allocation88_spill] sm:$0xff] %v12281_v5 }
 0x1ca   : > { %14324 = vst [vmem:[#allocation80_spill] sm:$0xff] %v12265_v58  ;;  %v12287_v58 = vpop.f32.mrf.mxu1 }
 0x1cb   : > { %v12267_v23 = vpop.f32.mrf.mxu0 }
 0x1cc   : > { %14325 = vst [vmem:[#allocation81_spill] sm:$0xff] %v12267_v23 }
 0x1cd   : > { %v12271_v6 = vpop.f32.mrf.mxu0 }
 0x1ce   : > { %14327 = vst [vmem:[#allocation83_spill] sm:$0xff] %v12271_v6  ;;  %v12293_v6 = vpop.f32.mrf.mxu1 }
 0x1cf   : > { %v12273_v35 = vpop.f32.mrf.mxu0 }
 0x1d0   : > { %14328 = vst [vmem:[#allocation84_spill] sm:$0xff] %v12273_v35 }
 0x1d1   : > { %v12277_v40 = vpop.f32.mrf.mxu0 }
 0x1d2   : > { %14330 = vst [vmem:[#allocation86_spill] sm:$0xff] %v12277_v40  ;;  %v12299_v40 = vpop.f32.mrf.mxu1 }
 0x1d3   : > { %v12279_v1 = vpop.f32.mrf.mxu0 }
 0x1d4   : > { %14331 = vst [vmem:[#allocation87_spill] sm:$0xff] %v12279_v1 }
 0x1d5   : > { %v12283_v24 = vpop.f32.mrf.mxu0 }
 0x1d6   : > { %14333 = vst [vmem:[#allocation89_spill] sm:$0xff] %v12283_v24  ;;  %v12305_v24 = vpop.f32.mrf.mxu1 }
 0x1d7   : > { %v12285_v29 = vpop.f32.mrf.mxu0 }
 0x1d8   : > { %14334 = vst [vmem:[#allocation90_spill] sm:$0xff] %v12285_v29 }
 0x1d9   : > { %v12289_v23 = vpop.f32.mrf.mxu0 }
 0x1da   : > { %14335 = vst [vmem:[#allocation91_spill] sm:$0xff] %v12289_v23  ;;  %v907_v23 = vadd.f32 %v11680_v16, %v11678_v13  ;;  %v967_v13 = vadd.f32 %v11761_v30, %v11759_v10  ;;  %v12325_v16 = vpop.f32.mrf.mxu1 }
 0x1db   : > { %v12291_v53 = vpop.f32.mrf.mxu0 }
 0x1dc   : > { %14336 = vst [vmem:[#allocation92_spill] sm:$0xff] %v12291_v53  ;;  %v917_v53 = vadd.f32 %v11694_v15, %v11692_v0  ;;  %v1732_v0 = vadd.f32 %v11768_v60, %v11772_v19  ;;  %v1734_v15 = vadd.f32 %v11780_v61, %v11784_v38  ;;  %v1367_v60 = vadd.f32 %v11961_v59, %v967_v13 }
 0x1dd   : > { %v12295_v35 = vpop.f32.mrf.mxu0  ;;  %v1742_v61 = vadd.f32 %v11831_v9, %v11835_v18  ;;  %v1744_v38 = vadd.f32 %v11846_v55, %v11850_v41  ;;  %v14346_v55 = vld [vmem:[#allocation8_spill] sm:$0xff] }
 0x1de   : > { %14337 = vst [vmem:[#allocation93_spill] sm:$0xff] %v12295_v35  ;;  %v927_v35 = vadd.f32 %v11708_v42, %v11706_v62  ;;  %v1355_v62 = vadd.f32 %v11886_v36, %v907_v23  ;;  %v1357_v42 = vadd.f32 %v11900_v32, %v917_v53  ;;  %v14344_v32 = vld [vmem:[#allocation7_spill] sm:$0xff]  ;;  %v14351_v23 = vld [vmem:[#allocation12_spill] sm:$0xff]  ;;  %v14352_v53 = vld [vmem:[#allocation13_spill] sm:$0xff] }
 0x1df   : > { %v12297_v7 = vpop.f32.mrf.mxu0 }
 0x1e0   : > { %14338 = vst [vmem:[#allocation94_spill] sm:$0xff] %v12297_v7 }
 0x1e1   : > { %v12301_v1 = vpop.f32.mrf.mxu0 }
 0x1e2   : > { %14339 = vst [vmem:[#allocation95_spill] sm:$0xff] %v12301_v1  ;;  %v937_v1 = vadd.f32 %v11722_v57, %v11720_v39  ;;  %v1736_v57 = vadd.f32 %v11792_v22, %v11796_v54  ;;  %v1746_v22 = vadd.f32 %v11858_v48, %v11862_v2  ;;  %v2126_v54 = vadd.f32 %v11981_v4, %v1732_v0  ;;  %v14347_v48 = vld [vmem:[#allocation11_spill] sm:$0xff]  ;;  %v14350_v4 = vld [vmem:[#allocation24_spill] sm:$0xff] }
 0x1e3   : > { %v12303_v5 = vpop.f32.mrf.mxu0 }
 0x1e4   : > { %14340 = vst [vmem:[#allocation96_spill] sm:$0xff] %v12303_v5  ;;  %v947_v5 = vadd.f32 %v11734_v47, %v11732_v43  ;;  %v1738_v43 = vadd.f32 %v11804_v14, %v11808_v33  ;;  %v1359_v47 = vadd.f32 %v11911_v63, %v927_v35  ;;  %v12357_v14 = vpop.f32.mrf.mxu1  ;;  %v14342_v33 = vld [vmem:[#allocation9_spill] sm:$0xff]  ;;  %v1752_v63 = vadd.f32 %v14344_v32, %v1357_v42  ;;  %v14353_v35 = vld [vmem:[#allocation14_spill] sm:$0xff] }
 0x1e5   : > { %v12307_v29 = vpop.f32.mrf.mxu0  ;;  %v2136_v32 = vadd.f32 %v12088_v45, %v1742_v61  ;;  %v14364_v45 = vld [vmem:[#allocation28_spill] sm:$0xff] }
 0x1e6   : > { %14341 = vst [vmem:[#allocation97_spill] sm:$0xff] %v12307_v29  ;;  %v957_v29 = vadd.f32 %v11750_v34, %v11748_v28  ;;  %v1361_v28 = vadd.f32 %v11925_v26, %v937_v1  ;;  %v1740_v34 = vadd.f32 %v11819_v20, %v11823_v50  ;;  %v1363_v10 = vadd.f32 %v11935_v17, %v947_v5  ;;  %v14343_v50 = vld [vmem:[#allocation10_spill] sm:$0xff]  ;;  %v14345_v26 = vld [vmem:[#allocation20_spill] sm:$0xff] }
 0x1e7   : > { %v12315_v7 = vpop.f32.mrf.mxu0  ;;  %v1748_v20 = vadd.f32 %v14342_v33, %v11878_v44  ;;  %v1750_v36 = vadd.f32 %v14343_v50, %v1355_v62  ;;  %v2128_v9 = vadd.f32 %v14345_v26, %v1734_v15  ;;  %v12367_v41 = vadd.f32 %v14346_v55, %v1359_v47  ;;  %v14348_v17 = vld [vmem:[#allocation16_spill] sm:$0xff]  ;;  %v14354_v15 = vld [vmem:[#allocation17_spill] sm:$0xff]  ;;  %v14359_v26 = vld [vmem:[#allocation22_spill] sm:$0xff] }
 0x1e8   : > { %v1365_v30 = vadd.f32 %v11950_v12, %v957_v29  ;;  %v12370_v2 = vadd.f32 %v14347_v48, %v1361_v28  ;;  %v14349_v12 = vld [vmem:[#allocation15_spill] sm:$0xff]  ;;  %v2130_v44 = vadd.f32 %v14350_v4, %v1736_v57  ;;  %v12376_v1 = vadd.f32 %v14351_v23, %v1363_v10  ;;  %v12390_v57 = vpop.f32.mrf.mxu1  ;;  %v14357_v50 = vld [vmem:[#allocation21_spill] sm:$0xff]  ;;  %v14365_v23 = vld [vmem:[#allocation30_spill] sm:$0xff] }
 0x1e9   : > { %v12335_v39 = vpop.f32.mrf.mxu0  ;;  %v2521_v59 = vadd.f32 %v14349_v12, %v14348_v17  ;;  %v12382_v5 = vadd.f32 %v14353_v35, %v1367_v60  ;;  %v2132_v13 = vadd.f32 %v12067_v31, %v1738_v43  ;;  %v2520_v62 = vadd.f32 %v14354_v15, %v2126_v54  ;;  %v14355_v10 = vld [vmem:[#allocation19_spill] sm:$0xff]  ;;  %v14362_v12 = vld [vmem:[#allocation26_spill] sm:$0xff]  ;;  %v14363_v4 = vld [vmem:[#allocation29_spill] sm:$0xff] }
 0x1ea   : > { %v12379_v29 = vadd.f32 %v14352_v53, %v1365_v30  ;;  %v2134_v42 = vadd.f32 %v12079_v56, %v1740_v34  ;;  %v12393_v28 = vstv %s12327_s13  ;;  %v14356_v30 = vld [vmem:[#allocation18_spill] sm:$0xff]  ;;  %v2522_v60 = vadd.f32 %v14357_v50, %v2128_v9  ;;  %v14358_v54 = vld [vmem:[#allocation23_spill] sm:$0xff]  ;;  %v14360_v34 = vld [vmem:[#allocation25_spill] sm:$0xff]  ;;  %v12424_v15 = vpop.f32.mrf.mxu1 }
 0x1eb   : > { %v12348_v19 = vpop.f32.mrf.mxu0  ;;  %v2916_v47 = vadd.f32 %v12203_v51, %v2521_v59  ;;  %v2523_v33 = vadd.f32 %v14356_v30, %v14355_v10  ;;  %v2138_v31 = vadd.f32 %v12100_v11, %v1744_v38  ;;  %v2525_v56 = vadd.f32 %v14359_v26, %v14358_v54  ;;  %v14361_v17 = vld [vmem:[#allocation27_spill] sm:$0xff]  ;;  %v14371_v10 = vld [vmem:[#allocation36_spill] sm:$0xff]  ;;  %v14376_v26 = vld [vmem:[#allocation41_spill] sm:$0xff] }
 0x1ec   : > { %v2524_v51 = vadd.f32 %v14360_v34, %v2130_v44  ;;  %v2140_v55 = vadd.f32 %v12109_v3, %v1746_v22  ;;  %v2915_v48 = vadd.f32 %v12210_v27, %v2520_v62  ;;  %v2527_v59 = vadd.f32 %v14362_v12, %v14361_v17  ;;  %v14366_v44 = vld [vmem:[#allocation32_spill] sm:$0xff]  ;;  %v14367_v35 = vld [vmem:[#allocation31_spill] sm:$0xff]  ;;  %v14378_v12 = vld [vmem:[#allocation42_spill] sm:$0xff] }
 0x1ed   : > { %v12364_v18 = vpop.f32.mrf.mxu0  ;;  %v2526_v9 = vadd.f32 %v12069_v49, %v2132_v13  ;;  %v2529_v61 = vadd.f32 %v14364_v45, %v14363_v4  ;;  %v2142_v11 = vadd.f32 %v12121_v46, %v1748_v20  ;;  %v12416_v53 = vadd.f32 %v14365_v23, %v2134_v42  ;;  %v14368_v49 = vld [vmem:[#allocation33_spill] sm:$0xff]  ;;  %v14369_v62 = vld [vmem:[#allocation35_spill] sm:$0xff]  ;;  %v14370_v46 = vld [vmem:[#allocation34_spill] sm:$0xff] }
 0x1ee   : > { %v12420_v3 = vadd.f32 %v14367_v35, %v14366_v44  ;;  %v3310_v27 = vadd.f32 %v12205_v21, %v2916_v47  ;;  %v2918_v22 = vadd.f32 %v12217_v52, %v2523_v33  ;;  %v12427_v13 = vadd.f32 %v14368_v49, %v2136_v32  ;;  %v12440_v21 = vld [vmem:[%s14229_s3] ss:$0 sm:$0xff]  ;;  %v12445_v52 = vld [vmem:[%s14228_s2 + $0x178] sm:$0xff]  ;;  %v14373_v47 = vld [vmem:[#allocation38_spill] sm:$0xff] }
 0x1ef   : > { %v12385_v0 = vpop.f32.mrf.mxu0  ;;  %v12431_v20 = vadd.f32 %v14370_v46, %v14369_v62  ;;  %v12434_v42 = vadd.f32 %v14371_v10, %v2138_v31  ;;  %v2144_v30 = vadd.f32 %v12130_v8, %v1750_v36  ;;  %14372 = vst [vmem:[#allocation9_spill] sm:$0xff] %v12445_v52  ;;  %v14374_v33 = vld [vmem:[#allocation37_spill] sm:$0xff]  ;;  %v14375_v54 = vld [vmem:[#allocation39_spill] sm:$0xff]  ;;  %v3309_v8 = vadd.f32 %v12212_v25, %v2915_v48  ;;  %v14377_v34 = vld [vmem:[#allocation40_spill] sm:$0xff] }
 0x1f0   : > { %v12449_v32 = vadd.f32 %v14374_v33, %v14373_v47  ;;  %v12452_v31 = vadd.f32 %v14375_v54, %v2140_v55  ;;  %10201 = vmatprep.subr.mxu0 %v12445_v52  ;;  %v12458_v17 = vadd.f32 %v14377_v34, %v14376_v26  ;;  %v12461_v4 = vadd.f32 %v14378_v12, %v2142_v11  ;;  %v14379_v23 = vld [vmem:[#allocation71_spill] sm:$0xff]  ;;  %v14380_v49 = vld [vmem:[#allocation44_spill] sm:$0xff]  ;;  %v14382_v25 = vld [vmem:[#allocation70_spill] sm:$0xff] }
 0x1f1   : > { %v12400_v43 = vpop.f32.mrf.mxu0  ;;  %v2917_v45 = vadd.f32 %v12222_v37, %v2522_v60  ;;  %v2920_v44 = vadd.f32 %v14379_v23, %v2525_v56  ;;  %v14381_v55 = vld [vmem:[#allocation43_spill] sm:$0xff]  ;;  %v3312_v48 = vadd.f32 %v14382_v25, %v2918_v22  ;;  %v14384_v11 = vld [vmem:[#allocation48_spill] sm:$0xff]  ;;  %v14386_v60 = vld [vmem:[#allocation46_spill] sm:$0xff] }
 0x1f2   : > { %v12467_v62 = vadd.f32 %v14381_v55, %v14380_v49  ;;  %v2146_v33 = vadd.f32 %v14384_v11, %v1752_v63  ;;  %v14385_v37 = vld [vmem:[#allocation47_spill] sm:$0xff]  ;;  %v14387_v54 = vld [vmem:[#allocation72_spill] sm:$0xff]  ;;  %v14391_v55 = vld [vmem:[#allocation74_spill] sm:$0xff] }
 0x1f3   : > { %v12413_v38 = vpop.f32.mrf.mxu0  ;;  %v12479_v56 = vadd.f32 %v14386_v60, %v14385_v37  ;;  %v2919_v26 = vadd.f32 %v14387_v54, %v2524_v51  ;;  %v14390_v49 = vld [vmem:[#allocation76_spill] sm:$0xff]  ;;  %v2922_v25 = vadd.f32 %v14391_v55, %v2527_v59  ;;  %v14393_v54 = vld [vmem:[#allocation51_spill] sm:$0xff] }
 0x1f4   : > { %v3314_v63 = vadd.f32 %v14390_v49, %v2920_v44  ;;  %v14396_v49 = vld [vmem:[#allocation53_spill] sm:$0xff] }
 0x1f5   : > { %v9835_v50 = vpop.f32.mrf.mxu0 }
 0x1f6   : > { %v3704_v36 = vadd.f32 %v9835_v50, %v3310_v27  ;;  %v12470_v27 = vpop.f32.mrf.mxu1  ;;  %v14383_v50 = vld [vmem:[#allocation45_spill] sm:$0xff] }
 0x1f7   : > { %v3544_v35 = vpop.f32.mrf.mxu0  ;;  %v12474_v47 = vadd.f32 %v14383_v50, %v2144_v30  ;;  %v14389_v30 = vld [vmem:[#allocation73_spill] sm:$0xff] }
 0x1f8   : > { %v3743_v46 = vadd.f32 %v12440_v21, %v3704_v36  ;;  %v3703_v10 = vadd.f32 %v3544_v35, %v3309_v8  ;;  %v14388_v8 = vld [vmem:[#allocation52_spill] sm:$0xff]  ;;  %v3311_v35 = vadd.f32 %v14389_v30, %v2917_v45  ;;  %v12489_v11 = vpop.f32.mrf.mxu1  ;;  %v14395_v45 = vld [vmem:[#allocation79_spill] sm:$0xff] }
 0x1f9   : > { %v9838_v34 = vpop.f32.mrf.mxu0  ;;  %v2148_v36 = vadd.f32 %v14388_v8, %v12367_v41  ;;  %v14394_v41 = vld [vmem:[#allocation50_spill] sm:$0xff]  ;;  %v3313_v44 = vadd.f32 %v14395_v45, %v2919_v26 }
 0x1fa   : > { %vm3776_vm3 = vcmp.gt.f32.partialorder %v3743_v46, 0.0  ;;  %v3809_v22 = vmul.f32 %v12393_v28, %v3743_v46  ;;  %v3742_v12 = vadd.f32 %v12440_v21, %v3703_v10  ;;  %v3706_v23 = vadd.f32 %v9838_v34, %v3312_v48  ;;  %v14392_v10 = vld [vmem:[#allocation49_spill] sm:$0xff] }
 0x1fb   : > { %v3554_v50 = vpop.f32.mrf.mxu0  ;;  %v12494_v48 = vadd.f32 %v14392_v10, %v2146_v33  ;;  %v12498_v34 = vadd.f32 %v14394_v41, %v14393_v54  ;;  %v14397_v33 = vld [vmem:[#allocation75_spill] sm:$0xff]  ;;  %v14398_v10 = vld [vmem:[#allocation77_spill] sm:$0xff] }
 0x1fc   : > { %v3841_v51 = vsel %vm3776_vm3, %v3743_v46, %v3809_v22  ;;  %vm3775_vm4 = vcmp.gt.f32.partialorder %v3742_v12, 0.0  ;;  %v3808_v37 = vmul.f32 %v12393_v28, %v3742_v12  ;;  %v3745_v60 = vadd.f32 %v12440_v21, %v3706_v23 }
 0x1fd   : > { %3919 = vst.msk [vmem:[#allocation2 + $0x21] sm:$0xff] %vm332_vm0, %v3841_v51  ;;  %v3705_v59 = vadd.f32 %v3554_v50, %v3311_v35  ;;  %v9841_v8 = vpop.f32.mrf.mxu0  ;;  %v12504_v23 = vadd.f32 %v14396_v49, %v2148_v36  ;;  %v2921_v55 = vadd.f32 %v14397_v33, %v2526_v9  ;;  %v2924_v52 = vadd.f32 %v14398_v10, %v2529_v61  ;;  %v14399_v51 = vld [vmem:[#allocation82_spill] sm:$0xff]  ;;  %v12511_v50 = vpop.f32.mrf.mxu1  ;;  %v14400_v36 = vld [vmem:[#allocation56_spill] sm:$0xff] }
 0x1fe   : > { %v3840_v30 = vsel %vm3775_vm4, %v3742_v12, %v3808_v37  ;;  %vm3778_vm5 = vcmp.gt.f32.partialorder %v3745_v60, 0.0  ;;  %v3811_v46 = vmul.f32 %v12393_v28, %v3745_v60  ;;  %v3708_v22 = vadd.f32 %v9841_v8, %v3314_v63  ;;  %v14401_v9 = vld [vmem:[#allocation78_spill] sm:$0xff] }
 0x1ff   : > { %3918 = vst.msk [vmem:[#allocation2 + $0x19] sm:$0xff] %vm332_vm0, %v3840_v30  ;;  %v3744_v26 = vadd.f32 %v12440_v21, %v3705_v59  ;;  %v3564_v54 = vpop.f32.mrf.mxu0  ;;  %v3316_v35 = vadd.f32 %v14399_v51, %v2922_v25  ;;  %v2150_v41 = vadd.f32 %v14400_v36, %v12370_v2  ;;  %v2923_v45 = vadd.f32 %v14401_v9, %v12416_v53  ;;  %v14402_v30 = vld [vmem:[#allocation85_spill] sm:$0xff]  ;;  %v14404_v2 = vld [vmem:[#allocation80_spill] sm:$0xff]  ;;  %v12526_v10 = vpop.f32.mrf.mxu1 }
 0x200   : > { %v3843_v12 = vsel %vm3778_vm5, %v3745_v60, %v3811_v46  ;;  %v3747_v37 = vadd.f32 %v12440_v21, %v3708_v22  ;;  %v3707_v63 = vadd.f32 %v3564_v54, %v3313_v44  ;;  %v3315_v44 = vadd.f32 %v14402_v30, %v2921_v55  ;;  %v14403_v46 = vld [vmem:[#allocation88_spill] sm:$0xff] }
 0x201   : > { %3921 = vst.msk [vmem:[#allocation2 + $0x39] sm:$0xff] %vm332_vm0, %v3843_v12  ;;  %vm3777_vm6 = vcmp.gt.f32.partialorder %v3744_v26, 0.0  ;;  %v3810_v61 = vmul.f32 %v12393_v28, %v3744_v26  ;;  %v9844_v59 = vpop.f32.mrf.mxu0  ;;  %v3318_v22 = vadd.f32 %v14403_v46, %v2924_v52  ;;  %v2926_v49 = vadd.f32 %v14404_v2, %v12420_v3  ;;  %v14407_v3 = vld [vmem:[#allocation81_spill] sm:$0xff] }
 0x202   : > { %vm3780_vm7 = vcmp.gt.f32.partialorder %v3747_v37, 0.0  ;;  %v3813_v25 = vmul.f32 %v12393_v28, %v3747_v37  ;;  %v3746_v60 = vadd.f32 %v12440_v21, %v3707_v63  ;;  %v3710_v8 = vadd.f32 %v9844_v59, %v3316_v35  ;;  %v14405_v35 = vld [vmem:[#allocation55_spill] sm:$0xff]  ;;  %v14406_v63 = vld [vmem:[#allocation54_spill] sm:$0xff] }
 0x203   : > { %v3842_v53 = vsel %vm3777_vm6, %v3744_v26, %v3810_v61  ;;  %v3574_v33 = vpop.f32.mrf.mxu0  ;;  %v12533_v55 = vadd.f32 %v14406_v63, %v14405_v35  ;;  %v3317_v52 = vadd.f32 %v12287_v58, %v2923_v45  ;;  %v2925_v26 = vadd.f32 %v14407_v3, %v12427_v13  ;;  %v14408_v45 = vld [vmem:[#allocation83_spill] sm:$0xff] }
 0x204   : > { %3920 = vst.msk [vmem:[#allocation2 + $0x31] sm:$0xff] %vm332_vm0, %v3842_v53  ;;  %v3845_v54 = vsel %vm3780_vm7, %v3747_v37, %v3813_v25  ;;  %vm3779_vm8 = vcmp.gt.f32.partialorder %v3746_v60, 0.0  ;;  %v3812_v51 = vmul.f32 %v12393_v28, %v3746_v60  ;;  %v3749_v12 = vadd.f32 %v12440_v21, %v3710_v8  ;;  %v12555_v46 = vld [vmem:[#allocation2 + $0x21] sm:$0xff] }
 0x205   : > { %3923 = vst.msk [vmem:[#allocation2 + $0x51] sm:$0xff] %vm332_vm0, %v3845_v54  ;;  %v3709_v36 = vadd.f32 %v3574_v33, %v3315_v44  ;;  %v9847_v9 = vpop.f32.mrf.mxu0  ;;  %v3320_v58 = vadd.f32 %v12293_v6, %v2926_v49  ;;  %v2928_v13 = vadd.f32 %v14408_v45, %v12431_v20  ;;  %v14409_v20 = vld [vmem:[#allocation57_spill] sm:$0xff]  ;;  %v14410_v33 = vld [vmem:[#allocation84_spill] sm:$0xff]  ;;  %v3319_v3 = vadd.f32 %v12299_v40, %v2925_v26 }
 0x206   : > { %v3844_v61 = vsel %vm3779_vm8, %v3746_v60, %v3812_v51  ;;  %vm3782_vm9 = vcmp.gt.f32.partialorder %v3749_v12, 0.0  ;;  %v3815_v37 = vmul.f32 %v12393_v28, %v3749_v12  ;;  %v3712_v59 = vadd.f32 %v9847_v9, %v3318_v22  ;;  %v12540_v25 = vld [vmem:[#allocation2 + $0x19] sm:$0xff]  ;;  %v12557_v22 = vpop.f32.mrf.mxu1 }
 0x207   : > { %v12542_v8 = vld [vmem:[#allocation2 + $0x18] sm:$0xff]  ;;  %v12544_v30 = vld [vmem:[#allocation2 + $0x20] sm:$0xff]  ;;  %3922 = vst.msk [vmem:[#allocation2 + $0x49] sm:$0xff] %vm332_vm0, %v3844_v61  ;;  %v3748_v44 = vadd.f32 %v12440_v21, %v3709_v36  ;;  %v3584_v60 = vpop.f32.mrf.mxu0  ;;  %9900 = vmatprep.mubr.msk.f32.mxu1 %vm332_vm0, %v12540_v25  ;;  %v12565_v53 = vadd.f32 %v14409_v20, %v2150_v41  ;;  %v2927_v54 = vadd.f32 %v14410_v33, %v12434_v42  ;;  %v14411_v36 = vld [vmem:[#allocation86_spill] sm:$0xff] }
 0x208   : > { %9964 = vmatprep.mubr.msk.f32.mxu0 %vm332_vm0, %v12542_v8  ;;  %v3847_v2 = vsel %vm3782_vm9, %v3749_v12, %v3815_v37  ;;  %v3751_v6 = vadd.f32 %v12440_v21, %v3712_v59  ;;  %v3711_v49 = vadd.f32 %v3584_v60, %v3317_v52  ;;  %9901 = vmatmul.mubr.msk.f32.gmra.mxu1 %vm332_vm0, %v12555_v46  ;;  %v12583_v60 = vpop.f32.mrf.mxu1  ;;  %v14412_v26 = vld [vmem:[#allocation60_spill] sm:$0xff] }
 0x209   : > { %9965 = vmatmul.mubr.msk.f32.gmra.mxu0 %vm332_vm0, %v12544_v30  ;;  %3925 = vst.msk [vmem:[#allocation2 + $0x69] sm:$0xff] %vm332_vm0, %v3847_v2  ;;  %vm3781_vm10 = vcmp.gt.f32.partialorder %v3748_v44, 0.0  ;;  %v3814_v51 = vmul.f32 %v12393_v28, %v3748_v44  ;;  %v9850_v12 = vpop.f32.mrf.mxu0  ;;  %v3322_v41 = vadd.f32 %v12305_v24, %v2928_v13  ;;  %v2930_v9 = vadd.f32 %v14411_v36, %v12449_v32  ;;  %v12592_v32 = vld [vmem:[#allocation2 + $0x39] sm:$0xff] }
 0x20a   : > { %vm3784_vm11 = vcmp.gt.f32.partialorder %v3751_v6, 0.0  ;;  %v3817_v35 = vmul.f32 %v12393_v28, %v3751_v6  ;;  %v3750_v63 = vadd.f32 %v12440_v21, %v3711_v49  ;;  %v3714_v52 = vadd.f32 %v9850_v12, %v3320_v58  ;;  %v12620_v36 = vpop.f32.mrf.mxu1 }
 0x20b   : > { %v3846_v42 = vsel %vm3781_vm10, %v3748_v44, %v3814_v51  ;;  %v3594_v61 = vpop.f32.mrf.mxu0  ;;  %v12577_v37 = vld [vmem:[#allocation2 + $0x31] sm:$0xff]  ;;  %v2152_v13 = vadd.f32 %v14412_v26, %v12376_v1  ;;  %v3321_v44 = vadd.f32 %v12325_v16, %v2927_v54 }
 0x20c   : > { %v12579_v59 = vld [vmem:[#allocation2 + $0x30] sm:$0xff]  ;;  %v12581_v45 = vld [vmem:[#allocation2 + $0x38] sm:$0xff]  ;;  %3924 = vst.msk [vmem:[#allocation2 + $0x61] sm:$0xff] %vm332_vm0, %v3846_v42  ;;  %v3849_v58 = vsel %vm3784_vm11, %v3751_v6, %v3817_v35  ;;  %vm3783_vm12 = vcmp.gt.f32.partialorder %v3750_v63, 0.0  ;;  %v3816_v40 = vmul.f32 %v12393_v28, %v3750_v63  ;;  %v3753_v24 = vadd.f32 %v12440_v21, %v3714_v52  ;;  %9903 = vmatprep.mubr.msk.f32.mxu1 %vm332_vm0, %v12577_v37  ;;  %v14414_v35 = vld [vmem:[#allocation89_spill] sm:$0xff] }
 0x20d   : > { %9967 = vmatprep.mubr.msk.f32.mxu0 %vm332_vm0, %v12579_v59  ;;  %3927 = vst.msk [vmem:[#allocation2 + $0x81] sm:$0xff] %vm332_vm0, %v3849_v58  ;;  %v3713_v2 = vadd.f32 %v3594_v61, %v3319_v3  ;;  %9904 = vmatmul.mubr.msk.f32.gmra.mxu1 %vm332_vm0, %v12592_v32  ;;  %v9853_v6 = vpop.f32.mrf.mxu0  ;;  %v14413_v54 = vld [vmem:[#allocation87_spill] sm:$0xff]  ;;  %v2932_v52 = vadd.f32 %v14414_v35, %v12458_v17 }
 0x20e   : > { %9968 = vmatmul.mubr.msk.f32.gmra.mxu0 %vm332_vm0, %v12581_v45  ;;  %v3848_v49 = vsel %vm3783_vm12, %v3750_v63, %v3816_v40  ;;  %vm3786_vm13 = vcmp.gt.f32.partialorder %v3753_v24, 0.0  ;;  %v3819_v20 = vmul.f32 %v12393_v28, %v3753_v24  ;;  %v3716_v33 = vadd.f32 %v9853_v6, %v3322_v41  ;;  %v12603_v51 = vld [vmem:[#allocation2 + $0x49] sm:$0xff]  ;;  %v12623_v17 = vld [vmem:[#allocation2 + $0x51] sm:$0xff] }
 0x20f   : > { %v12605_v1 = vld [vmem:[#allocation2 + $0x48] sm:$0xff]  ;;  %v12607_v16 = vld [vmem:[#allocation2 + $0x50] sm:$0xff]  ;;  %v2929_v12 = vadd.f32 %v14413_v54, %v12452_v31  ;;  %3926 = vst.msk [vmem:[#allocation2 + $0x79] sm:$0xff] %vm332_vm0, %v3848_v49  ;;  %v3752_v63 = vadd.f32 %v12440_v21, %v3713_v2  ;;  %v3604_v3 = vpop.f32.mrf.mxu0  ;;  %9906 = vmatprep.mubr.msk.f32.mxu1 %vm332_vm0, %v12603_v51  ;;  %v3324_v41 = vadd.f32 %v12357_v14, %v2930_v9 }
 0x210   : > { %9970 = vmatprep.mubr.msk.f32.mxu0 %vm332_vm0, %v12605_v1  ;;  %v3851_v42 = vsel %vm3786_vm13, %v3753_v24, %v3819_v20  ;;  %v3755_v31 = vadd.f32 %v12440_v21, %v3716_v33  ;;  %v3715_v61 = vadd.f32 %v3604_v3, %v3321_v44  ;;  %v14415_v58 = vld [vmem:[#allocation59_spill] sm:$0xff]  ;;  %v14416_v40 = vld [vmem:[#allocation58_spill] sm:$0xff]  ;;  %v3326_v20 = vadd.f32 %v12424_v15, %v2932_v52 }
 0x211   : > { %v12627_v26 = vadd.f32 %v14416_v40, %v14415_v58  ;;  %v14417_v2 = vld [vmem:[#allocation90_spill] sm:$0xff]  ;;  %3929 = vst.msk [vmem:[#allocation2 + $0x99] sm:$0xff] %vm332_vm0, %v3851_v42  ;;  %vm3785_vm14 = vcmp.gt.f32.partialorder %v3752_v63, 0.0  ;;  %v3818_v14 = vmul.f32 %v12393_v28, %v3752_v63  ;;  %9907 = vmatmul.mubr.msk.f32.gmra.mxu1 %vm332_vm0, %v12623_v17  ;;  %v9856_v9 = vpop.f32.mrf.mxu0  ;;  %v14418_v33 = vld [vmem:[#allocation91_spill] sm:$0xff] }
 0x212   : > { %v2931_v6 = vadd.f32 %v14417_v2, %v12461_v4  ;;  %9971 = vmatmul.mubr.msk.f32.gmra.mxu0 %vm332_vm0, %v12607_v16  ;;  %vm3788_vm15 = vcmp.gt.f32.partialorder %v3755_v31, 0.0  ;;  %v3821_v24 = vmul.f32 %v12393_v28, %v3755_v31  ;;  %v3754_v44 = vadd.f32 %v12440_v21, %v3715_v61  ;;  %v12649_v2 = vpop.f32.mrf.mxu1 }
 0x213   : > { %v3718_v49 = vadd.f32 %v9856_v9, %v3324_v41  ;;  %v3323_v4 = vadd.f32 %v12390_v57, %v2929_v12  ;;  %v2934_v54 = vadd.f32 %v14418_v33, %v12467_v62  ;;  %v3850_v35 = vsel %vm3785_vm14, %v3752_v63, %v3818_v14  ;;  %v3614_v3 = vpop.f32.mrf.mxu0  ;;  %v12643_v42 = vld [vmem:[#allocation2 + $0x61] sm:$0xff]  ;;  %v12658_v62 = vld [vmem:[#allocation2 + $0x69] sm:$0xff] }
 0x214   : > { %v12645_v58 = vld [vmem:[#allocation2 + $0x60] sm:$0xff]  ;;  %v12647_v40 = vld [vmem:[#allocation2 + $0x68] sm:$0xff]  ;;  %3928 = vst.msk [vmem:[#allocation2 + $0x91] sm:$0xff] %vm332_vm0, %v3850_v35  ;;  %v3853_v41 = vsel %vm3788_vm15, %v3755_v31, %v3821_v24  ;;  %vm3787_vm1 = vcmp.gt.f32.partialorder %v3754_v44, 0.0  ;;  %v3820_v57 = vmul.f32 %v12393_v28, %v3754_v44  ;;  %9909 = vmatprep.mubr.msk.f32.mxu1 %vm332_vm0, %v12643_v42  ;;  %v3325_v63 = vadd.f32 %v12470_v27, %v2931_v6  ;;  %v14421_v6 = vld [vmem:[#allocation92_spill] sm:$0xff] }
 0x215   : > { %v3757_v15 = vadd.f32 %v12440_v21, %v3718_v49  ;;  %9973 = vmatprep.mubr.msk.f32.mxu0 %vm332_vm0, %v12645_v58  ;;  %v14419_v12 = vld [vmem:[#allocation61_spill] sm:$0xff]  ;;  %3931 = vst.msk [vmem:[#allocation2 + $0xb1] sm:$0xff] %vm332_vm0, %v3853_v41  ;;  %v3717_v31 = vadd.f32 %v3614_v3, %v3323_v4  ;;  %9910 = vmatmul.mubr.msk.f32.gmra.mxu1 %vm332_vm0, %v12658_v62  ;;  %v9859_v61 = vpop.f32.mrf.mxu0  ;;  %v12687_v41 = vpop.f32.mrf.mxu1 }
 0x216   : > { %v12661_v52 = vadd.f32 %v14419_v12, %v2152_v13  ;;  %9974 = vmatmul.mubr.msk.f32.gmra.mxu0 %vm332_vm0, %v12647_v40  ;;  %v3852_v14 = vsel %vm3787_vm1, %v3754_v44, %v3820_v57  ;;  %v3720_v24 = vadd.f32 %v9859_v61, %v3326_v20  ;;  %v12670_v49 = vld [vmem:[#allocation2 + $0x79] sm:$0xff]  ;;  %v2933_v4 = vadd.f32 %v14421_v6, %v12474_v47 }
 0x217   : > { %vm3790_vm2 = vcmp.gt.f32.partialorder %v3757_v15, 0.0  ;;  %v3823_v9 = vmul.f32 %v12393_v28, %v3757_v15  ;;  %14420 = vst [vmem:[#allocation10_spill] sm:$0xff] %v12670_v49  ;;  %v12672_v13 = vld [vmem:[#allocation2 + $0x78] sm:$0xff]  ;;  %v12674_v27 = vld [vmem:[#allocation2 + $0x80] sm:$0xff]  ;;  %3930 = vst.msk [vmem:[#allocation2 + $0xa9] sm:$0xff] %vm332_vm0, %v3852_v14  ;;  %v3756_v44 = vadd.f32 %v12440_v21, %v3717_v31  ;;  %v3624_v3 = vpop.f32.mrf.mxu0  ;;  %9912 = vmatprep.mubr.msk.f32.mxu1 %vm332_vm0, %v12670_v49  ;;  %v12714_v49 = vpop.f32.mrf.mxu1 }
 0x218   : > { %v14422_v33 = vld [vmem:[#allocation93_spill] sm:$0xff]  ;;  %9976 = vmatprep.mubr.msk.f32.mxu0 %vm332_vm0, %v12672_v13  ;;  %v3328_v20 = vadd.f32 %v12489_v11, %v2934_v54  ;;  %v3759_v47 = vadd.f32 %v12440_v21, %v3720_v24  ;;  %v3719_v12 = vadd.f32 %v3624_v3, %v3325_v63  ;;  %v14424_v61 = vld [vmem:[#allocation64_spill] sm:$0xff]  ;;  %v14425_v14 = vld [vmem:[#allocation94_spill] sm:$0xff] }
 0x219   : > { %v2936_v35 = vadd.f32 %v14422_v33, %v12479_v56  ;;  %v3855_v57 = vsel %vm3790_vm2, %v3757_v15, %v3823_v9  ;;  %v12690_v56 = vld [vmem:[#allocation2 + $0x81] sm:$0xff]  ;;  %v2154_v31 = vadd.f32 %v14424_v61, %v12379_v29  ;;  %v2935_v6 = vadd.f32 %v14425_v14, %v12494_v48  ;;  %v9862_v11 = vpop.f32.mrf.mxu0  ;;  %v14426_v9 = vld [vmem:[#allocation95_spill] sm:$0xff] }
 0x21a   : > { %14423 = vst [vmem:[#allocation7_spill] sm:$0xff] %v12690_v56  ;;  %3933 = vst.msk [vmem:[#allocation2 + $0xc9] sm:$0xff] %vm332_vm0, %v3855_v57  ;;  %vm3789_vm3 = vcmp.gt.f32.partialorder %v3756_v44, 0.0  ;;  %v3822_v33 = vmul.f32 %v12393_v28, %v3756_v44  ;;  %9913 = vmatmul.mubr.msk.f32.gmra.mxu1 %vm332_vm0, %v12690_v56  ;;  %9977 = vmatmul.mubr.msk.f32.gmra.mxu0 %vm332_vm0, %v12674_v27  ;;  %vm3792_vm4 = vcmp.gt.f32.partialorder %v3759_v47, 0.0 }
 0x21b   : > { %v3825_v54 = vmul.f32 %v12393_v28, %v3759_v47  ;;  %v3758_v29 = vadd.f32 %v12440_v21, %v3719_v12  ;;  %v3722_v15 = vadd.f32 %v9862_v11, %v3328_v20  ;;  %v3327_v48 = vadd.f32 %v12511_v50, %v2933_v4  ;;  %v3634_v57 = vpop.f32.mrf.mxu0  ;;  %v12708_v61 = vld [vmem:[#allocation2 + $0x91] sm:$0xff] }
 0x21c   : > { %v3330_v63 = vadd.f32 %v12526_v10, %v2936_v35  ;;  %v2938_v24 = vadd.f32 %v14426_v9, %v12498_v34  ;;  %v3854_v3 = vsel %vm3789_vm3, %v3756_v44, %v3822_v33  ;;  %v12710_v14 = vld [vmem:[#allocation2 + $0x90] sm:$0xff]  ;;  %v12712_v56 = vld [vmem:[#allocation2 + $0x98] sm:$0xff]  ;;  %9915 = vmatprep.mubr.msk.f32.mxu1 %vm332_vm0, %v12708_v61  ;;  %v14428_v35 = vld [vmem:[#allocation62_spill] sm:$0xff]  ;;  %v3329_v12 = vadd.f32 %v12557_v22, %v2935_v6 }
 0x21d   : > { %3932 = vst.msk [vmem:[#allocation2 + $0xc1] sm:$0xff] %vm332_vm0, %v3854_v3  ;;  %v3857_v20 = vsel %vm3792_vm4, %v3759_v47, %v3825_v54  ;;  %vm3791_vm5 = vcmp.gt.f32.partialorder %v3758_v29, 0.0  ;;  %v3824_v50 = vmul.f32 %v12393_v28, %v3758_v29  ;;  %v3761_v10 = vadd.f32 %v12440_v21, %v3722_v15  ;;  %9979 = vmatprep.mubr.msk.f32.mxu0 %vm332_vm0, %v12710_v14  ;;  %v12723_v34 = vld [vmem:[#allocation2 + $0x99] sm:$0xff]  ;;  %v14427_v4 = vld [vmem:[#allocation63_spill] sm:$0xff]  ;;  %v9865_v33 = vpop.f32.mrf.mxu0 }
 0x21e   : > { %v12727_v44 = vadd.f32 %v14428_v35, %v14427_v4  ;;  %3935 = vst.msk [vmem:[#allocation2 + $0xe1] sm:$0xff] %vm332_vm0, %v3857_v20  ;;  %v3721_v47 = vadd.f32 %v3634_v57, %v3327_v48  ;;  %9916 = vmatmul.mubr.msk.f32.gmra.mxu1 %vm332_vm0, %v12723_v34  ;;  %9980 = vmatmul.mubr.msk.f32.gmra.mxu0 %vm332_vm0, %v12712_v56  ;;  %v12736_v9 = vld [vmem:[#allocation2 + $0xa9] sm:$0xff]  ;;  %v14429_v6 = vld [vmem:[#allocation96_spill] sm:$0xff]  ;;  %v14430_v57 = vld [vmem:[#allocation97_spill] sm:$0xff]  ;;  %v12753_v4 = vpop.f32.mrf.mxu1 }
 0x21f   : > { %v3856_v11 = vsel %vm3791_vm5, %v3758_v29, %v3824_v50  ;;  %vm3794_vm6 = vcmp.gt.f32.partialorder %v3761_v10, 0.0  ;;  %v3827_v54 = vmul.f32 %v12393_v28, %v3761_v10  ;;  %v3724_v15 = vadd.f32 %v9865_v33, %v3330_v63  ;;  %v12738_v3 = vld [vmem:[#allocation2 + $0xa8] sm:$0xff]  ;;  %v12740_v22 = vld [vmem:[#allocation2 + $0xb0] sm:$0xff]  ;;  %v3644_v50 = vpop.f32.mrf.mxu0  ;;  %9918 = vmatprep.mubr.msk.f32.mxu1 %vm332_vm0, %v12736_v9 }
 0x220   : > { %v2937_v48 = vadd.f32 %v14429_v6, %v12504_v23  ;;  %v2940_v20 = vadd.f32 %v14430_v57, %v12533_v55  ;;  %3934 = vst.msk [vmem:[#allocation2 + $0xd9] sm:$0xff] %vm332_vm0, %v3856_v11  ;;  %v3760_v29 = vadd.f32 %v12440_v21, %v3721_v47  ;;  %9982 = vmatprep.mubr.msk.f32.mxu0 %vm332_vm0, %v12738_v3  ;;  %v12756_v55 = vld [vmem:[#allocation2 + $0xb1] sm:$0xff]  ;;  %v14432_v11 = vld [vmem:[#allocation65_spill] sm:$0xff] }
 0x221   : > { %v3332_v63 = vadd.f32 %v12583_v60, %v2938_v24  ;;  %v3859_v35 = vsel %vm3794_vm6, %v3761_v10, %v3827_v54  ;;  %v3763_v23 = vadd.f32 %v12440_v21, %v3724_v15  ;;  %v3723_v33 = vadd.f32 %v3644_v50, %v3329_v12  ;;  %14431 = vst [vmem:[#allocation20_spill] sm:$0xff] %v12756_v55  ;;  %v9868_v60 = vpop.f32.mrf.mxu0 }
 0x222   : > { %v2548_v6 = vadd.f32 %v14432_v11, %v2154_v31  ;;  %v2939_v47 = vadd.f32 %v12315_v7, %v12565_v53  ;;  %3937 = vst.msk [vmem:[#allocation2 + $0xf9] sm:$0xff] %vm332_vm0, %v3859_v35  ;;  %vm3793_vm7 = vcmp.gt.f32.partialorder %v3760_v29, 0.0  ;;  %v3826_v57 = vmul.f32 %v12393_v28, %v3760_v29  ;;  %9919 = vmatmul.mubr.msk.f32.gmra.mxu1 %vm332_vm0, %v12756_v55  ;;  %v9813_v55 = vpop.f32.mrf.mxu1 }
 0x223   : > { %9983 = vmatmul.mubr.msk.f32.gmra.mxu0 %vm332_vm0, %v12740_v22  ;;  %vm3796_vm8 = vcmp.gt.f32.partialorder %v3763_v23, 0.0  ;;  %v3829_v24 = vmul.f32 %v12393_v28, %v3763_v23  ;;  %v3762_v31 = vadd.f32 %v12440_v21, %v3723_v33  ;;  %v3726_v10 = vadd.f32 %v9868_v60, %v3332_v63  ;;  %v3654_v15 = vpop.f32.mrf.mxu0 }
 0x224   : > { %v3331_v7 = vadd.f32 %v12620_v36, %v2937_v48  ;;  %v3334_v53 = vadd.f32 %v12649_v2, %v2940_v20  ;;  %v2942_v12 = vadd.f32 %v12335_v39, %v12627_v26  ;;  %v3858_v54 = vsel %vm3793_vm7, %v3760_v29, %v3826_v57  ;;  %v12773_v50 = vld [vmem:[#allocation2 + $0xc1] sm:$0xff]  ;;  %v12786_v39 = vld [vmem:[#allocation2 + $0xc9] sm:$0xff]  ;;  %v14433_v26 = vld [vmem:[#allocation68_spill] sm:$0xff] }
 0x225   : > { %v12775_v35 = vld [vmem:[#allocation2 + $0xc0] sm:$0xff]  ;;  %v12777_v11 = vld [vmem:[#allocation2 + $0xc8] sm:$0xff]  ;;  %3936 = vst.msk [vmem:[#allocation2 + $0xf1] sm:$0xff] %vm332_vm0, %v3858_v54  ;;  %v3861_v33 = vsel %vm3796_vm8, %v3763_v23, %v3829_v24  ;;  %vm3795_vm9 = vcmp.gt.f32.partialorder %v3762_v31, 0.0  ;;  %v3828_v36 = vmul.f32 %v12393_v28, %v3762_v31  ;;  %v3765_v2 = vadd.f32 %v12440_v21, %v3726_v10  ;;  %9921 = vmatprep.mubr.msk.f32.mxu1 %vm332_vm0, %v12773_v50  ;;  %v9871_v63 = vpop.f32.mrf.mxu0  ;;  %v3290_v54 = vpop.f32.mrf.mxu1 }
 0x226   : > { %9985 = vmatprep.mubr.msk.f32.mxu0 %vm332_vm0, %v12775_v35  ;;  %v2156_v48 = vadd.f32 %v14433_v26, %v12382_v5  ;;  %v3333_v20 = vadd.f32 %v12687_v41, %v2939_v47  ;;  %3939 = vst.msk [vmem:[#allocation2 + $0x111] sm:$0xff] %vm332_vm0, %v3861_v33  ;;  %v3725_v29 = vadd.f32 %v3654_v15, %v3331_v7  ;;  %v12815_v33 = vld [vmem:[#allocation2 + $0xe1] sm:$0xff] }
 0x227   : > { %9922 = vmatmul.mubr.msk.f32.gmra.mxu1 %vm332_vm0, %v12786_v39  ;;  %9986 = vmatmul.mubr.msk.f32.gmra.mxu0 %vm332_vm0, %v12777_v11  ;;  %v3860_v23 = vsel %vm3795_vm9, %v3762_v31, %v3828_v36  ;;  %vm3798_vm10 = vcmp.gt.f32.partialorder %v3765_v2, 0.0  ;;  %v3831_v57 = vmul.f32 %v12393_v28, %v3765_v2  ;;  %v3728_v60 = vadd.f32 %v9871_v63, %v3334_v53  ;;  %v12797_v24 = vld [vmem:[#allocation2 + $0xd9] sm:$0xff]  ;;  %v3664_v7 = vpop.f32.mrf.mxu0 }
 0x228   : > { %v12799_v5 = vld [vmem:[#allocation2 + $0xd8] sm:$0xff]  ;;  %v12801_v41 = vld [vmem:[#allocation2 + $0xe0] sm:$0xff]  ;;  %v2941_v47 = vadd.f32 %v12348_v19, %v12661_v52  ;;  %v2944_v10 = vadd.f32 %v12364_v18, %v12727_v44  ;;  %3938 = vst.msk [vmem:[#allocation2 + $0x109] sm:$0xff] %vm332_vm0, %v3860_v23  ;;  %v3764_v31 = vadd.f32 %v12440_v21, %v3725_v29  ;;  %9924 = vmatprep.mubr.msk.f32.mxu1 %vm332_vm0, %v12797_v24  ;;  %v14434_v18 = vld [vmem:[#allocation67_spill] sm:$0xff] }
 0x229   : > { %9988 = vmatprep.mubr.msk.f32.mxu0 %vm332_vm0, %v12799_v5  ;;  %v3336_v53 = vadd.f32 %v12714_v49, %v2942_v12  ;;  %v3863_v15 = vsel %vm3798_vm10, %v3765_v2, %v3831_v57  ;;  %v3767_v19 = vadd.f32 %v12440_v21, %v3728_v60  ;;  %v3727_v52 = vadd.f32 %v3664_v7, %v3333_v20  ;;  %v14435_v44 = vld [vmem:[#allocation66_spill] sm:$0xff]  ;;  %v9874_v49 = vpop.f32.mrf.mxu0 }
 0x22a   : > { %v2551_v36 = vadd.f32 %v14435_v44, %v14434_v18  ;;  %v2943_v26 = vadd.f32 %v12385_v0, %v2548_v6  ;;  %3941 = vst.msk [vmem:[#allocation2 + $0x129] sm:$0xff] %vm332_vm0, %v3863_v15  ;;  %vm3797_vm11 = vcmp.gt.f32.partialorder %v3764_v31, 0.0  ;;  %v3830_v29 = vmul.f32 %v12393_v28, %v3764_v31  ;;  %v9816_v18 = vpop.f32.mrf.mxu1 }
 0x22b   : > { %9925 = vmatmul.mubr.msk.f32.gmra.mxu1 %vm332_vm0, %v12815_v33  ;;  %9989 = vmatmul.mubr.msk.f32.gmra.mxu0 %vm332_vm0, %v12801_v41  ;;  %vm3800_vm12 = vcmp.gt.f32.partialorder %v3767_v19, 0.0  ;;  %v3833_v12 = vmul.f32 %v12393_v28, %v3767_v19  ;;  %v3766_v2 = vadd.f32 %v12440_v21, %v3727_v52  ;;  %v3730_v20 = vadd.f32 %v9874_v49, %v3336_v53  ;;  %v3674_v57 = vpop.f32.mrf.mxu0 }
 0x22c   : > { %v3335_v0 = vadd.f32 %v12753_v4, %v2941_v47  ;;  %v3338_v6 = vadd.f32 %v9813_v55, %v2944_v10  ;;  %v2946_v63 = vadd.f32 %v12400_v43, %v2551_v36  ;;  %v3862_v23 = vsel %vm3797_vm11, %v3764_v31, %v3830_v29  ;;  %v12830_v60 = vld [vmem:[#allocation2 + $0xf1] sm:$0xff]  ;;  %v12843_v43 = vld [vmem:[#allocation2 + $0xf9] sm:$0xff] }
 0x22d   : > { %v12832_v7 = vld [vmem:[#allocation2 + $0xf0] sm:$0xff]  ;;  %v12834_v15 = vld [vmem:[#allocation2 + $0xf8] sm:$0xff]  ;;  %3940 = vst.msk [vmem:[#allocation2 + $0x121] sm:$0xff] %vm332_vm0, %v3862_v23  ;;  %v3865_v44 = vsel %vm3800_vm12, %v3767_v19, %v3833_v12  ;;  %vm3799_vm13 = vcmp.gt.f32.partialorder %v3766_v2, 0.0  ;;  %v3832_v53 = vmul.f32 %v12393_v28, %v3766_v2  ;;  %v3769_v4 = vadd.f32 %v12440_v21, %v3730_v20  ;;  %9927 = vmatprep.mubr.msk.f32.mxu1 %vm332_vm0, %v12830_v60  ;;  %v14436_v55 = vld [vmem:[#allocation69_spill] sm:$0xff]  ;;  %v9877_v19 = vpop.f32.mrf.mxu0 }
 0x22e   : > { %9991 = vmatprep.mubr.msk.f32.mxu0 %vm332_vm0, %v12832_v7  ;;  %v2550_v47 = vadd.f32 %v14436_v55, %v2156_v48  ;;  %v3337_v10 = vadd.f32 %v3290_v54, %v2943_v26  ;;  %3943 = vst.msk [vmem:[#allocation2 + $0x141] sm:$0xff] %vm332_vm0, %v3865_v44  ;;  %v3729_v31 = vadd.f32 %v3674_v57, %v3335_v0  ;;  %v3300_v0 = vpop.f32.mrf.mxu1  ;;  %v12866_v44 = vld [vmem:[#allocation2 + $0x111] sm:$0xff] }
 0x22f   : > { %9928 = vmatmul.mubr.msk.f32.gmra.mxu1 %vm332_vm0, %v12843_v43  ;;  %9992 = vmatmul.mubr.msk.f32.gmra.mxu0 %vm332_vm0, %v12834_v15  ;;  %v3864_v52 = vsel %vm3799_vm13, %v3766_v2, %v3832_v53  ;;  %vm3802_vm14 = vcmp.gt.f32.partialorder %v3769_v4, 0.0  ;;  %v3835_v36 = vmul.f32 %v12393_v28, %v3769_v4  ;;  %v3732_v29 = vadd.f32 %v9877_v19, %v3338_v6  ;;  %v12852_v49 = vld [vmem:[#allocation2 + $0x109] sm:$0xff]  ;;  %v3684_v20 = vpop.f32.mrf.mxu0 }
 0x230   : > { %v12854_v12 = vld [vmem:[#allocation2 + $0x108] sm:$0xff]  ;;  %v12856_v48 = vld [vmem:[#allocation2 + $0x110] sm:$0xff]  ;;  %v2945_v54 = vadd.f32 %v12413_v38, %v2550_v47  ;;  %3942 = vst.msk [vmem:[#allocation2 + $0x139] sm:$0xff] %vm332_vm0, %v3864_v52  ;;  %v3768_v26 = vadd.f32 %v12440_v21, %v3729_v31  ;;  %9930 = vmatprep.mubr.msk.f32.mxu1 %vm332_vm0, %v12852_v49  ;;  %v3340_v2 = vadd.f32 %v9816_v18, %v2946_v63 }
 0x231   : > { %9994 = vmatprep.mubr.msk.f32.mxu0 %vm332_vm0, %v12854_v12  ;;  %v3867_v6 = vsel %vm3802_vm14, %v3769_v4, %v3835_v36  ;;  %v3771_v23 = vadd.f32 %v12440_v21, %v3732_v29  ;;  %v3731_v57 = vadd.f32 %v3684_v20, %v3337_v10  ;;  %v9880_v53 = vpop.f32.mrf.mxu0 }
 0x232   : > { %3945 = vst.msk [vmem:[#allocation2 + $0x159] sm:$0xff] %vm332_vm0, %v3867_v6  ;;  %vm3801_vm15 = vcmp.gt.f32.partialorder %v3768_v26, 0.0  ;;  %v3834_v38 = vmul.f32 %v12393_v28, %v3768_v26  ;;  %v3734_v4 = vadd.f32 %v9880_v53, %v3340_v2  ;;  %v3339_v55 = vadd.f32 %v3300_v0, %v2945_v54  ;;  %v12889_v54 = vld [vmem:[#allocation2 + $0x129] sm:$0xff] }
 0x233   : > { %9931 = vmatmul.mubr.msk.f32.gmra.mxu1 %vm332_vm0, %v12866_v44  ;;  %9995 = vmatmul.mubr.msk.f32.gmra.mxu0 %vm332_vm0, %v12856_v48  ;;  %vm3804_vm1 = vcmp.gt.f32.partialorder %v3771_v23, 0.0  ;;  %v3837_v63 = vmul.f32 %v12393_v28, %v3771_v23  ;;  %v3770_v18 = vadd.f32 %v12440_v21, %v3731_v57  ;;  %v3694_v10 = vpop.f32.mrf.mxu0 }
 0x234   : > { %v3866_v47 = vsel %vm3801_vm15, %v3768_v26, %v3834_v38  ;;  %v12876_v31 = vld [vmem:[#allocation2 + $0x121] sm:$0xff]  ;;  %v3773_v20 = vadd.f32 %v12440_v21, %v3734_v4  ;;  %v3733_v26 = vadd.f32 %v3694_v10, %v3339_v55 }
 0x235   : > { %v12878_v19 = vld [vmem:[#allocation2 + $0x120] sm:$0xff]  ;;  %v12880_v52 = vld [vmem:[#allocation2 + $0x128] sm:$0xff]  ;;  %3944 = vst.msk [vmem:[#allocation2 + $0x151] sm:$0xff] %vm332_vm0, %v3866_v47  ;;  %v3869_v36 = vsel %vm3804_vm1, %v3771_v23, %v3837_v63  ;;  %vm3803_vm2 = vcmp.gt.f32.partialorder %v3770_v18, 0.0  ;;  %v3836_v29 = vmul.f32 %v12393_v28, %v3770_v18  ;;  %9933 = vmatprep.mubr.msk.f32.mxu1 %vm332_vm0, %v12876_v31 }
 0x236   : > { %9997 = vmatprep.mubr.msk.f32.mxu0 %vm332_vm0, %v12878_v19  ;;  %3947 = vst.msk [vmem:[#allocation2 + $0x171] sm:$0xff] %vm332_vm0, %v3869_v36  ;;  %vm3806_vm3 = vcmp.gt.f32.partialorder %v3773_v20, 0.0  ;;  %v3839_v0 = vmul.f32 %v12393_v28, %v3773_v20  ;;  %v3772_v38 = vadd.f32 %v12440_v21, %v3733_v26  ;;  %v12909_v63 = vld [vmem:[#allocation2 + $0x141] sm:$0xff] }
 0x237   : > { %9934 = vmatmul.mubr.msk.f32.gmra.mxu1 %vm332_vm0, %v12889_v54  ;;  %9998 = vmatmul.mubr.msk.f32.gmra.mxu0 %vm332_vm0, %v12880_v52  ;;  %v3868_v2 = vsel %vm3803_vm2, %v3770_v18, %v3836_v29  ;;  %v12897_v6 = vld [vmem:[#allocation2 + $0x139] sm:$0xff] }
 0x238   : > { %v12899_v23 = vld [vmem:[#allocation2 + $0x138] sm:$0xff]  ;;  %v12901_v57 = vld [vmem:[#allocation2 + $0x140] sm:$0xff]  ;;  %3946 = vst.msk [vmem:[#allocation2 + $0x169] sm:$0xff] %vm332_vm0, %v3868_v2  ;;  %9936 = vmatprep.mubr.msk.f32.mxu1 %vm332_vm0, %v12897_v6  ;;  %v3871_v53 = vsel %vm3806_vm3, %v3773_v20, %v3839_v0  ;;  %vm3805_vm4 = vcmp.gt.f32.partialorder %v3772_v38, 0.0  ;;  %v3838_v18 = vmul.f32 %v12393_v28, %v3772_v38  ;;  %v4674_v2 = vld [vmem:[#allocation2 + $0xa] sm:$0xff] }
 0x239   : > { %10000 = vmatprep.mubr.msk.f32.mxu0 %vm332_vm0, %v12899_v23  ;;  %3949 = vst.msk [vmem:[#allocation2 + $0x189] sm:$0xff] %vm332_vm0, %v3871_v53  ;;  %v12928_v28 = vld [vmem:[#allocation2 + $0x159] sm:$0xff]  ;;  %v4673_v20 = vld [vmem:[#allocation2 + $0x2] sm:$0xff] }
 0x23a   : > { %v3870_v21 = vsel %vm3805_vm4, %v3772_v38, %v3838_v18  ;;  %v12956_v53 = vld [vmem:[#allocation2 + $0x1a] sm:$0xff]  ;;  %v8352_v18 = vld [vmem:[%s14228_s2 + $0x130] sm:$0xff] }
 0x23b   : > { %9937 = vmatmul.mubr.msk.f32.gmra.mxu1 %vm332_vm0, %v12909_v63  ;;  %10001 = vmatmul.mubr.msk.f32.gmra.mxu0 %vm332_vm0, %v12901_v57  ;;  %3948 = vst.msk [vmem:[#allocation2 + $0x181] sm:$0xff] %vm332_vm0, %v3870_v21 }
 0x23c   : > { %v12917_v4 = vld [vmem:[#allocation2 + $0x151] sm:$0xff] }
 0x23d   : > { %v12919_v55 = vld [vmem:[#allocation2 + $0x150] sm:$0xff]  ;;  %v12921_v47 = vld [vmem:[#allocation2 + $0x158] sm:$0xff]  ;;  %9939 = vmatprep.mubr.msk.f32.mxu1 %vm332_vm0, %v12917_v4 }
 0x23e   : > { %10003 = vmatprep.mubr.msk.f32.mxu0 %vm332_vm0, %v12919_v55  ;;  %v12944_v26 = vld [vmem:[#allocation2 + $0x171] sm:$0xff] }
 0x23f   : > { %9940 = vmatmul.mubr.msk.f32.gmra.mxu1 %vm332_vm0, %v12928_v28  ;;  %10004 = vmatmul.mubr.msk.f32.gmra.mxu0 %vm332_vm0, %v12921_v47  ;;  %v12934_v10 = vld [vmem:[#allocation2 + $0x169] sm:$0xff] }
 0x240   : > { %v12936_v36 = vld [vmem:[#allocation2 + $0x168] sm:$0xff]  ;;  %v12938_v29 = vld [vmem:[#allocation2 + $0x170] sm:$0xff]  ;;  %9942 = vmatprep.mubr.msk.f32.mxu1 %vm332_vm0, %v12934_v10 }
 0x241   : > { %10006 = vmatprep.mubr.msk.f32.mxu0 %vm332_vm0, %v12936_v36 }
 0x243   : > { %9943 = vmatmul.mubr.msk.f32.gmra.mxu1 %vm332_vm0, %v12944_v26  ;;  %10007 = vmatmul.mubr.msk.f32.gmra.mxu0 %vm332_vm0, %v12938_v29 }
 0x244   : > { %10089 = vmatprep.mubr.msk.f32.mxu0 %vm332_vm0, %v12542_v8  ;;  %10025 = vmatprep.mubr.msk.f32.mxu1 %vm332_vm0, %v4673_v20  ;;  %v8392_v8 = vld [vmem:[%s14228_s2 + $0x170] sm:$0xff]  ;;  %v14437_v20 = vld [vmem:[#allocation9_spill] sm:$0xff] }
 0x245   : > { %v9963_v38 = vpop.f32.mrf.mxu0 }
 0x247   : > { %10026 = vmatmul.mubr.msk.f32.vlgmr.msra.gmra.mxu1 %vm332_vm0, %v4674_v2  ;;  %10090 = vmatmul.mubr.msk.f32.vlgmr.msra.gmra.mxu0 %vm332_vm0, %v12544_v30  ;;  %v10500_v30 = vld [vmem:[%s14228_s2 + $0x138] sm:$0xff]  ;;  %v12974_v2 = vld [vmem:[#allocation2 + $0x22] sm:$0xff] }
 0x248   : > { %v9899_v0 = vpop.f32.mrf.mxu1  ;;  %10028 = vmatprep.mubr.msk.f32.mxu1 %vm332_vm0, %v12956_v53  ;;  %10092 = vmatprep.mubr.msk.f32.mxu0 %vm332_vm0, %v12579_v59  ;;  %v8351_v59 = vld [vmem:[%s14228_s2 + $0x128] sm:$0xff] }
 0x249   : > { %v12964_v21 = vadd.f32 %v9963_v38, %v9899_v0  ;;  %10138 = vmatpush3.msra.mxu1 %v10500_v30  ;;  %10202 = vmatpush3.msra.mxu0 %v14437_v20  ;;  %v12980_v0 = vld [vmem:[#allocation2 + $0x32] sm:$0xff]  ;;  %v8391_v38 = vld [vmem:[%s14228_s2 + $0x168] sm:$0xff]  ;;  %v12992_v30 = vld [vmem:[#allocation2 + $0x3a] sm:$0xff] }
 0x24a   : > { %10139 = vmatprep.subr.mxu1 %v8352_v18  ;;  %10203 = vmatprep.subr.mxu0 %v8392_v8  ;;  %v8350_v20 = vld [vmem:[%s14228_s2 + $0x120] sm:$0xff] }
 0x24b   : > { %10029 = vmatmul.mubr.msk.f32.gmra.mxu1 %vm332_vm0, %v12974_v2  ;;  %10093 = vmatmul.mubr.msk.f32.gmra.mxu0 %vm332_vm0, %v12581_v45  ;;  %v12998_v45 = vld [vmem:[#allocation2 + $0x4a] sm:$0xff] }
 0x24c   : > { %10031 = vmatprep.mubr.msk.f32.mxu1 %vm332_vm0, %v12980_v0  ;;  %10095 = vmatprep.mubr.msk.f32.mxu0 %vm332_vm0, %v12605_v1  ;;  %v8390_v1 = vld [vmem:[%s14228_s2 + $0x160] sm:$0xff] }
 0x24d   : > { %10140 = vmatpush3.msra.mxu1 %v8352_v18  ;;  %10204 = vmatpush3.msra.mxu0 %v8392_v8  ;;  %v13010_v18 = vld [vmem:[#allocation2 + $0x52] sm:$0xff] }
 0x24e   : > { %10141 = vmatprep.subr.mxu1 %v8351_v59  ;;  %10205 = vmatprep.subr.mxu0 %v8391_v38  ;;  %v8349_v8 = vld [vmem:[%s14228_s2 + $0x118] sm:$0xff] }
 0x24f   : > { %10032 = vmatmul.mubr.msk.f32.gmra.mxu1 %vm332_vm0, %v12992_v30  ;;  %10096 = vmatmul.mubr.msk.f32.gmra.mxu0 %vm332_vm0, %v12607_v16  ;;  %v13016_v16 = vld [vmem:[#allocation2 + $0x62] sm:$0xff] }
 0x250   : > { %10034 = vmatprep.mubr.msk.f32.mxu1 %vm332_vm0, %v12998_v45  ;;  %10098 = vmatprep.mubr.msk.f32.mxu0 %vm332_vm0, %v12645_v58  ;;  %v8389_v58 = vld [vmem:[%s14228_s2 + $0x158] sm:$0xff] }
 0x251   : > { %10142 = vmatpush3.msra.mxu1 %v8351_v59  ;;  %10206 = vmatpush3.msra.mxu0 %v8391_v38  ;;  %v13028_v59 = vld [vmem:[#allocation2 + $0x6a] sm:$0xff] }
 0x252   : > { %10143 = vmatprep.subr.mxu1 %v8350_v20  ;;  %10207 = vmatprep.subr.mxu0 %v8390_v1  ;;  %v8348_v38 = vld [vmem:[%s14228_s2 + $0x110] sm:$0xff] }
 0x253   : > { %10035 = vmatmul.mubr.msk.f32.gmra.mxu1 %vm332_vm0, %v13010_v18  ;;  %10099 = vmatmul.mubr.msk.f32.gmra.mxu0 %vm332_vm0, %v12647_v40  ;;  %v13034_v40 = vld [vmem:[#allocation2 + $0x7a] sm:$0xff] }
 0x254   : > { %10037 = vmatprep.mubr.msk.f32.mxu1 %vm332_vm0, %v13016_v16  ;;  %10101 = vmatprep.mubr.msk.f32.mxu0 %vm332_vm0, %v12672_v13  ;;  %v8388_v13 = vld [vmem:[%s14228_s2 + $0x150] sm:$0xff] }
 0x255   : > { %10144 = vmatpush3.msra.mxu1 %v8350_v20  ;;  %10208 = vmatpush3.msra.mxu0 %v8390_v1  ;;  %v13046_v20 = vld [vmem:[#allocation2 + $0x82] sm:$0xff] }
 0x256   : > { %10145 = vmatprep.subr.mxu1 %v8349_v8  ;;  %10209 = vmatprep.subr.mxu0 %v8389_v58  ;;  %v8347_v1 = vld [vmem:[%s14228_s2 + $0x108] sm:$0xff] }
 0x257   : > { %10038 = vmatmul.mubr.msk.f32.gmra.mxu1 %vm332_vm0, %v13028_v59  ;;  %10102 = vmatmul.mubr.msk.f32.gmra.mxu0 %vm332_vm0, %v12674_v27  ;;  %v13052_v27 = vld [vmem:[#allocation2 + $0x92] sm:$0xff] }
 0x258   : > { %10040 = vmatprep.mubr.msk.f32.mxu1 %vm332_vm0, %v13034_v40  ;;  %10104 = vmatprep.mubr.msk.f32.mxu0 %vm332_vm0, %v12710_v14  ;;  %v8387_v14 = vld [vmem:[%s14228_s2 + $0x148] sm:$0xff] }
 0x259   : > { %10146 = vmatpush3.msra.mxu1 %v8349_v8  ;;  %10210 = vmatpush3.msra.mxu0 %v8389_v58  ;;  %v13064_v8 = vld [vmem:[#allocation2 + $0x9a] sm:$0xff] }
 0x25a   : > { %10147 = vmatprep.subr.mxu1 %v8348_v38  ;;  %10211 = vmatprep.subr.mxu0 %v8388_v13  ;;  %v8346_v58 = vld [vmem:[%s14228_s2 + $0x100] sm:$0xff] }
 0x25b   : > { %10041 = vmatmul.mubr.msk.f32.gmra.mxu1 %vm332_vm0, %v13046_v20  ;;  %10105 = vmatmul.mubr.msk.f32.gmra.mxu0 %vm332_vm0, %v12712_v56  ;;  %v13070_v56 = vld [vmem:[#allocation2 + $0xaa] sm:$0xff] }
 0x25c   : > { %10043 = vmatprep.mubr.msk.f32.mxu1 %vm332_vm0, %v13052_v27  ;;  %10107 = vmatprep.mubr.msk.f32.mxu0 %vm332_vm0, %v12738_v3  ;;  %v8386_v3 = vld [vmem:[%s14228_s2 + $0x140] sm:$0xff] }
 0x25d   : > { %10148 = vmatpush3.msra.mxu1 %v8348_v38  ;;  %10212 = vmatpush3.msra.mxu0 %v8388_v13  ;;  %v13082_v38 = vld [vmem:[#allocation2 + $0xb2] sm:$0xff] }
 0x25e   : > { %10149 = vmatprep.subr.mxu1 %v8347_v1  ;;  %10213 = vmatprep.subr.mxu0 %v8387_v14  ;;  %v13093_v13 = vld [vmem:[%s14228_s2 + $0x1b8] sm:$0xff] }
 0x25f   : > { %10044 = vmatmul.mubr.msk.f32.gmra.mxu1 %vm332_vm0, %v13064_v8  ;;  %10108 = vmatmul.mubr.msk.f32.gmra.mxu0 %vm332_vm0, %v12740_v22  ;;  %v13088_v22 = vld [vmem:[#allocation2 + $0xc2] sm:$0xff] }
 0x260   : > { %10046 = vmatprep.mubr.msk.f32.mxu1 %vm332_vm0, %v13070_v56  ;;  %10110 = vmatprep.mubr.msk.f32.mxu0 %vm332_vm0, %v12775_v35  ;;  %v8473_v35 = vld [vmem:[%s14228_s2 + $0x1f8] sm:$0xff] }
 0x261   : > { %10150 = vmatpush3.msra.mxu1 %v8347_v1  ;;  %10214 = vmatpush3.msra.mxu0 %v8387_v14  ;;  %v13109_v1 = vld [vmem:[#allocation2 + $0xda] sm:$0xff]  ;;  %v13121_v14 = vld [vmem:[#allocation2 + $0xf2] sm:$0xff] }
 0x262   : > { %10151 = vmatprep.subr.mxu1 %v8346_v58  ;;  %10215 = vmatprep.subr.mxu0 %v8386_v3 }
 0x263   : > { %10047 = vmatmul.mubr.msk.f32.gmra.mxu1 %vm332_vm0, %v13082_v38  ;;  %10111 = vmatmul.mubr.msk.f32.gmra.mxu0 %vm332_vm0, %v12777_v11  ;;  %v13102_v11 = vld [vmem:[#allocation2 + $0xca] sm:$0xff] }
 0x264   : > { %10049 = vmatprep.mubr.msk.f32.mxu1 %vm332_vm0, %v13088_v22  ;;  %10113 = vmatprep.mubr.msk.f32.mxu0 %vm332_vm0, %v12799_v5  ;;  %v13115_v5 = vld [vmem:[#allocation2 + $0xe2] sm:$0xff] }
 0x265   : > { %10152 = vmatpush3.msra.mxu1 %v8346_v58  ;;  %10216 = vmatpush3.msra.mxu0 %v8386_v3  ;;  %v13183_v58 = vld [vmem:[#allocation2 + $0x180] sm:$0xff]  ;;  %v8472_v3 = vld [vmem:[%s14228_s2 + $0x1f0] sm:$0xff] }
 0x266   : > { %10265 = vmatprep.subr.mxu1 %v13093_v13  ;;  %10329 = vmatprep.subr.mxu0 %v8473_v35 }
 0x267   : > { %10050 = vmatmul.mubr.msk.f32.gmra.mxu1 %vm332_vm0, %v13102_v11  ;;  %10114 = vmatmul.mubr.msk.f32.gmra.mxu0 %vm332_vm0, %v12801_v41  ;;  %v13127_v41 = vld [vmem:[#allocation2 + $0xfa] sm:$0xff] }
 0x268   : > { %10052 = vmatprep.mubr.msk.f32.mxu1 %vm332_vm0, %v13109_v1  ;;  %10116 = vmatprep.mubr.msk.f32.mxu0 %vm332_vm0, %v12832_v7  ;;  %v13133_v7 = vld [vmem:[#allocation2 + $0x10a] sm:$0xff] }
 0x26b   : > { %10053 = vmatmul.mubr.msk.f32.gmra.mxu1 %vm332_vm0, %v13115_v5  ;;  %10117 = vmatmul.mubr.msk.f32.gmra.mxu0 %vm332_vm0, %v12834_v15  ;;  %v13139_v15 = vld [vmem:[#allocation2 + $0x112] sm:$0xff] }
 0x26c   : > { %10055 = vmatprep.mubr.msk.f32.mxu1 %vm332_vm0, %v13121_v14  ;;  %10119 = vmatprep.mubr.msk.f32.mxu0 %vm332_vm0, %v12854_v12  ;;  %v13145_v12 = vld [vmem:[#allocation2 + $0x122] sm:$0xff] }
 0x26f   : > { %10056 = vmatmul.mubr.msk.f32.gmra.mxu1 %vm332_vm0, %v13127_v41  ;;  %10120 = vmatmul.mubr.msk.f32.gmra.mxu0 %vm332_vm0, %v12856_v48  ;;  %v13151_v48 = vld [vmem:[#allocation2 + $0x12a] sm:$0xff] }
 0x270   : > { %10058 = vmatprep.mubr.msk.f32.mxu1 %vm332_vm0, %v13133_v7  ;;  %10122 = vmatprep.mubr.msk.f32.mxu0 %vm332_vm0, %v12878_v19  ;;  %v13157_v19 = vld [vmem:[#allocation2 + $0x13a] sm:$0xff] }
 0x273   : > { %10059 = vmatmul.mubr.msk.f32.gmra.mxu1 %vm332_vm0, %v13139_v15  ;;  %10123 = vmatmul.mubr.msk.f32.gmra.mxu0 %vm332_vm0, %v12880_v52  ;;  %v13163_v52 = vld [vmem:[#allocation2 + $0x142] sm:$0xff] }
 0x274   : > { %10061 = vmatprep.mubr.msk.f32.mxu1 %vm332_vm0, %v13145_v12  ;;  %10125 = vmatprep.mubr.msk.f32.mxu0 %vm332_vm0, %v12899_v23  ;;  %v13169_v23 = vld [vmem:[#allocation2 + $0x152] sm:$0xff] }
 0x277   : > { %10062 = vmatmul.mubr.msk.f32.gmra.mxu1 %vm332_vm0, %v13151_v48  ;;  %10126 = vmatmul.mubr.msk.f32.gmra.mxu0 %vm332_vm0, %v12901_v57  ;;  %v13175_v57 = vld [vmem:[#allocation2 + $0x15a] sm:$0xff] }
 0x278   : > { %10064 = vmatprep.mubr.msk.f32.mxu1 %vm332_vm0, %v13157_v19  ;;  %10128 = vmatprep.mubr.msk.f32.mxu0 %vm332_vm0, %v12919_v55  ;;  %v13181_v55 = vld [vmem:[#allocation2 + $0x16a] sm:$0xff] }
 0x27b   : > { %10065 = vmatmul.mubr.msk.f32.gmra.mxu1 %vm332_vm0, %v13163_v52  ;;  %10129 = vmatmul.mubr.msk.f32.gmra.mxu0 %vm332_vm0, %v12921_v47  ;;  %v13189_v47 = vld [vmem:[#allocation2 + $0x172] sm:$0xff] }
 0x27c   : > { %10067 = vmatprep.mubr.msk.f32.mxu1 %vm332_vm0, %v13169_v23  ;;  %10131 = vmatprep.mubr.msk.f32.mxu0 %vm332_vm0, %v12936_v36  ;;  %v13191_v36 = vld [vmem:[#allocation2 + $0x188] sm:$0xff] }
 0x27f   : > { %10068 = vmatmul.mubr.msk.f32.gmra.mxu1 %vm332_vm0, %v13175_v57  ;;  %10132 = vmatmul.mubr.msk.f32.gmra.mxu0 %vm332_vm0, %v12938_v29  ;;  %v8432_v29 = vld [vmem:[%s14228_s2 + $0x1b0] sm:$0xff] }
 0x280   : > { %10070 = vmatprep.mubr.msk.f32.mxu1 %vm332_vm0, %v13181_v55  ;;  %10134 = vmatprep.mubr.msk.f32.mxu0 %vm332_vm0, %v13183_v58 }
 0x283   : > { %10071 = vmatmul.mubr.msk.f32.gmra.mxu1 %vm332_vm0, %v13189_v47  ;;  %10135 = vmatmul.mubr.msk.f32.gmra.mxu0 %vm332_vm0, %v13191_v36 }
 0x284   : > { %10153 = vmatprep.mubr.msk.f32.mxu1 %vm332_vm0, %v12540_v25  ;;  %10217 = vmatprep.mubr.msk.f32.mxu0 %vm332_vm0, %v12956_v53  ;;  %v8431_v25 = vld [vmem:[%s14228_s2 + $0x1a8] sm:$0xff]  ;;  %v8428_v53 = vld [vmem:[%s14228_s2 + $0x190] sm:$0xff] }
 0x287   : > { %10154 = vmatmul.mubr.msk.f32.vlgmr.msra.gmra.mxu1 %vm332_vm0, %v12555_v46  ;;  %10218 = vmatmul.mubr.msk.f32.vlgmr.msra.gmra.mxu0 %vm332_vm0, %v12974_v2  ;;  %v8471_v46 = vld [vmem:[%s14228_s2 + $0x1e8] sm:$0xff]  ;;  %v8468_v2 = vld [vmem:[%s14228_s2 + $0x1d0] sm:$0xff] }
 0x288   : > { %10156 = vmatprep.mubr.msk.f32.mxu1 %vm332_vm0, %v12577_v37  ;;  %10220 = vmatprep.mubr.msk.f32.mxu0 %vm332_vm0, %v12980_v0  ;;  %v8430_v37 = vld [vmem:[%s14228_s2 + $0x1a0] sm:$0xff]  ;;  %v8427_v0 = vld [vmem:[%s14228_s2 + $0x188] sm:$0xff] }
 0x289   : > { %10266 = vmatpush3.msra.mxu1 %v13093_v13  ;;  %10330 = vmatpush3.msra.mxu0 %v8473_v35 }
 0x28a   : > { %10267 = vmatprep.subr.mxu1 %v8432_v29  ;;  %10331 = vmatprep.subr.mxu0 %v8472_v3 }
 0x28b   : > { %10157 = vmatmul.mubr.msk.f32.gmra.mxu1 %vm332_vm0, %v12592_v32  ;;  %10221 = vmatmul.mubr.msk.f32.gmra.mxu0 %vm332_vm0, %v12992_v30  ;;  %v8470_v32 = vld [vmem:[%s14228_s2 + $0x1e0] sm:$0xff] }
 0x28c   : > { %10159 = vmatprep.mubr.msk.f32.mxu1 %vm332_vm0, %v12603_v51  ;;  %10223 = vmatprep.mubr.msk.f32.mxu0 %vm332_vm0, %v12998_v45  ;;  %v8429_v51 = vld [vmem:[%s14228_s2 + $0x198] sm:$0xff]  ;;  %v8426_v30 = vld [vmem:[%s14228_s2 + $0x180] sm:$0xff] }
 0x28d   : > { %10268 = vmatpush3.msra.mxu1 %v8432_v29  ;;  %10332 = vmatpush3.msra.mxu0 %v8472_v3  ;;  %v8513_v45 = vld [vmem:[%s14228_s2 + $0x238] sm:$0xff] }
 0x28e   : > { %10269 = vmatprep.subr.mxu1 %v8431_v25  ;;  %10333 = vmatprep.subr.mxu0 %v8471_v46 }
 0x28f   : > { %10160 = vmatmul.mubr.msk.f32.gmra.mxu1 %vm332_vm0, %v12623_v17  ;;  %10224 = vmatmul.mubr.msk.f32.gmra.mxu0 %vm332_vm0, %v13010_v18  ;;  %v8469_v17 = vld [vmem:[%s14228_s2 + $0x1d8] sm:$0xff] }
 0x290   : > { %10162 = vmatprep.mubr.msk.f32.mxu1 %vm332_vm0, %v12643_v42  ;;  %10226 = vmatprep.mubr.msk.f32.mxu0 %vm332_vm0, %v13016_v16  ;;  %v14438_v42 = vld [vmem:[#allocation10_spill] sm:$0xff]  ;;  %v6647_v18 = vld [vmem:[#allocation2 + $0x51] sm:$0xff] }
 0x291   : > { %10270 = vmatpush3.msra.mxu1 %v8431_v25  ;;  %10334 = vmatpush3.msra.mxu0 %v8471_v46  ;;  %v6259_v46 = vld [vmem:[#allocation2 + $0x98] sm:$0xff] }
 0x292   : > { %10271 = vmatprep.subr.mxu1 %v8430_v37  ;;  %10335 = vmatprep.subr.mxu0 %v8470_v32 }
 0x293   : > { %10163 = vmatmul.mubr.msk.f32.gmra.mxu1 %vm332_vm0, %v12658_v62  ;;  %10227 = vmatmul.mubr.msk.f32.gmra.mxu0 %vm332_vm0, %v13028_v59  ;;  %v14439_v62 = vld [vmem:[#allocation7_spill] sm:$0xff]  ;;  %v6254_v59 = vld [vmem:[#allocation2 + $0x60] sm:$0xff] }
 0x294   : > { %10165 = vmatprep.mubr.msk.f32.mxu1 %vm332_vm0, %v14438_v42  ;;  %10229 = vmatprep.mubr.msk.f32.mxu0 %vm332_vm0, %v13034_v40  ;;  %v6648_v40 = vld [vmem:[#allocation2 + $0x61] sm:$0xff]  ;;  %v6654_v42 = vld [vmem:[#allocation2 + $0xa9] sm:$0xff] }
 0x295   : > { %10272 = vmatpush3.msra.mxu1 %v8430_v37  ;;  %10336 = vmatpush3.msra.mxu0 %v8470_v32  ;;  %v6653_v37 = vld [vmem:[#allocation2 + $0x99] sm:$0xff] }
 0x296   : > { %10273 = vmatprep.subr.mxu1 %v8429_v51  ;;  %10337 = vmatprep.subr.mxu0 %v8469_v17 }
 0x297   : > { %10166 = vmatmul.mubr.msk.f32.gmra.mxu1 %vm332_vm0, %v14439_v62  ;;  %10230 = vmatmul.mubr.msk.f32.gmra.mxu0 %vm332_vm0, %v13046_v20  ;;  %v8511_v20 = vld [vmem:[%s14228_s2 + $0x228] sm:$0xff]  ;;  %v8508_v62 = vld [vmem:[%s14228_s2 + $0x210] sm:$0xff] }
 0x298   : > { %10168 = vmatprep.mubr.msk.f32.mxu1 %vm332_vm0, %v12708_v61  ;;  %10232 = vmatprep.mubr.msk.f32.mxu0 %vm332_vm0, %v13052_v27  ;;  %v8467_v61 = vld [vmem:[%s14228_s2 + $0x1c8] sm:$0xff] }
 0x299   : > { %10274 = vmatpush3.msra.mxu1 %v8429_v51  ;;  %10338 = vmatpush3.msra.mxu0 %v8469_v17  ;;  %v6260_v17 = vld [vmem:[#allocation2 + $0xa8] sm:$0xff] }
 0x29a   : > { %10275 = vmatprep.subr.mxu1 %v8428_v53  ;;  %10339 = vmatprep.subr.mxu0 %v8468_v2 }
 0x29b   : > { %10169 = vmatmul.mubr.msk.f32.gmra.mxu1 %vm332_vm0, %v12723_v34  ;;  %10233 = vmatmul.mubr.msk.f32.gmra.mxu0 %vm332_vm0, %v13064_v8  ;;  %v14440_v34 = vld [vmem:[#allocation20_spill] sm:$0xff] }
 0x29c   : > { %10171 = vmatprep.mubr.msk.f32.mxu1 %vm332_vm0, %v12736_v9  ;;  %10235 = vmatprep.mubr.msk.f32.mxu0 %vm332_vm0, %v13070_v56  ;;  %v8466_v9 = vld [vmem:[%s14228_s2 + $0x1c0] sm:$0xff] }
 0x29d   : > { %10276 = vmatpush3.msra.mxu1 %v8428_v53  ;;  %10340 = vmatpush3.msra.mxu0 %v8468_v2 }
 0x29e   : > { %10277 = vmatprep.subr.mxu1 %v8427_v0  ;;  %10341 = vmatprep.subr.mxu0 %v8467_v61 }
 0x29f   : > { %10172 = vmatmul.mubr.msk.f32.gmra.mxu1 %vm332_vm0, %v14440_v34  ;;  %10236 = vmatmul.mubr.msk.f32.gmra.mxu0 %vm332_vm0, %v13082_v38  ;;  %v6255_v38 = vld [vmem:[#allocation2 + $0x68] sm:$0xff]  ;;  %v6261_v34 = vld [vmem:[#allocation2 + $0xb0] sm:$0xff] }
 0x2a0   : > { %10174 = vmatprep.mubr.msk.f32.mxu1 %vm332_vm0, %v12773_v50  ;;  %10238 = vmatprep.mubr.msk.f32.mxu0 %vm332_vm0, %v13088_v22  ;;  %v13363_v50 = vld [vmem:[#allocation2 + $0x181] sm:$0xff]  ;;  %v6649_v22 = vld [vmem:[#allocation2 + $0x69] sm:$0xff] }
 0x2a1   : > { %10278 = vmatpush3.msra.mxu1 %v8427_v0  ;;  %10342 = vmatpush3.msra.mxu0 %v8467_v61 }
 0x2a2   : > { %10279 = vmatprep.subr.mxu1 %v8426_v30  ;;  %10343 = vmatprep.subr.mxu0 %v8466_v9 }
 0x2a3   : > { %10175 = vmatmul.mubr.msk.f32.gmra.mxu1 %vm332_vm0, %v12786_v39  ;;  %10239 = vmatmul.mubr.msk.f32.gmra.mxu0 %vm332_vm0, %v13102_v11  ;;  %v13365_v39 = vld [vmem:[#allocation2 + $0x182] sm:$0xff]  ;;  %v6256_v11 = vld [vmem:[#allocation2 + $0x78] sm:$0xff] }
 0x2a4   : > { %10177 = vmatprep.mubr.msk.f32.mxu1 %vm332_vm0, %v12797_v24  ;;  %10241 = vmatprep.mubr.msk.f32.mxu0 %vm332_vm0, %v13109_v1  ;;  %v13371_v24 = vld [vmem:[#allocation2 + $0x189] sm:$0xff]  ;;  %v6650_v1 = vld [vmem:[#allocation2 + $0x79] sm:$0xff] }
 0x2a5   : > { %10280 = vmatpush3.msra.mxu1 %v8426_v30  ;;  %10344 = vmatpush3.msra.mxu0 %v8466_v9  ;;  %v6655_v30 = vld [vmem:[#allocation2 + $0xb1] sm:$0xff] }
 0x2a6   : > { %10393 = vmatprep.subr.mxu1 %v8513_v45 }
 0x2a7   : > { %10178 = vmatmul.mubr.msk.f32.gmra.mxu1 %vm332_vm0, %v12815_v33  ;;  %10242 = vmatmul.mubr.msk.f32.gmra.mxu0 %vm332_vm0, %v13115_v5  ;;  %v13373_v33 = vld [vmem:[#allocation2 + $0x18a] sm:$0xff]  ;;  %v8510_v5 = vld [vmem:[%s14228_s2 + $0x220] sm:$0xff] }
 0x2a8   : > { %10180 = vmatprep.mubr.msk.f32.mxu1 %vm332_vm0, %v12830_v60  ;;  %10244 = vmatprep.mubr.msk.f32.mxu0 %vm332_vm0, %v13121_v14  ;;  %v6250_v60 = vld [vmem:[#allocation2 + $0x30] sm:$0xff] }
 0x2ab   : > { %10181 = vmatmul.mubr.msk.f32.gmra.mxu1 %vm332_vm0, %v12843_v43  ;;  %10245 = vmatmul.mubr.msk.f32.gmra.mxu0 %vm332_vm0, %v13127_v41  ;;  %v6644_v43 = vld [vmem:[#allocation2 + $0x31] sm:$0xff] }
 0x2ac   : > { %10183 = vmatprep.mubr.msk.f32.mxu1 %vm332_vm0, %v12852_v49  ;;  %10247 = vmatprep.mubr.msk.f32.mxu0 %vm332_vm0, %v13133_v7  ;;  %v6251_v49 = vld [vmem:[#allocation2 + $0x38] sm:$0xff] }
 0x2af   : > { %10184 = vmatmul.mubr.msk.f32.gmra.mxu1 %vm332_vm0, %v12866_v44  ;;  %10248 = vmatmul.mubr.msk.f32.gmra.mxu0 %vm332_vm0, %v13139_v15  ;;  %v6645_v44 = vld [vmem:[#allocation2 + $0x39] sm:$0xff] }
 0x2b0   : > { %10186 = vmatprep.mubr.msk.f32.mxu1 %vm332_vm0, %v12876_v31  ;;  %10250 = vmatprep.mubr.msk.f32.mxu0 %vm332_vm0, %v13145_v12  ;;  %v6252_v31 = vld [vmem:[#allocation2 + $0x48] sm:$0xff]  ;;  %v6257_v12 = vld [vmem:[#allocation2 + $0x80] sm:$0xff] }
 0x2b3   : > { %10187 = vmatmul.mubr.msk.f32.gmra.mxu1 %vm332_vm0, %v12889_v54  ;;  %10251 = vmatmul.mubr.msk.f32.gmra.mxu0 %vm332_vm0, %v13151_v48  ;;  %v6646_v54 = vld [vmem:[#allocation2 + $0x49] sm:$0xff]  ;;  %v6651_v48 = vld [vmem:[#allocation2 + $0x81] sm:$0xff] }
 0x2b4   : > { %10189 = vmatprep.mubr.msk.f32.mxu1 %vm332_vm0, %v12897_v6  ;;  %10253 = vmatprep.mubr.msk.f32.mxu0 %vm332_vm0, %v13157_v19  ;;  %v8512_v6 = vld [vmem:[%s14228_s2 + $0x230] sm:$0xff] }
 0x2b7   : > { %10190 = vmatmul.mubr.msk.f32.gmra.mxu1 %vm332_vm0, %v12909_v63  ;;  %10254 = vmatmul.mubr.msk.f32.gmra.mxu0 %vm332_vm0, %v13163_v52  ;;  %v13386_v63 = vpop.f32.mrf.mxu1 }
 0x2b8   : > { %10192 = vmatprep.mubr.msk.f32.mxu1 %vm332_vm0, %v12917_v4  ;;  %10256 = vmatprep.mubr.msk.f32.mxu0 %vm332_vm0, %v13169_v23  ;;  %v13388_v4 = vpop.f32.mrf.mxu0  ;;  %v6258_v23 = vld [vmem:[#allocation2 + $0x90] sm:$0xff] }
 0x2bb   : > { %10193 = vmatmul.mubr.msk.f32.gmra.mxu1 %vm332_vm0, %v12928_v28  ;;  %10257 = vmatmul.mubr.msk.f32.gmra.mxu0 %vm332_vm0, %v13175_v57  ;;  %v6652_v57 = vld [vmem:[#allocation2 + $0x91] sm:$0xff] }
 0x2bc   : > { %10195 = vmatprep.mubr.msk.f32.mxu1 %vm332_vm0, %v12934_v10  ;;  %10259 = vmatprep.mubr.msk.f32.mxu0 %vm332_vm0, %v13181_v55  ;;  %v8509_v55 = vld [vmem:[%s14228_s2 + $0x218] sm:$0xff] }
 0x2bf   : > { %10196 = vmatmul.mubr.msk.f32.gmra.mxu1 %vm332_vm0, %v12944_v26  ;;  %10260 = vmatmul.mubr.msk.f32.gmra.mxu0 %vm332_vm0, %v13189_v47  ;;  %v6253_v26 = vld [vmem:[#allocation2 + $0x50] sm:$0xff] }
 0x2c0   : > { %10198 = vmatprep.mubr.msk.f32.mxu1 %vm332_vm0, %v13363_v50  ;;  %10262 = vmatprep.mubr.msk.f32.mxu0 %vm332_vm0, %v13365_v39 }
 0x2c3   : > { %10199 = vmatmul.mubr.msk.f32.gmra.mxu1 %vm332_vm0, %v13371_v24  ;;  %10263 = vmatmul.mubr.msk.f32.gmra.mxu0 %vm332_vm0, %v13373_v33 }
 0x2c4   : > { %10281 = vmatprep.mubr.msk.f32.mxu1 %vm332_vm0, %v6250_v60  ;;  %10345 = vmatprep.mubr.msk.f32.mxu0 %vm332_vm0, %v6644_v43  ;;  %v6262_v60 = vld [vmem:[#allocation2 + $0xc0] sm:$0xff] }
 0x2c5   : > { %v6656_v43 = vld [vmem:[#allocation2 + $0xc1] sm:$0xff] }
 0x2c7   : > { %10282 = vmatmul.mubr.msk.f32.vlgmr.msra.gmra.mxu1 %vm332_vm0, %v6251_v49  ;;  %10346 = vmatmul.mubr.msk.f32.vlgmr.msra.gmra.mxu0 %vm332_vm0, %v6645_v44  ;;  %v8507_v49 = vld [vmem:[%s14228_s2 + $0x208] sm:$0xff] }
 0x2c8   : > { %10284 = vmatprep.mubr.msk.f32.mxu1 %vm332_vm0, %v6252_v31  ;;  %10348 = vmatprep.mubr.msk.f32.mxu0 %vm332_vm0, %v6646_v54  ;;  %v9902_v28 = vpop.f32.mrf.mxu1 }
 0x2c9   : > { %10394 = vmatpush3.msra.mxu1 %v8513_v45  ;;  %v9966_v10 = vpop.f32.mrf.mxu0 }
 0x2ca   : > { %10395 = vmatprep.subr.mxu1 %v8512_v6  ;;  %v13392_v16 = vadd.f32 %v9966_v10, %v9902_v28  ;;  %v4203_v27 = vpop.f32.mrf.mxu1  ;;  %v6263_v28 = vld [vmem:[#allocation2 + $0xc8] sm:$0xff] }
 0x2cb   : > { %10285 = vmatmul.mubr.msk.f32.gmra.mxu1 %vm332_vm0, %v6253_v26  ;;  %10349 = vmatmul.mubr.msk.f32.gmra.mxu0 %vm332_vm0, %v6647_v18  ;;  %v4524_v8 = vpop.f32.mrf.mxu0  ;;  %v6657_v10 = vld [vmem:[#allocation2 + $0xc9] sm:$0xff] }
 0x2cc   : > { %10287 = vmatprep.mubr.msk.f32.mxu1 %vm332_vm0, %v6254_v59  ;;  %10351 = vmatprep.mubr.msk.f32.mxu0 %vm332_vm0, %v6648_v40  ;;  %v13401_v56 = vadd.f32 %v4524_v8, %v4203_v27  ;;  %v6264_v59 = vld [vmem:[#allocation2 + $0xd8] sm:$0xff] }
 0x2cd   : > { %10396 = vmatpush3.msra.mxu1 %v8512_v6  ;;  %v9905_v13 = vpop.f32.mrf.mxu1  ;;  %v6658_v40 = vld [vmem:[#allocation2 + $0xd9] sm:$0xff] }
 0x2ce   : > { %10397 = vmatprep.subr.mxu1 %v8511_v20  ;;  %v9969_v35 = vpop.f32.mrf.mxu0 }
 0x2cf   : > { %10288 = vmatmul.mubr.msk.f32.gmra.mxu1 %vm332_vm0, %v6255_v38  ;;  %10352 = vmatmul.mubr.msk.f32.gmra.mxu0 %vm332_vm0, %v6649_v22  ;;  %v13408_v14 = vadd.f32 %v9969_v35, %v9905_v13  ;;  %v4213_v41 = vpop.f32.mrf.mxu1  ;;  %v6265_v13 = vld [vmem:[#allocation2 + $0xe0] sm:$0xff] }
 0x2d0   : > { %10290 = vmatprep.mubr.msk.f32.mxu1 %vm332_vm0, %v6256_v11  ;;  %10354 = vmatprep.mubr.msk.f32.mxu0 %vm332_vm0, %v6650_v1  ;;  %v4534_v7 = vpop.f32.mrf.mxu0  ;;  %v6659_v35 = vld [vmem:[#allocation2 + $0xe1] sm:$0xff] }
 0x2d1   : > { %10398 = vmatpush3.msra.mxu1 %v8511_v20  ;;  %v13412_v15 = vadd.f32 %v4534_v7, %v4213_v41  ;;  %v9908_v19 = vpop.f32.mrf.mxu1  ;;  %v8506_v20 = vld [vmem:[%s14228_s2 + $0x200] sm:$0xff]  ;;  %v6660_v41 = vld [vmem:[#allocation2 + $0xf1] sm:$0xff] }
 0x2d2   : > { %10399 = vmatprep.subr.mxu1 %v8510_v5  ;;  %v9972_v52 = vpop.f32.mrf.mxu0 }
 0x2d3   : > { %10291 = vmatmul.mubr.msk.f32.gmra.mxu1 %vm332_vm0, %v6257_v12  ;;  %10355 = vmatmul.mubr.msk.f32.gmra.mxu0 %vm332_vm0, %v6651_v48  ;;  %v13419_v47 = vadd.f32 %v9972_v52, %v9908_v19  ;;  %v4223_v29 = vpop.f32.mrf.mxu1  ;;  %v6267_v52 = vld [vmem:[#allocation2 + $0xf8] sm:$0xff] }
 0x2d4   : > { %10293 = vmatprep.mubr.msk.f32.mxu1 %vm332_vm0, %v6258_v23  ;;  %10357 = vmatprep.mubr.msk.f32.mxu0 %vm332_vm0, %v6652_v57  ;;  %v4544_v3 = vpop.f32.mrf.mxu0  ;;  %v6661_v23 = vld [vmem:[#allocation2 + $0xf9] sm:$0xff] }
 0x2d5   : > { %10400 = vmatpush3.msra.mxu1 %v8510_v5  ;;  %v13423_v25 = vadd.f32 %v4544_v3, %v4223_v29  ;;  %v9911_v32 = vpop.f32.mrf.mxu1  ;;  %v6266_v5 = vld [vmem:[#allocation2 + $0xf0] sm:$0xff]  ;;  %v6268_v29 = vld [vmem:[#allocation2 + $0x108] sm:$0xff] }
 0x2d6   : > { %10401 = vmatprep.subr.mxu1 %v8509_v55  ;;  %v9975_v51 = vpop.f32.mrf.mxu0  ;;  %v6662_v3 = vld [vmem:[#allocation2 + $0x109] sm:$0xff] }
 0x2d7   : > { %10294 = vmatmul.mubr.msk.f32.gmra.mxu1 %vm332_vm0, %v6259_v46  ;;  %10358 = vmatmul.mubr.msk.f32.gmra.mxu0 %vm332_vm0, %v6653_v37  ;;  %v13430_v53 = vadd.f32 %v9975_v51, %v9911_v32  ;;  %v4233_v2 = vpop.f32.mrf.mxu1 }
 0x2d8   : > { %10296 = vmatprep.mubr.msk.f32.mxu1 %vm332_vm0, %v6260_v17  ;;  %10360 = vmatprep.mubr.msk.f32.mxu0 %vm332_vm0, %v6654_v42  ;;  %v4554_v0 = vpop.f32.mrf.mxu0  ;;  %v6269_v17 = vld [vmem:[#allocation2 + $0x110] sm:$0xff] }
 0x2d9   : > { %10402 = vmatpush3.msra.mxu1 %v8509_v55  ;;  %v13434_v61 = vadd.f32 %v4554_v0, %v4233_v2  ;;  %v6663_v42 = vld [vmem:[#allocation2 + $0x111] sm:$0xff]  ;;  %v6270_v0 = vld [vmem:[#allocation2 + $0x120] sm:$0xff] }
 0x2da   : > { %10403 = vmatprep.subr.mxu1 %v8508_v62  ;;  %v9914_v9 = vpop.f32.mrf.mxu1  ;;  %v9978_v45 = vpop.f32.mrf.mxu0 }
 0x2db   : > { %10297 = vmatmul.mubr.msk.f32.gmra.mxu1 %vm332_vm0, %v6261_v34  ;;  %10361 = vmatmul.mubr.msk.f32.gmra.mxu0 %vm332_vm0, %v6655_v30  ;;  %v13441_v44 = vadd.f32 %v9978_v45, %v9914_v9  ;;  %v6664_v34 = vld [vmem:[#allocation2 + $0x121] sm:$0xff] }
 0x2dc   : > { %10299 = vmatprep.mubr.msk.f32.mxu1 %vm332_vm0, %v6262_v60  ;;  %10363 = vmatprep.mubr.msk.f32.mxu0 %vm332_vm0, %v6656_v43  ;;  %v4243_v31 = vpop.f32.mrf.mxu1  ;;  %v4564_v54 = vpop.f32.mrf.mxu0  ;;  %v6271_v43 = vld [vmem:[#allocation2 + $0x128] sm:$0xff] }
 0x2dd   : > { %10404 = vmatpush3.msra.mxu1 %v8508_v62  ;;  %v13445_v6 = vadd.f32 %v4564_v54, %v4243_v31 }
 0x2de   : > { %10405 = vmatprep.subr.mxu1 %v8507_v49  ;;  %v9917_v26 = vpop.f32.mrf.mxu1  ;;  %v9981_v18 = vpop.f32.mrf.mxu0 }
 0x2df   : > { %10300 = vmatmul.mubr.msk.f32.gmra.mxu1 %vm332_vm0, %v6263_v28  ;;  %10364 = vmatmul.mubr.msk.f32.gmra.mxu0 %vm332_vm0, %v6657_v10  ;;  %v13452_v27 = vadd.f32 %v9981_v18, %v9917_v26  ;;  %v6272_v28 = vld [vmem:[#allocation2 + $0x138] sm:$0xff] }
 0x2e0   : > { %10302 = vmatprep.mubr.msk.f32.mxu1 %vm332_vm0, %v6264_v59  ;;  %10366 = vmatprep.mubr.msk.f32.mxu0 %vm332_vm0, %v6658_v40  ;;  %v4253_v8 = vpop.f32.mrf.mxu1  ;;  %v4574_v38 = vpop.f32.mrf.mxu0  ;;  %v6666_v10 = vld [vmem:[#allocation2 + $0x139] sm:$0xff] }
 0x2e1   : > { %10406 = vmatpush3.msra.mxu1 %v8507_v49  ;;  %v13456_v22 = vadd.f32 %v4574_v38, %v4253_v8  ;;  %v6665_v49 = vld [vmem:[#allocation2 + $0x129] sm:$0xff]  ;;  %v6667_v8 = vld [vmem:[#allocation2 + $0x141] sm:$0xff] }
 0x2e2   : > { %10407 = vmatprep.subr.mxu1 %v8506_v20  ;;  %v9920_v11 = vpop.f32.mrf.mxu1 }
 0x2e3   : > { %v9984_v1 = vpop.f32.mrf.mxu0  ;;  %10303 = vmatmul.mubr.msk.f32.gmra.mxu1 %vm332_vm0, %v6265_v13  ;;  %10367 = vmatmul.mubr.msk.f32.gmra.mxu0 %vm332_vm0, %v6659_v35  ;;  %v6274_v35 = vld [vmem:[#allocation2 + $0x150] sm:$0xff] }
 0x2e4   : > { %v13460_v7 = vadd.f32 %v9984_v1, %v9920_v11  ;;  %10305 = vmatprep.mubr.msk.f32.mxu1 %vm332_vm0, %v6266_v5  ;;  %10369 = vmatprep.mubr.msk.f32.mxu0 %vm332_vm0, %v6660_v41  ;;  %v4263_v12 = vpop.f32.mrf.mxu1  ;;  %v6668_v11 = vld [vmem:[#allocation2 + $0x151] sm:$0xff] }
 0x2e5   : > { %v4584_v48 = vpop.f32.mrf.mxu0  ;;  %10408 = vmatpush3.msra.mxu1 %v8506_v20  ;;  %v6273_v20 = vld [vmem:[#allocation2 + $0x140] sm:$0xff] }
 0x2e6   : > { %v13464_v19 = vadd.f32 %v4584_v48, %v4263_v12  ;;  %v6275_v48 = vld [vmem:[#allocation2 + $0x158] sm:$0xff] }
 0x2e7   : > { %v9923_v57 = vpop.f32.mrf.mxu1  ;;  %v9987_v55 = vpop.f32.mrf.mxu0  ;;  %10306 = vmatmul.mubr.msk.f32.gmra.mxu1 %vm332_vm0, %v6267_v52  ;;  %10370 = vmatmul.mubr.msk.f32.gmra.mxu0 %vm332_vm0, %v6661_v23  ;;  %v6669_v52 = vld [vmem:[#allocation2 + $0x159] sm:$0xff] }
 0x2e8   : > { %v13468_v46 = vadd.f32 %v9987_v55, %v9923_v57  ;;  %10308 = vmatprep.mubr.msk.f32.mxu1 %vm332_vm0, %v6268_v29  ;;  %10372 = vmatprep.mubr.msk.f32.mxu0 %vm332_vm0, %v6662_v3  ;;  %v6276_v55 = vld [vmem:[#allocation2 + $0x168] sm:$0xff] }
 0x2e9   : > { %v4273_v37 = vpop.f32.mrf.mxu1  ;;  %v4594_v32 = vpop.f32.mrf.mxu0  ;;  %v6670_v29 = vld [vmem:[#allocation2 + $0x169] sm:$0xff] }
 0x2ea   : > { %v13472_v51 = vadd.f32 %v4594_v32, %v4273_v37 }
 0x2eb   : > { %v9926_v62 = vpop.f32.mrf.mxu1  ;;  %v9990_v2 = vpop.f32.mrf.mxu0  ;;  %10309 = vmatmul.mubr.msk.f32.gmra.mxu1 %vm332_vm0, %v6269_v17  ;;  %10373 = vmatmul.mubr.msk.f32.gmra.mxu0 %vm332_vm0, %v6663_v42  ;;  %v6277_v42 = vld [vmem:[#allocation2 + $0x170] sm:$0xff] }
 0x2ec   : > { %v13476_v30 = vadd.f32 %v9990_v2, %v9926_v62  ;;  %10311 = vmatprep.mubr.msk.f32.mxu1 %vm332_vm0, %v6270_v0  ;;  %10375 = vmatprep.mubr.msk.f32.mxu0 %vm332_vm0, %v6664_v34  ;;  %v6671_v62 = vld [vmem:[#allocation2 + $0x171] sm:$0xff] }
 0x2ed   : > { %v4283_v9 = vpop.f32.mrf.mxu1  ;;  %v4604_v45 = vpop.f32.mrf.mxu0 }
 0x2ee   : > { %v13480_v60 = vadd.f32 %v4604_v45, %v4283_v9 }
 0x2ef   : > { %v9929_v31 = vpop.f32.mrf.mxu1  ;;  %v9993_v54 = vpop.f32.mrf.mxu0  ;;  %10312 = vmatmul.mubr.msk.f32.gmra.mxu1 %vm332_vm0, %v6271_v43  ;;  %10376 = vmatmul.mubr.msk.f32.gmra.mxu0 %vm332_vm0, %v6665_v49  ;;  %v6280_v43 = vld [vmem:[#allocation2 + $0x198] sm:$0xff] }
 0x2f0   : > { %v13484_v26 = vadd.f32 %v9993_v54, %v9929_v31  ;;  %10314 = vmatprep.mubr.msk.f32.mxu1 %vm332_vm0, %v6272_v28  ;;  %10378 = vmatprep.mubr.msk.f32.mxu0 %vm332_vm0, %v6666_v10  ;;  %v6674_v49 = vld [vmem:[#allocation2 + $0x199] sm:$0xff] }
 0x2f1   : > { %v4293_v18 = vpop.f32.mrf.mxu1  ;;  %v4614_v59 = vpop.f32.mrf.mxu0 }
 0x2f2   : > { %v13488_v40 = vadd.f32 %v4614_v59, %v4293_v18 }
 0x2f3   : > { %v9932_v38 = vpop.f32.mrf.mxu1  ;;  %v9996_v13 = vpop.f32.mrf.mxu0  ;;  %10315 = vmatmul.mubr.msk.f32.gmra.mxu1 %vm332_vm0, %v6273_v20  ;;  %10379 = vmatmul.mubr.msk.f32.gmra.mxu0 %vm332_vm0, %v6667_v8 }
 0x2f4   : > { %v13492_v1 = vadd.f32 %v9996_v13, %v9932_v38  ;;  %10317 = vmatprep.mubr.msk.f32.mxu1 %vm332_vm0, %v6274_v35  ;;  %10381 = vmatprep.mubr.msk.f32.mxu0 %vm332_vm0, %v6668_v11 }
 0x2f5   : > { %v4303_v5 = vpop.f32.mrf.mxu1  ;;  %v4624_v41 = vpop.f32.mrf.mxu0 }
 0x2f6   : > { %v13496_v12 = vadd.f32 %v4624_v41, %v4303_v5  ;;  %v7039_v5 = vld [vmem:[#allocation2 + $0x3a] sm:$0xff] }
 0x2f7   : > { %v9935_v23 = vpop.f32.mrf.mxu1  ;;  %v9999_v57 = vpop.f32.mrf.mxu0  ;;  %10318 = vmatmul.mubr.msk.f32.gmra.mxu1 %vm332_vm0, %v6275_v48  ;;  %10382 = vmatmul.mubr.msk.f32.gmra.mxu0 %vm332_vm0, %v6669_v52  ;;  %v7040_v52 = vld [vmem:[#allocation2 + $0x4a] sm:$0xff] }
 0x2f8   : > { %v13500_v3 = vadd.f32 %v9999_v57, %v9935_v23  ;;  %10320 = vmatprep.mubr.msk.f32.mxu1 %vm332_vm0, %v6276_v55  ;;  %10384 = vmatprep.mubr.msk.f32.mxu0 %vm332_vm0, %v6670_v29  ;;  %v4515_v23 = vadd.f32 %v13388_v4, %v13386_v63 }
 0x2f9   : > { %v4313_v37 = vpop.f32.mrf.mxu1  ;;  %v4634_v32 = vpop.f32.mrf.mxu0 }
 0x2fa   : > { %v13504_v17 = vadd.f32 %v4634_v32, %v4313_v37 }
 0x2fb   : > { %v9938_v2 = vpop.f32.mrf.mxu1  ;;  %v10002_v0 = vpop.f32.mrf.mxu0  ;;  %10321 = vmatmul.mubr.msk.f32.gmra.mxu1 %vm332_vm0, %v6277_v42  ;;  %10385 = vmatmul.mubr.msk.f32.gmra.mxu0 %vm332_vm0, %v6671_v62  ;;  %v7041_v42 = vld [vmem:[#allocation2 + $0x52] sm:$0xff] }
 0x2fc   : > { %v13508_v34 = vadd.f32 %v10002_v0, %v9938_v2  ;;  %10323 = vmatprep.mubr.msk.f32.mxu1 %vm332_vm0, %v13183_v58  ;;  %10387 = vmatprep.mubr.msk.f32.mxu0 %vm332_vm0, %v13363_v50  ;;  %v6281_v58 = vld [vmem:[#allocation2 + $0x1a0] sm:$0xff] }
 0x2fd   : > { %v4323_v9 = vpop.f32.mrf.mxu1  ;;  %v4644_v45 = vpop.f32.mrf.mxu0  ;;  %v6675_v50 = vld [vmem:[#allocation2 + $0x1a1] sm:$0xff] }
 0x2fe   : > { %v13514_v31 = vadd.f32 %v4644_v45, %v4323_v9  ;;  %v7042_v0 = vld [vmem:[#allocation2 + $0x62] sm:$0xff] }
 0x2ff   : > { %v9941_v54 = vpop.f32.mrf.mxu1  ;;  %v10005_v28 = vpop.f32.mrf.mxu0  ;;  %10324 = vmatmul.mubr.msk.f32.gmra.mxu1 %vm332_vm0, %v13191_v36  ;;  %10388 = vmatmul.mubr.msk.f32.gmra.mxu0 %vm332_vm0, %v13371_v24  ;;  %v7038_v36 = vld [vmem:[#allocation2 + $0x32] sm:$0xff] }
 0x300   : > { %v13520_v10 = vadd.f32 %v10005_v28, %v9941_v54  ;;  %10326 = vmatprep.mubr.msk.f32.mxu1 %vm332_vm0, %v6280_v43  ;;  %10390 = vmatprep.mubr.msk.f32.mxu0 %vm332_vm0, %v6674_v49  ;;  %v7043_v49 = vld [vmem:[#allocation2 + $0x6a] sm:$0xff] }
 0x301   : > { %v4333_v18 = vpop.f32.mrf.mxu1  ;;  %v4654_v59 = vpop.f32.mrf.mxu0 }
 0x302   : > { %v13524_v20 = vadd.f32 %v4654_v59, %v4333_v18 }
 0x303   : > { %v9944_v8 = vpop.f32.mrf.mxu1  ;;  %v10008_v38 = vpop.f32.mrf.mxu0  ;;  %10327 = vmatmul.mubr.msk.f32.gmra.mxu1 %vm332_vm0, %v6281_v58  ;;  %10391 = vmatmul.mubr.msk.f32.gmra.mxu0 %vm332_vm0, %v6675_v50  ;;  %v7044_v58 = vld [vmem:[#allocation2 + $0x7a] sm:$0xff] }
 0x304   : > { %v13528_v24 = vadd.f32 %v10008_v38, %v9944_v8  ;;  %10409 = vmatprep.mubr.msk.f32.mxu1 %vm332_vm0, %v7038_v36  ;;  %v7045_v36 = vld [vmem:[#allocation2 + $0x82] sm:$0xff] }
 0x305   : > { %v4343_v13 = vpop.f32.mrf.mxu1  ;;  %v4664_v35 = vpop.f32.mrf.mxu0 }
 0x306   : > { %v13531_v11 = vadd.f32 %v4664_v35, %v4343_v13  ;;  %v7046_v35 = vld [vmem:[#allocation2 + $0x92] sm:$0xff] }
 0x307   : > { %v10027_v41 = vpop.f32.mrf.mxu1  ;;  %v10091_v48 = vpop.f32.mrf.mxu0  ;;  %10410 = vmatmul.mubr.msk.f32.vlgmr.msra.gmra.mxu1 %vm332_vm0, %v7039_v5 }
 0x308   : > { %v5036_v57 = vadd.f32 %v10027_v41, %v12964_v21  ;;  %10412 = vmatprep.mubr.msk.f32.mxu1 %vm332_vm0, %v7040_v52 }
 0x309   : > { %v4876_v55 = vpop.f32.mrf.mxu1  ;;  %v5270_v29 = vpop.f32.mrf.mxu0 }
 0x30a   : > { %v13538_v37 = vadd.f32 %v10091_v48, %v5036_v57  ;;  %v5035_v32 = vadd.f32 %v4876_v55, %v4515_v23  ;;  %v7047_v57 = vld [vmem:[#allocation2 + $0x9a] sm:$0xff] }
 0x30b   : > { %v10030_v62 = vpop.f32.mrf.mxu1  ;;  %v10094_v2 = vpop.f32.mrf.mxu0  ;;  %10413 = vmatmul.mubr.msk.f32.gmra.mxu1 %vm332_vm0, %v7041_v42 }
 0x30c   : > { %v13541_v9 = vadd.f32 %v5270_v29, %v5035_v32  ;;  %v5038_v45 = vadd.f32 %v10030_v62, %v13392_v16  ;;  %10415 = vmatprep.mubr.msk.f32.mxu1 %vm332_vm0, %v7042_v0  ;;  %v7048_v29 = vld [vmem:[#allocation2 + $0xaa] sm:$0xff] }
 0x30d   : > { %v4886_v21 = vpop.f32.mrf.mxu1  ;;  %v5280_v63 = vpop.f32.mrf.mxu0 }
 0x30e   : > { %v13545_v4 = vadd.f32 %v10094_v2, %v5038_v45  ;;  %v5037_v43 = vadd.f32 %v4886_v21, %v13401_v56  ;;  %v7049_v45 = vld [vmem:[#allocation2 + $0xb2] sm:$0xff] }
 0x30f   : > { %v10033_v54 = vpop.f32.mrf.mxu1  ;;  %v10097_v28 = vpop.f32.mrf.mxu0  ;;  %10416 = vmatmul.mubr.msk.f32.gmra.mxu1 %vm332_vm0, %v7043_v49 }
 0x310   : > { %v13549_v50 = vadd.f32 %v5280_v63, %v5037_v43  ;;  %v5040_v18 = vadd.f32 %v10033_v54, %v13408_v14  ;;  %10418 = vmatprep.mubr.msk.f32.mxu1 %vm332_vm0, %v7044_v58  ;;  %v7050_v63 = vld [vmem:[#allocation2 + $0xc2] sm:$0xff] }
 0x311   : > { %v4896_v16 = vpop.f32.mrf.mxu1  ;;  %v5290_v59 = vpop.f32.mrf.mxu0 }
 0x312   : > { %v13553_v8 = vadd.f32 %v10097_v28, %v5040_v18  ;;  %v5039_v38 = vadd.f32 %v4896_v16, %v13412_v15  ;;  %v7051_v18 = vld [vmem:[#allocation2 + $0xca] sm:$0xff] }
 0x313   : > { %v10036_v56 = vpop.f32.mrf.mxu1  ;;  %v10100_v13 = vpop.f32.mrf.mxu0  ;;  %10419 = vmatmul.mubr.msk.f32.gmra.mxu1 %vm332_vm0, %v7045_v36 }
 0x314   : > { %v13557_v5 = vadd.f32 %v5290_v59, %v5039_v38  ;;  %v5042_v41 = vadd.f32 %v10036_v56, %v13419_v47  ;;  %10421 = vmatprep.mubr.msk.f32.mxu1 %vm332_vm0, %v7046_v35  ;;  %v7052_v59 = vld [vmem:[#allocation2 + $0xda] sm:$0xff] }
 0x315   : > { %v4906_v14 = vpop.f32.mrf.mxu1  ;;  %v5300_v48 = vpop.f32.mrf.mxu0 }
 0x316   : > { %v13561_v52 = vadd.f32 %v10100_v13, %v5042_v41  ;;  %v5041_v23 = vadd.f32 %v4906_v14, %v13423_v25  ;;  %v7053_v41 = vld [vmem:[#allocation2 + $0xe2] sm:$0xff] }
 0x317   : > { %v10039_v15 = vpop.f32.mrf.mxu1  ;;  %v10103_v55 = vpop.f32.mrf.mxu0  ;;  %10422 = vmatmul.mubr.msk.f32.gmra.mxu1 %vm332_vm0, %v7047_v57 }
 0x318   : > { %v13565_v32 = vadd.f32 %v5300_v48, %v5041_v23  ;;  %v5044_v42 = vadd.f32 %v10039_v15, %v13430_v53  ;;  %10424 = vmatprep.mubr.msk.f32.mxu1 %vm332_vm0, %v7048_v29  ;;  %v7054_v48 = vld [vmem:[#allocation2 + $0xf2] sm:$0xff] }
 0x319   : > { %v4916_v47 = vpop.f32.mrf.mxu1  ;;  %v5310_v62 = vpop.f32.mrf.mxu0 }
 0x31a   : > { %v13569_v2 = vadd.f32 %v10103_v55, %v5044_v42  ;;  %v5043_v0 = vadd.f32 %v4916_v47, %v13434_v61  ;;  %v7055_v42 = vld [vmem:[#allocation2 + $0xfa] sm:$0xff] }
 0x31b   : > { %v10042_v25 = vpop.f32.mrf.mxu1  ;;  %v10106_v21 = vpop.f32.mrf.mxu0  ;;  %10425 = vmatmul.mubr.msk.f32.gmra.mxu1 %vm332_vm0, %v7049_v45 }
 0x31c   : > { %v13573_v43 = vadd.f32 %v5310_v62, %v5043_v0  ;;  %v5046_v49 = vadd.f32 %v10042_v25, %v13441_v44  ;;  %10427 = vmatprep.mubr.msk.f32.mxu1 %vm332_vm0, %v7050_v63  ;;  %v7056_v62 = vld [vmem:[#allocation2 + $0x10a] sm:$0xff] }
 0x31d   : > { %v4926_v53 = vpop.f32.mrf.mxu1  ;;  %v5320_v54 = vpop.f32.mrf.mxu0 }
 0x31e   : > { %v13577_v28 = vadd.f32 %v10106_v21, %v5046_v49  ;;  %v5045_v58 = vadd.f32 %v4926_v53, %v13445_v6  ;;  %v7057_v49 = vld [vmem:[#allocation2 + $0x112] sm:$0xff] }
 0x31f   : > { %v10045_v61 = vpop.f32.mrf.mxu1  ;;  %v10109_v16 = vpop.f32.mrf.mxu0  ;;  %10428 = vmatmul.mubr.msk.f32.gmra.mxu1 %vm332_vm0, %v7051_v18 }
 0x320   : > { %v13581_v38 = vadd.f32 %v5320_v54, %v5045_v58  ;;  %v5048_v36 = vadd.f32 %v10045_v61, %v13452_v27  ;;  %10430 = vmatprep.mubr.msk.f32.mxu1 %vm332_vm0, %v7052_v59  ;;  %v7058_v54 = vld [vmem:[#allocation2 + $0x122] sm:$0xff] }
 0x321   : > { %v4936_v44 = vpop.f32.mrf.mxu1  ;;  %v5330_v56 = vpop.f32.mrf.mxu0 }
 0x322   : > { %v13585_v13 = vadd.f32 %v10109_v16, %v5048_v36  ;;  %v5047_v35 = vadd.f32 %v4936_v44, %v13456_v22  ;;  %v7059_v36 = vld [vmem:[#allocation2 + $0x12a] sm:$0xff] }
 0x323   : > { %v10048_v6 = vpop.f32.mrf.mxu1  ;;  %v10112_v14 = vpop.f32.mrf.mxu0  ;;  %10431 = vmatmul.mubr.msk.f32.gmra.mxu1 %vm332_vm0, %v7053_v41 }
 0x324   : > { %v13589_v23 = vadd.f32 %v5330_v56, %v5047_v35  ;;  %v5050_v57 = vadd.f32 %v10048_v6, %v13460_v7  ;;  %10433 = vmatprep.mubr.msk.f32.mxu1 %vm332_vm0, %v7054_v48  ;;  %v7060_v56 = vld [vmem:[#allocation2 + $0x13a] sm:$0xff] }
 0x325   : > { %v4946_v27 = vpop.f32.mrf.mxu1  ;;  %v5340_v15 = vpop.f32.mrf.mxu0 }
 0x326   : > { %v13593_v55 = vadd.f32 %v10112_v14, %v5050_v57  ;;  %v5049_v29 = vadd.f32 %v4946_v27, %v13464_v19  ;;  %v7061_v57 = vld [vmem:[#allocation2 + $0x142] sm:$0xff] }
 0x327   : > { %v10051_v22 = vpop.f32.mrf.mxu1  ;;  %v10115_v47 = vpop.f32.mrf.mxu0  ;;  %10434 = vmatmul.mubr.msk.f32.gmra.mxu1 %vm332_vm0, %v7055_v42 }
 0x328   : > { %v13597_v0 = vadd.f32 %v5340_v15, %v5049_v29  ;;  %v5052_v45 = vadd.f32 %v10051_v22, %v13468_v46  ;;  %10436 = vmatprep.mubr.msk.f32.mxu1 %vm332_vm0, %v7056_v62  ;;  %v7062_v15 = vld [vmem:[#allocation2 + $0x152] sm:$0xff] }
 0x329   : > { %v4956_v7 = vpop.f32.mrf.mxu1  ;;  %v5350_v25 = vpop.f32.mrf.mxu0 }
 0x32a   : > { %v13601_v21 = vadd.f32 %v10115_v47, %v5052_v45  ;;  %v5051_v63 = vadd.f32 %v4956_v7, %v13472_v51  ;;  %v7063_v45 = vld [vmem:[#allocation2 + $0x15a] sm:$0xff] }
 0x32b   : > { %v10054_v19 = vpop.f32.mrf.mxu1  ;;  %v10118_v53 = vpop.f32.mrf.mxu0  ;;  %10437 = vmatmul.mubr.msk.f32.gmra.mxu1 %vm332_vm0, %v7057_v49 }
 0x32c   : > { %v13605_v58 = vadd.f32 %v5350_v25, %v5051_v63  ;;  %v5054_v18 = vadd.f32 %v10054_v19, %v13476_v30  ;;  %10439 = vmatprep.mubr.msk.f32.mxu1 %vm332_vm0, %v7058_v54  ;;  %v7064_v25 = vld [vmem:[#allocation2 + $0x16a] sm:$0xff] }
 0x32d   : > { %v4966_v46 = vpop.f32.mrf.mxu1  ;;  %v5360_v61 = vpop.f32.mrf.mxu0 }
 0x32e   : > { %v13609_v16 = vadd.f32 %v10118_v53, %v5054_v18  ;;  %v5053_v59 = vadd.f32 %v4966_v46, %v13480_v60  ;;  %v7065_v18 = vld [vmem:[#allocation2 + $0x172] sm:$0xff] }
 0x32f   : > { %v10057_v51 = vpop.f32.mrf.mxu1  ;;  %v10121_v44 = vpop.f32.mrf.mxu0  ;;  %10440 = vmatmul.mubr.msk.f32.gmra.mxu1 %vm332_vm0, %v7059_v36 }
 0x330   : > { %v13613_v35 = vadd.f32 %v5360_v61, %v5053_v59  ;;  %v5056_v41 = vadd.f32 %v10057_v51, %v13484_v26  ;;  %10442 = vmatprep.mubr.msk.f32.mxu1 %vm332_vm0, %v7060_v56  ;;  %v7068_v51 = vld [vmem:[#allocation2 + $0x19a] sm:$0xff] }
 0x331   : > { %v4976_v30 = vpop.f32.mrf.mxu1  ;;  %v5370_v6 = vpop.f32.mrf.mxu0 }
 0x332   : > { %v13617_v14 = vadd.f32 %v10121_v44, %v5056_v41  ;;  %v5055_v48 = vadd.f32 %v4976_v30, %v13488_v40 }
 0x333   : > { %v10060_v60 = vpop.f32.mrf.mxu1  ;;  %v10124_v27 = vpop.f32.mrf.mxu0  ;;  %10443 = vmatmul.mubr.msk.f32.gmra.mxu1 %vm332_vm0, %v7061_v57 }
 0x334   : > { %v13621_v29 = vadd.f32 %v5370_v6, %v5055_v48  ;;  %v5058_v42 = vadd.f32 %v10060_v60, %v13492_v1  ;;  %10445 = vmatprep.mubr.msk.f32.mxu1 %vm332_vm0, %v7062_v15 }
 0x335   : > { %v4986_v26 = vpop.f32.mrf.mxu1  ;;  %v5380_v22 = vpop.f32.mrf.mxu0 }
 0x336   : > { %v13625_v47 = vadd.f32 %v10124_v27, %v5058_v42  ;;  %v5057_v62 = vadd.f32 %v4986_v26, %v13496_v12 }
 0x337   : > { %v10063_v40 = vpop.f32.mrf.mxu1  ;;  %v10127_v7 = vpop.f32.mrf.mxu0  ;;  %10446 = vmatmul.mubr.msk.f32.gmra.mxu1 %vm332_vm0, %v7063_v45 }
 0x338   : > { %v13629_v63 = vadd.f32 %v5380_v22, %v5057_v62  ;;  %v5060_v49 = vadd.f32 %v10063_v40, %v13500_v3  ;;  %10448 = vmatprep.mubr.msk.f32.mxu1 %vm332_vm0, %v7064_v25 }
 0x339   : > { %v4996_v1 = vpop.f32.mrf.mxu1  ;;  %v5390_v19 = vpop.f32.mrf.mxu0 }
 0x33a   : > { %v13633_v53 = vadd.f32 %v10127_v7, %v5060_v49  ;;  %v5059_v54 = vadd.f32 %v4996_v1, %v13504_v17 }
 0x33b   : > { %v10066_v12 = vpop.f32.mrf.mxu1  ;;  %v10130_v46 = vpop.f32.mrf.mxu0  ;;  %10449 = vmatmul.mubr.msk.f32.gmra.mxu1 %vm332_vm0, %v7065_v18 }
 0x33c   : > { %v13637_v61 = vadd.f32 %v5390_v19, %v5059_v54  ;;  %v5062_v59 = vadd.f32 %v10066_v12, %v13508_v34  ;;  %10451 = vmatprep.mubr.msk.f32.mxu1 %vm332_vm0, %v13365_v39  ;;  %v7069_v34 = vld [vmem:[#allocation2 + $0x1a2] sm:$0xff] }
 0x33d   : > { %v5006_v3 = vpop.f32.mrf.mxu1  ;;  %v5400_v36 = vpop.f32.mrf.mxu0 }
 0x33e   : > { %v13642_v44 = vadd.f32 %v10130_v46, %v5062_v59  ;;  %v5061_v56 = vadd.f32 %v5006_v3, %v13514_v31 }
 0x33f   : > { %v10069_v17 = vpop.f32.mrf.mxu1  ;;  %v10133_v41 = vpop.f32.mrf.mxu0  ;;  %10452 = vmatmul.mubr.msk.f32.gmra.mxu1 %vm332_vm0, %v13373_v33 }
 0x340   : > { %v13647_v30 = vadd.f32 %v5400_v36, %v5061_v56  ;;  %v5064_v6 = vadd.f32 %v10069_v17, %v13520_v10  ;;  %10454 = vmatprep.mubr.msk.f32.mxu1 %vm332_vm0, %v7068_v51 }
 0x341   : > { %v5016_v39 = vpop.f32.mrf.mxu1  ;;  %v5410_v48 = vpop.f32.mrf.mxu0 }
 0x342   : > { %v13651_v57 = vadd.f32 %v10133_v41, %v5064_v6  ;;  %v5063_v60 = vadd.f32 %v5016_v39, %v13524_v20 }
 0x343   : > { %v10072_v27 = vpop.f32.mrf.mxu1  ;;  %v10136_v31 = vpop.f32.mrf.mxu0  ;;  %10455 = vmatmul.mubr.msk.f32.gmra.mxu1 %vm332_vm0, %v7069_v34 }
 0x344   : > { %v13655_v15 = vadd.f32 %v5410_v48, %v5063_v60  ;;  %v5066_v33 = vadd.f32 %v10072_v27, %v13528_v24 }
 0x345   : > { %v5026_v42 = vpop.f32.mrf.mxu1  ;;  %v5420_v26 = vpop.f32.mrf.mxu0 }
 0x346   : > { %v13658_v10 = vadd.f32 %v10136_v31, %v5066_v33  ;;  %v5065_v22 = vadd.f32 %v5026_v42, %v13531_v11 }
 0x347   : > { %v10155_v62 = vpop.f32.mrf.mxu1  ;;  %v13661_v45 = vpop.f32.mrf.mxu0 }
 0x348   : > { %v13663_v40 = vadd.f32 %v5420_v26, %v5065_v22  ;;  %v13666_v20 = vadd.f32 %v10155_v62, %v13538_v37 }
 0x349   : > { %v5664_v7 = vpop.f32.mrf.mxu1  ;;  %v13668_v25 = vpop.f32.mrf.mxu0 }
 0x34a   : > { %v13671_v49 = vadd.f32 %v5664_v7, %v13541_v9 }
 0x34b   : > { %v10158_v24 = vpop.f32.mrf.mxu1  ;;  %v13673_v1 = vpop.f32.mrf.mxu0 }
 0x34c   : > { %v13676_v19 = vadd.f32 %v10158_v24, %v13545_v4 }
 0x34d   : > { %v5674_v11 = vpop.f32.mrf.mxu1  ;;  %v13678_v54 = vpop.f32.mrf.mxu0 }
 0x34e   : > { %v13681_v18 = vadd.f32 %v5674_v11, %v13549_v50 }
 0x34f   : > { %v10161_v37 = vpop.f32.mrf.mxu1  ;;  %v13683_v12 = vpop.f32.mrf.mxu0 }
 0x350   : > { %v13686_v46 = vadd.f32 %v10161_v37, %v13553_v8 }
 0x351   : > { %v5684_v9 = vpop.f32.mrf.mxu1  ;;  %v13688_v59 = vpop.f32.mrf.mxu0 }
 0x352   : > { %v13691_v3 = vadd.f32 %v5684_v9, %v13557_v5 }
 0x353   : > { %v10164_v4 = vpop.f32.mrf.mxu1  ;;  %v13693_v36 = vpop.f32.mrf.mxu0 }
 0x354   : > { %v13696_v51 = vadd.f32 %v10164_v4, %v13561_v52 }
 0x355   : > { %v5694_v50 = vpop.f32.mrf.mxu1  ;;  %v13698_v56 = vpop.f32.mrf.mxu0 }
 0x356   : > { %v13701_v17 = vadd.f32 %v5694_v50, %v13565_v32 }
 0x357   : > { %v10167_v8 = vpop.f32.mrf.mxu1  ;;  %v13703_v41 = vpop.f32.mrf.mxu0 }
 0x358   : > { %v13706_v6 = vadd.f32 %v10167_v8, %v13569_v2 }
 0x359   : > { %v5704_v5 = vpop.f32.mrf.mxu1  ;;  %v13708_v34 = vpop.f32.mrf.mxu0 }
 0x35a   : > { %v13711_v39 = vadd.f32 %v5704_v5, %v13573_v43 }
 0x35b   : > { %v10170_v52 = vpop.f32.mrf.mxu1  ;;  %v13713_v48 = vpop.f32.mrf.mxu0 }
 0x35c   : > { %v13716_v60 = vadd.f32 %v10170_v52, %v13577_v28 }
 0x35d   : > { %v5714_v32 = vpop.f32.mrf.mxu1  ;;  %v13718_v27 = vpop.f32.mrf.mxu0 }
 0x35e   : > { %v13721_v31 = vadd.f32 %v5714_v32, %v13581_v38 }
 0x35f   : > { %v10173_v2 = vpop.f32.mrf.mxu1  ;;  %v13723_v33 = vpop.f32.mrf.mxu0 }
 0x360   : > { %v13726_v42 = vadd.f32 %v10173_v2, %v13585_v13 }
 0x361   : > { %v5724_v43 = vpop.f32.mrf.mxu1  ;;  %v13728_v26 = vpop.f32.mrf.mxu0 }
 0x362   : > { %v13731_v22 = vadd.f32 %v5724_v43, %v13589_v23 }
 0x363   : > { %v10176_v28 = vpop.f32.mrf.mxu1  ;;  %v13733_v62 = vpop.f32.mrf.mxu0 }
 0x364   : > { %v13736_v7 = vadd.f32 %v10176_v28, %v13593_v55 }
 0x365   : > { %v5734_v38 = vpop.f32.mrf.mxu1  ;;  %v13738_v24 = vpop.f32.mrf.mxu0 }
 0x366   : > { %14441 = vst [vmem:[#allocation8_spill] sm:$0xff] %v13738_v24  ;;  %v13741_v11 = vadd.f32 %v5734_v38, %v13597_v0 }
 0x367   : > { %v10179_v13 = vpop.f32.mrf.mxu1  ;;  %v13743_v37 = vpop.f32.mrf.mxu0 }
 0x368   : > { %14442 = vst [vmem:[#allocation11_spill] sm:$0xff] %v13741_v11  ;;  %14443 = vst [vmem:[#allocation16_spill] sm:$0xff] %v13743_v37  ;;  %v13746_v9 = vadd.f32 %v10179_v13, %v13601_v21 }
 0x369   : > { %v5744_v23 = vpop.f32.mrf.mxu1  ;;  %v13748_v4 = vpop.f32.mrf.mxu0 }
 0x36a   : > { %14444 = vst [vmem:[#allocation15_spill] sm:$0xff] %v13746_v9  ;;  %14445 = vst [vmem:[#allocation24_spill] sm:$0xff] %v13748_v4  ;;  %v13751_v50 = vadd.f32 %v5744_v23, %v13605_v58 }
 0x36b   : > { %v10182_v55 = vpop.f32.mrf.mxu1  ;;  %v13753_v8 = vpop.f32.mrf.mxu0 }
 0x36c   : > { %14446 = vst [vmem:[#allocation12_spill] sm:$0xff] %v13751_v50  ;;  %14447 = vst [vmem:[#allocation13_spill] sm:$0xff] %v13753_v8  ;;  %v13756_v5 = vadd.f32 %v10182_v55, %v13609_v16 }
 0x36d   : > { %v5754_v0 = vpop.f32.mrf.mxu1  ;;  %v13758_v52 = vpop.f32.mrf.mxu0 }
 0x36e   : > { %14448 = vst [vmem:[#allocation14_spill] sm:$0xff] %v13756_v5  ;;  %14449 = vst [vmem:[#allocation17_spill] sm:$0xff] %v13758_v52  ;;  %v13761_v32 = vadd.f32 %v5754_v0, %v13613_v35 }
 0x36f   : > { %v10185_v21 = vpop.f32.mrf.mxu1  ;;  %v13763_v2 = vpop.f32.mrf.mxu0 }
 0x370   : > { %14450 = vst [vmem:[#allocation19_spill] sm:$0xff] %v13761_v32  ;;  %14451 = vst [vmem:[#allocation18_spill] sm:$0xff] %v13763_v2  ;;  %v13766_v43 = vadd.f32 %v10185_v21, %v13617_v14 }
 0x371   : > { %v5764_v58 = vpop.f32.mrf.mxu1  ;;  %v13768_v28 = vpop.f32.mrf.mxu0 }
 0x372   : > { %14452 = vst [vmem:[#allocation21_spill] sm:$0xff] %v13766_v43  ;;  %14453 = vst [vmem:[#allocation23_spill] sm:$0xff] %v13768_v28  ;;  %v13771_v38 = vadd.f32 %v5764_v58, %v13621_v29 }
 0x373   : > { %v10188_v16 = vpop.f32.mrf.mxu1  ;;  %v13773_v13 = vpop.f32.mrf.mxu0 }
 0x374   : > { %14454 = vst [vmem:[#allocation22_spill] sm:$0xff] %v13771_v38  ;;  %14455 = vst [vmem:[#allocation25_spill] sm:$0xff] %v13773_v13  ;;  %v13776_v23 = vadd.f32 %v10188_v16, %v13625_v47 }
 0x375   : > { %v5774_v35 = vpop.f32.mrf.mxu1  ;;  %v13778_v55 = vpop.f32.mrf.mxu0 }
 0x376   : > { %14456 = vst [vmem:[#allocation27_spill] sm:$0xff] %v13776_v23  ;;  %14457 = vst [vmem:[#allocation26_spill] sm:$0xff] %v13778_v55  ;;  %v13781_v0 = vadd.f32 %v5774_v35, %v13629_v63 }
 0x377   : > { %v10191_v14 = vpop.f32.mrf.mxu1  ;;  %v13783_v21 = vpop.f32.mrf.mxu0 }
 0x378   : > { %14458 = vst [vmem:[#allocation29_spill] sm:$0xff] %v13781_v0  ;;  %14459 = vst [vmem:[#allocation28_spill] sm:$0xff] %v13783_v21  ;;  %v13786_v28 = vadd.f32 %v10191_v14, %v13633_v53 }
 0x379   : > { %v5784_v29 = vpop.f32.mrf.mxu1  ;;  %v13788_v58 = vpop.f32.mrf.mxu0 }
 0x37a   : > { %14460 = vst [vmem:[#allocation30_spill] sm:$0xff] %v13786_v28  ;;  %14461 = vst [vmem:[#allocation32_spill] sm:$0xff] %v13788_v58  ;;  %v13791_v13 = vadd.f32 %v5784_v29, %v13637_v61 }
 0x37b   : > { %v10194_v47 = vpop.f32.mrf.mxu1  ;;  %v13793_v16 = vpop.f32.mrf.mxu0 }
 0x37c   : > { %14462 = vst [vmem:[#allocation31_spill] sm:$0xff] %v13791_v13  ;;  %14463 = vst [vmem:[#allocation33_spill] sm:$0xff] %v13793_v16  ;;  %v13796_v55 = vadd.f32 %v10194_v47, %v13642_v44 }
 0x37d   : > { %v5794_v63 = vpop.f32.mrf.mxu1  ;;  %v13798_v35 = vpop.f32.mrf.mxu0 }
 0x37e   : > { %14464 = vst [vmem:[#allocation35_spill] sm:$0xff] %v13796_v55  ;;  %14465 = vst [vmem:[#allocation34_spill] sm:$0xff] %v13798_v35  ;;  %v13801_v21 = vadd.f32 %v5794_v63, %v13647_v30 }
 0x37f   : > { %v10197_v53 = vpop.f32.mrf.mxu1  ;;  %v13803_v14 = vpop.f32.mrf.mxu0 }
 0x380   : > { %14466 = vst [vmem:[#allocation36_spill] sm:$0xff] %v13801_v21  ;;  %14467 = vst [vmem:[#allocation38_spill] sm:$0xff] %v13803_v14  ;;  %v13806_v58 = vadd.f32 %v10197_v53, %v13651_v57 }
 0x381   : > { %v5804_v61 = vpop.f32.mrf.mxu1  ;;  %v13808_v29 = vpop.f32.mrf.mxu0 }
 0x382   : > { %14468 = vst [vmem:[#allocation37_spill] sm:$0xff] %v13806_v58  ;;  %14469 = vst [vmem:[#allocation39_spill] sm:$0xff] %v13808_v29  ;;  %v13811_v16 = vadd.f32 %v5804_v61, %v13655_v15 }
 0x383   : > { %v10200_v44 = vpop.f32.mrf.mxu1  ;;  %v13813_v47 = vpop.f32.mrf.mxu0 }
 0x384   : > { %14470 = vst [vmem:[#allocation41_spill] sm:$0xff] %v13811_v16  ;;  %14471 = vst [vmem:[#allocation40_spill] sm:$0xff] %v13813_v47  ;;  %v13816_v35 = vadd.f32 %v10200_v44, %v13658_v10 }
 0x385   : > { %v5814_v30 = vpop.f32.mrf.mxu1  ;;  %v13818_v63 = vpop.f32.mrf.mxu0 }
 0x386   : > { %14472 = vst [vmem:[#allocation42_spill] sm:$0xff] %v13816_v35  ;;  %14473 = vst [vmem:[#allocation71_spill] sm:$0xff] %v13818_v63  ;;  %v13821_v14 = vadd.f32 %v5814_v30, %v13663_v40 }
 0x387   : > { %v10283_v57 = vpop.f32.mrf.mxu1  ;;  %v10347_v53 = vpop.f32.mrf.mxu0 }
 0x388   : > { %14474 = vst [vmem:[#allocation44_spill] sm:$0xff] %v13821_v14 }
 0x389   : > { %v6453_v58 = vpop.f32.mrf.mxu1  ;;  %v6847_v21 = vpop.f32.mrf.mxu0 }
 0x38b   : > { %v10286_v29 = vpop.f32.mrf.mxu1  ;;  %v13823_v15 = vpop.f32.mrf.mxu0 }
 0x38d   : > { %v6463_v55 = vpop.f32.mrf.mxu1  ;;  %v13827_v47 = vpop.f32.mrf.mxu0 }
 0x38f   : > { %v10289_v61 = vpop.f32.mrf.mxu1  ;;  %v13833_v63 = vpop.f32.mrf.mxu0 }
 0x391   : > { %v13825_v16 = vpop.f32.mrf.mxu1  ;;  %v13839_v14 = vpop.f32.mrf.mxu0 }
 0x393   : > { %v13829_v10 = vpop.f32.mrf.mxu1  ;;  %v13845_v28 = vpop.f32.mrf.mxu0 }
 0x395   : > { %v13831_v44 = vpop.f32.mrf.mxu1  ;;  %v13851_v38 = vpop.f32.mrf.mxu0 }
 0x397   : > { %v13835_v40 = vpop.f32.mrf.mxu1  ;;  %v13857_v52 = vpop.f32.mrf.mxu0 }
 0x399   : > { %v13837_v30 = vpop.f32.mrf.mxu1  ;;  %v13863_v5 = vpop.f32.mrf.mxu0 }
 0x39b   : > { %v13841_v35 = vpop.f32.mrf.mxu1  ;;  %v13869_v37 = vpop.f32.mrf.mxu0 }
 0x39d   : > { %v13843_v13 = vpop.f32.mrf.mxu1 }
 0x39f   : > { %v13847_v0 = vpop.f32.mrf.mxu1 }
 0x3a1   : > { %v13849_v23 = vpop.f32.mrf.mxu1 }
 0x3a2   : > { %14475 = vst [vmem:[#allocation43_spill] sm:$0xff] %v13849_v23 }
 0x3a3   : > { %v13853_v2 = vpop.f32.mrf.mxu1 }
 0x3a4   : > { %14476 = vst [vmem:[#allocation70_spill] sm:$0xff] %v13853_v2  ;;  %v13875_v2 = vpop.f32.mrf.mxu0 }
 0x3a5   : > { %v13855_v43 = vpop.f32.mrf.mxu1  ;;  %14484 = vst [vmem:[#allocation76_spill] sm:$0xff] %v13875_v2 }
 0x3a6   : > { %14477 = vst [vmem:[#allocation45_spill] sm:$0xff] %v13855_v43 }
 0x3a7   : > { %v13859_v32 = vpop.f32.mrf.mxu1 }
 0x3a8   : > { %14478 = vst [vmem:[#allocation48_spill] sm:$0xff] %v13859_v32  ;;  %v13881_v32 = vpop.f32.mrf.mxu0 }
 0x3a9   : > { %v13861_v8 = vpop.f32.mrf.mxu1  ;;  %14487 = vst [vmem:[#allocation51_spill] sm:$0xff] %v13881_v32 }
 0x3aa   : > { %14479 = vst [vmem:[#allocation47_spill] sm:$0xff] %v13861_v8 }
 0x3ab   : > { %v13865_v4 = vpop.f32.mrf.mxu1 }
 0x3ac   : > { %14480 = vst [vmem:[#allocation46_spill] sm:$0xff] %v13865_v4 }
 0x3ad   : > { %v13867_v50 = vpop.f32.mrf.mxu1 }
 0x3ae   : > { %14481 = vst [vmem:[#allocation72_spill] sm:$0xff] %v13867_v50  ;;  %v13887_v50 = vpop.f32.mrf.mxu0 }
 0x3af   : > { %v13871_v9 = vpop.f32.mrf.mxu1  ;;  %14490 = vst [vmem:[#allocation53_spill] sm:$0xff] %v13887_v50 }
 0x3b0   : > { %14482 = vst [vmem:[#allocation52_spill] sm:$0xff] %v13871_v9 }
 0x3b1   : > { %v13873_v24 = vpop.f32.mrf.mxu1 }
 0x3b2   : > { %14483 = vst [vmem:[#allocation73_spill] sm:$0xff] %v13873_v24  ;;  %v13893_v24 = vpop.f32.mrf.mxu0 }
 0x3b3   : > { %v13877_v43 = vpop.f32.mrf.mxu1 }
 0x3b4   : > { %14485 = vst [vmem:[#allocation74_spill] sm:$0xff] %v13877_v43 }
 0x3b5   : > { %v13879_v11 = vpop.f32.mrf.mxu1 }
 0x3b6   : > { %14486 = vst [vmem:[#allocation49_spill] sm:$0xff] %v13879_v11  ;;  %v6218_v11 = vadd.f32 %v13661_v45, %v13666_v20  ;;  %v6219_v45 = vadd.f32 %v13678_v54, %v13681_v18  ;;  %v6221_v54 = vadd.f32 %v13688_v59, %v13691_v3 }
 0x3b7   : > { %v13883_v8 = vpop.f32.mrf.mxu1 }
 0x3b8   : > { %14488 = vst [vmem:[#allocation50_spill] sm:$0xff] %v13883_v8  ;;  %v6217_v8 = vadd.f32 %v13668_v25, %v13671_v49  ;;  %v6613_v32 = vadd.f32 %v10283_v57, %v6218_v11  ;;  %v6222_v25 = vadd.f32 %v13683_v12, %v13686_v46  ;;  %v6224_v57 = vadd.f32 %v13693_v36, %v13696_v51 }
 0x3b9   : > { %v13885_v4 = vpop.f32.mrf.mxu1 }
 0x3ba   : > { %14489 = vst [vmem:[#allocation79_spill] sm:$0xff] %v13885_v4  ;;  %v13903_v4 = vpop.f32.mrf.mxu0  ;;  %v7007_v20 = vadd.f32 %v10347_v53, %v6613_v32  ;;  %v6617_v18 = vadd.f32 %v10289_v61, %v6222_v25  ;;  %v6619_v51 = vadd.f32 %v13829_v10, %v6224_v57  ;;  %v8549_v10 = vld [vmem:[%s10700_s10 + $0x31] sm:$0xff] }
 0x3bb   : > { %v13889_v23 = vpop.f32.mrf.mxu1 }
 0x3bc   : > { %14491 = vst [vmem:[#allocation75_spill] sm:$0xff] %v13889_v23  ;;  %v6612_v23 = vadd.f32 %v6453_v58, %v6217_v8  ;;  %v13916_v49 = vpop.f32.mrf.mxu0  ;;  %v6614_v8 = vadd.f32 %v6463_v55, %v6219_v45 }
 0x3bd   : > { %v13891_v9 = vpop.f32.mrf.mxu1 }
 0x3be   : > { %14492 = vst [vmem:[#allocation77_spill] sm:$0xff] %v13891_v9  ;;  %v6220_v9 = vadd.f32 %v13673_v1, %v13676_v19  ;;  %v13921_v1 = vld [vmem:[%s14230_s4] ss:$0 sm:$0xff]  ;;  %v7006_v19 = vadd.f32 %v6847_v21, %v6612_v23  ;;  %v6616_v23 = vadd.f32 %v13825_v16, %v6221_v54  ;;  %v13933_v55 = vpop.f32.mrf.mxu0  ;;  %v7008_v59 = vadd.f32 %v13827_v47, %v6614_v8 }
 0x3bf   : > { %v13895_v2 = vpop.f32.mrf.mxu1  ;;  %v8547_v21 = vld [vmem:[%s10700_s10 + $0x19] sm:$0xff] }
 0x3c0   : > { %14493 = vst [vmem:[#allocation82_spill] sm:$0xff] %v13895_v2 }
 0x3c1   : > { %v13899_v43 = vpop.f32.mrf.mxu1 }
 0x3c2   : > { %14494 = vst [vmem:[#allocation56_spill] sm:$0xff] %v13899_v43  ;;  %v6615_v43 = vadd.f32 %v10286_v29, %v6220_v9  ;;  %v8548_v9 = vld [vmem:[%s10700_s10 + $0x21] sm:$0xff] }
 0x3c3   : > { %v13905_v50 = vpop.f32.mrf.mxu1 }
 0x3c4   : > { %v7009_v46 = vadd.f32 %v13823_v15, %v6615_v43  ;;  %v6223_v43 = vadd.f32 %v13698_v56, %v13701_v17  ;;  %v7011_v15 = vadd.f32 %v13833_v63, %v6617_v18  ;;  %v6226_v56 = vadd.f32 %v13703_v41, %v13706_v6  ;;  %v13951_v63 = vpop.f32.mrf.mxu0  ;;  %v8552_v6 = vld [vmem:[%s10700_s10 + $0x51] sm:$0xff] }
 0x3c5   : > { %v13909_v2 = vpop.f32.mrf.mxu1  ;;  %v7010_v17 = vadd.f32 %v13839_v14, %v6616_v23  ;;  %v6225_v18 = vadd.f32 %v13708_v34, %v13711_v39  ;;  %v8551_v39 = vld [vmem:[%s10700_s10 + $0x49] sm:$0xff] }
 0x3c6   : > { %v6621_v41 = vadd.f32 %v13835_v40, %v6226_v56  ;;  %v13969_v34 = vpop.f32.mrf.mxu0  ;;  %v6232_v56 = vadd.f32 %v13733_v62, %v13736_v7  ;;  %v14499_v62 = vld [vmem:[#allocation51_spill] sm:$0xff] }
 0x3c7   : > { %v10411_v11 = vpop.f32.mrf.mxu1 }
 0x3c8   : > { %v7401_v58 = vadd.f32 %v10411_v11, %v7007_v20  ;;  %v8550_v20 = vld [vmem:[%s10700_s10 + $0x39] sm:$0xff] }
 0x3c9   : > { %v7241_v12 = vpop.f32.mrf.mxu1 }
 0x3ca   : > { %v7440_v32 = vadd.f32 %v13921_v1, %v7401_v58  ;;  %v7400_v29 = vadd.f32 %v7241_v12, %v7006_v19  ;;  %v6618_v19 = vadd.f32 %v13831_v44, %v6223_v43 }
 0x3cb   : > { %v10414_v53 = vpop.f32.mrf.mxu1 }
 0x3cc   : > { %v7504_v3 = vadd.f32 %v8548_v9, %v7440_v32  ;;  %v7439_v61 = vadd.f32 %v13921_v1, %v7400_v29  ;;  %v7403_v45 = vadd.f32 %v10414_v53, %v7009_v46  ;;  %v7013_v9 = vadd.f32 %v13845_v28, %v6619_v51 }
 0x3cd   : > { %v7251_v36 = vpop.f32.mrf.mxu1  ;;  %v6228_v32 = vadd.f32 %v13713_v48, %v13716_v60  ;;  %v6620_v29 = vadd.f32 %v13837_v30, %v6225_v18  ;;  %v7012_v57 = vadd.f32 %v13851_v38, %v6618_v19  ;;  %v6227_v53 = vadd.f32 %v13718_v27, %v13721_v31  ;;  %v8554_v60 = vld [vmem:[%s10700_s10 + $0x69] sm:$0xff]  ;;  %v13987_v27 = vpop.f32.mrf.mxu0  ;;  %v8553_v31 = vld [vmem:[%s10700_s10 + $0x61] sm:$0xff]  ;;  %v14498_v18 = vld [vmem:[#allocation8_spill] sm:$0xff] }
 0x3ce   : > { %7536 = vst.msk [vmem:[%s13943_s30 + $0x8] sm:$0xff] %vm332_vm0, %v7504_v3  ;;  %v7503_v16 = vadd.f32 %v8547_v21, %v7439_v61  ;;  %v7442_v47 = vadd.f32 %v13921_v1, %v7403_v45  ;;  %v7402_v25 = vadd.f32 %v7251_v36, %v7008_v59  ;;  %v7015_v48 = vadd.f32 %v13857_v52, %v6621_v41 }
 0x3cf   : > { %v10417_v11 = vpop.f32.mrf.mxu1  ;;  %v6623_v59 = vadd.f32 %v13841_v35, %v6228_v32  ;;  %v6230_v45 = vadd.f32 %v13723_v33, %v13726_v42  ;;  %v7014_v43 = vadd.f32 %v13863_v5, %v6620_v29  ;;  %v6229_v51 = vadd.f32 %v13728_v26, %v13731_v22  ;;  %v8556_v42 = vld [vmem:[%s10700_s10 + $0x81] sm:$0xff]  ;;  %v14005_v26 = vpop.f32.mrf.mxu0  ;;  %v8555_v22 = vld [vmem:[%s10700_s10 + $0x79] sm:$0xff]  ;;  %v14501_v29 = vld [vmem:[#allocation15_spill] sm:$0xff] }
 0x3d0   : > { %7535 = vst.msk [vmem:[%s13943_s30] sm:$0xff] %vm332_vm0, %v7503_v16  ;;  %v7506_v8 = vadd.f32 %v8550_v20, %v7442_v47  ;;  %v7441_v58 = vadd.f32 %v13921_v1, %v7402_v25  ;;  %v7405_v54 = vadd.f32 %v10417_v11, %v7011_v15  ;;  %v6622_v15 = vadd.f32 %v13843_v13, %v6227_v53  ;;  %v14496_v11 = vld [vmem:[#allocation76_spill] sm:$0xff] }
 0x3d1   : > { %v7261_v14 = vpop.f32.mrf.mxu1  ;;  %v6625_v33 = vadd.f32 %v13847_v0, %v6230_v45  ;;  %v7017_v16 = vadd.f32 %v13869_v37, %v6623_v59 }
 0x3d2   : > { %7538 = vst.msk [vmem:[%s13943_s30 + $0x18] sm:$0xff] %vm332_vm0, %v7506_v8  ;;  %v7505_v44 = vadd.f32 %v8549_v10, %v7441_v58  ;;  %v7444_v12 = vadd.f32 %v13921_v1, %v7405_v54  ;;  %v7404_v46 = vadd.f32 %v7261_v14, %v7010_v17  ;;  %v14495_v17 = vld [vmem:[#allocation43_spill] sm:$0xff]  ;;  %v7016_v19 = vadd.f32 %v14496_v11, %v6622_v15  ;;  %v14512_v11 = vld [vmem:[#allocation17_spill] sm:$0xff] }
 0x3d3   : > { %v10420_v40 = vpop.f32.mrf.mxu1  ;;  %v6624_v10 = vadd.f32 %v14495_v17, %v6229_v51  ;;  %v14497_v54 = vld [vmem:[#allocation11_spill] sm:$0xff]  ;;  %v7019_v7 = vadd.f32 %v14499_v62, %v6625_v33  ;;  %v14508_v33 = vld [vmem:[#allocation14_spill] sm:$0xff] }
 0x3d4   : > { %7537 = vst.msk [vmem:[%s13943_s30 + $0x10] sm:$0xff] %vm332_vm0, %v7505_v44  ;;  %v7508_v28 = vadd.f32 %v8552_v6, %v7444_v12  ;;  %v7443_v23 = vadd.f32 %v13921_v1, %v7404_v46  ;;  %v7407_v21 = vadd.f32 %v10420_v40, %v7013_v9  ;;  %v6231_v41 = vadd.f32 %v14498_v18, %v14497_v54  ;;  %v8558_v6 = vld [vmem:[%s10700_s10 + $0x99] sm:$0xff]  ;;  %v14500_v9 = vld [vmem:[#allocation70_spill] sm:$0xff] }
 0x3d5   : > { %v7271_v30 = vpop.f32.mrf.mxu1  ;;  %v6627_v44 = vadd.f32 %v14500_v9, %v6232_v56  ;;  %v14513_v54 = vld [vmem:[#allocation46_spill] sm:$0xff] }
 0x3d6   : > { %7540 = vst.msk [vmem:[%s13943_s30 + $0x28] sm:$0xff] %vm332_vm0, %v7508_v28  ;;  %v7507_v38 = vadd.f32 %v8551_v39, %v7443_v23  ;;  %v7446_v3 = vadd.f32 %v13921_v1, %v7407_v21  ;;  %v7406_v61 = vadd.f32 %v7271_v30, %v7012_v57  ;;  %v14502_v39 = vld [vmem:[#allocation16_spill] sm:$0xff]  ;;  %v14503_v57 = vld [vmem:[#allocation53_spill] sm:$0xff]  ;;  %v14023_v23 = vpop.f32.mrf.mxu0 }
 0x3d7   : > { %v10423_v52 = vpop.f32.mrf.mxu1  ;;  %v6234_v40 = vadd.f32 %v14502_v39, %v14501_v29  ;;  %v7018_v28 = vadd.f32 %v14503_v57, %v6624_v10  ;;  %v8557_v21 = vld [vmem:[%s10700_s10 + $0x91] sm:$0xff]  ;;  %v14517_v57 = vld [vmem:[#allocation22_spill] sm:$0xff] }
 0x3d8   : > { %7539 = vst.msk [vmem:[%s13943_s30 + $0x20] sm:$0xff] %vm332_vm0, %v7507_v38  ;;  %v7510_v35 = vadd.f32 %v8554_v60, %v7446_v3  ;;  %v7445_v20 = vadd.f32 %v13921_v1, %v7406_v61  ;;  %v7409_v36 = vadd.f32 %v10423_v52, %v7015_v48  ;;  %v14504_v48 = vld [vmem:[#allocation45_spill] sm:$0xff]  ;;  %v14505_v3 = vld [vmem:[#allocation12_spill] sm:$0xff] }
 0x3d9   : > { %v7281_v5 = vpop.f32.mrf.mxu1  ;;  %v6626_v60 = vadd.f32 %v14504_v48, %v6231_v41  ;;  %v14506_v61 = vld [vmem:[#allocation24_spill] sm:$0xff] }
 0x3da   : > { %7542 = vst.msk [vmem:[%s13943_s30 + $0x38] sm:$0xff] %vm332_vm0, %v7510_v35  ;;  %v7509_v13 = vadd.f32 %v8553_v31, %v7445_v20  ;;  %v7448_v47 = vadd.f32 %v13921_v1, %v7409_v36  ;;  %v7408_v25 = vadd.f32 %v7281_v5, %v7014_v43  ;;  %v6233_v45 = vadd.f32 %v14506_v61, %v14505_v3  ;;  %v14507_v43 = vld [vmem:[#allocation48_spill] sm:$0xff]  ;;  %v14520_v61 = vld [vmem:[#allocation27_spill] sm:$0xff] }
 0x3db   : > { %v10426_v0 = vpop.f32.mrf.mxu1  ;;  %v6629_v31 = vadd.f32 %v14507_v43, %v6234_v40  ;;  %v8560_v52 = vld [vmem:[%s10700_s10 + $0xb1] sm:$0xff]  ;;  %v7021_v35 = vadd.f32 %v13893_v24, %v6627_v44  ;;  %v7020_v17 = vadd.f32 %v13903_v4, %v6626_v60 }
 0x3dc   : > { %7541 = vst.msk [vmem:[%s13943_s30 + $0x30] sm:$0xff] %vm332_vm0, %v7509_v13  ;;  %v7512_v37 = vadd.f32 %v8556_v42, %v7448_v47  ;;  %v7447_v8 = vadd.f32 %v13921_v1, %v7408_v25  ;;  %v7411_v58 = vadd.f32 %v10426_v0, %v7017_v16  ;;  %v14509_v42 = vld [vmem:[#allocation13_spill] sm:$0xff]  ;;  %v14510_v16 = vld [vmem:[#allocation47_spill] sm:$0xff]  ;;  %v14041_v47 = vpop.f32.mrf.mxu0 }
 0x3dd   : > { %v7291_v14 = vpop.f32.mrf.mxu1  ;;  %v6236_v5 = vadd.f32 %v14509_v42, %v14508_v33  ;;  %v6628_v13 = vadd.f32 %v14510_v16, %v6233_v45  ;;  %v8559_v25 = vld [vmem:[%s10700_s10 + $0xa9] sm:$0xff]  ;;  %v14521_v45 = vld [vmem:[#allocation25_spill] sm:$0xff] }
 0x3de   : > { %7544 = vst.msk [vmem:[%s13943_s30 + $0x48] sm:$0xff] %vm332_vm0, %v7512_v37  ;;  %v7511_v12 = vadd.f32 %v8555_v22, %v7447_v8  ;;  %v7450_v46 = vadd.f32 %v13921_v1, %v7411_v58  ;;  %v7410_v32 = vadd.f32 %v7291_v14, %v7016_v19  ;;  %v14511_v0 = vld [vmem:[#allocation19_spill] sm:$0xff]  ;;  %v7023_v37 = vadd.f32 %v13916_v49, %v6629_v31  ;;  %v14059_v44 = vpop.f32.mrf.mxu0  ;;  %v8561_v49 = vld [vmem:[%s10700_s10 + $0xc1] sm:$0xff] }
 0x3df   : > { %v10429_v53 = vpop.f32.mrf.mxu1  ;;  %v6235_v19 = vadd.f32 %v14512_v11, %v14511_v0  ;;  %v8562_v8 = vld [vmem:[%s10700_s10 + $0xc9] sm:$0xff]  ;;  %v6631_v18 = vadd.f32 %v14513_v54, %v6236_v5  ;;  %v7022_v9 = vadd.f32 %v13933_v55, %v6628_v13  ;;  %v8564_v55 = vld [vmem:[%s10700_s10 + $0xe1] sm:$0xff]  ;;  %v6240_v43 = vadd.f32 %v14521_v45, %v14520_v61  ;;  %v14527_v11 = vld [vmem:[#allocation28_spill] sm:$0xff] }
 0x3e0   : > { %7543 = vst.msk [vmem:[%s13943_s30 + $0x40] sm:$0xff] %vm332_vm0, %v7511_v12  ;;  %v7514_v30 = vadd.f32 %v8558_v6, %v7450_v46  ;;  %v7449_v59 = vadd.f32 %v13921_v1, %v7410_v32  ;;  %v7413_v38 = vadd.f32 %v10429_v53, %v7019_v7  ;;  %v14514_v7 = vld [vmem:[#allocation21_spill] sm:$0xff]  ;;  %v14515_v6 = vld [vmem:[#allocation18_spill] sm:$0xff]  ;;  %v14516_v46 = vld [vmem:[#allocation72_spill] sm:$0xff] }
 0x3e1   : > { %v7301_v15 = vpop.f32.mrf.mxu1  ;;  %v6238_v14 = vadd.f32 %v14515_v6, %v14514_v7  ;;  %v6630_v32 = vadd.f32 %v14516_v46, %v6235_v19  ;;  %v14519_v53 = vld [vmem:[#allocation52_spill] sm:$0xff]  ;;  %v14522_v31 = vld [vmem:[#allocation73_spill] sm:$0xff]  ;;  %v14524_v5 = vld [vmem:[#allocation26_spill] sm:$0xff] }
 0x3e2   : > { %7546 = vst.msk [vmem:[%s13943_s30 + $0x58] sm:$0xff] %vm332_vm0, %v7514_v30  ;;  %v7513_v20 = vadd.f32 %v8557_v21, %v7449_v59  ;;  %v7452_v36 = vadd.f32 %v13921_v1, %v7413_v38  ;;  %v7412_v51 = vadd.f32 %v7301_v15, %v7018_v28  ;;  %v14518_v28 = vld [vmem:[#allocation23_spill] sm:$0xff]  ;;  %v7025_v30 = vadd.f32 %v13951_v63, %v6631_v18  ;;  %v6967_v15 = vpop.f32.mrf.mxu0  ;;  %v14523_v42 = vld [vmem:[#allocation29_spill] sm:$0xff]  ;;  %v14526_v0 = vld [vmem:[#allocation30_spill] sm:$0xff] }
 0x3e3   : > { %v10432_v56 = vpop.f32.mrf.mxu1  ;;  %v6237_v21 = vadd.f32 %v14518_v28, %v14517_v57  ;;  %v6633_v48 = vadd.f32 %v14519_v53, %v6238_v14  ;;  %v6239_v16 = vadd.f32 %v14524_v5, %v14523_v42  ;;  %v6242_v19 = vadd.f32 %v14527_v11, %v14526_v0  ;;  %v14528_v54 = vld [vmem:[#allocation49_spill] sm:$0xff]  ;;  %v14529_v7 = vld [vmem:[#allocation31_spill] sm:$0xff]  ;;  %v14530_v6 = vld [vmem:[#allocation32_spill] sm:$0xff] }
 0x3e4   : > { %7545 = vst.msk [vmem:[%s13943_s30 + $0x50] sm:$0xff] %vm332_vm0, %v7513_v20  ;;  %v7516_v24 = vadd.f32 %v8560_v52, %v7452_v36  ;;  %v7451_v10 = vadd.f32 %v13921_v1, %v7412_v51  ;;  %v7415_v22 = vadd.f32 %v10432_v56, %v7021_v35  ;;  %v8563_v35 = vld [vmem:[%s10700_s10 + $0xd9] sm:$0xff]  ;;  %v7024_v36 = vadd.f32 %v13969_v34, %v6630_v32  ;;  %v14536_v61 = vld [vmem:[#allocation34_spill] sm:$0xff] }
 0x3e5   : > { %v7311_v58 = vpop.f32.mrf.mxu1  ;;  %v6632_v52 = vadd.f32 %v14522_v31, %v6237_v21  ;;  %v7027_v13 = vadd.f32 %v13987_v27, %v6633_v48  ;;  %v6634_v18 = vadd.f32 %v14528_v54, %v6239_v16  ;;  %v6241_v14 = vadd.f32 %v14530_v6, %v14529_v7  ;;  %v14533_v57 = vld [vmem:[#allocation33_spill] sm:$0xff]  ;;  %v14534_v21 = vld [vmem:[#allocation79_spill] sm:$0xff]  ;;  %v14543_v11 = vld [vmem:[#allocation82_spill] sm:$0xff] }
 0x3e6   : > { %7548 = vst.msk [vmem:[%s13943_s30 + $0x68] sm:$0xff] %vm332_vm0, %v7516_v24  ;;  %v7515_v4 = vadd.f32 %v8559_v25, %v7451_v10  ;;  %v7454_v41 = vadd.f32 %v13921_v1, %v7415_v22  ;;  %v7414_v62 = vadd.f32 %v7311_v58, %v7020_v17  ;;  %v8566_v25 = vld [vmem:[%s10700_s10 + $0xf9] sm:$0xff]  ;;  %v14525_v17 = vld [vmem:[#allocation74_spill] sm:$0xff]  ;;  %v8565_v58 = vld [vmem:[%s10700_s10 + $0xf1] sm:$0xff] }
 0x3e7   : > { %v10435_v12 = vpop.f32.mrf.mxu1  ;;  %v6635_v24 = vadd.f32 %v14525_v17, %v6240_v43  ;;  %v6636_v53 = vadd.f32 %v14534_v21, %v6241_v14  ;;  %v8570_v31 = vld [vmem:[%s10700_s10 + $0x129] sm:$0xff]  ;;  %v14546_v7 = vld [vmem:[#allocation56_spill] sm:$0xff] }
 0x3e8   : > { %7547 = vst.msk [vmem:[%s13943_s30 + $0x60] sm:$0xff] %vm332_vm0, %v7515_v4  ;;  %v7518_v29 = vadd.f32 %v8562_v8, %v7454_v41  ;;  %v7453_v39 = vadd.f32 %v13921_v1, %v7414_v62  ;;  %v7417_v40 = vadd.f32 %v10435_v12, %v7023_v37  ;;  %v7026_v37 = vadd.f32 %v14005_v26, %v6632_v52  ;;  %v10386_v8 = vpop.f32.mrf.mxu0  ;;  %v8568_v12 = vld [vmem:[%s10700_s10 + $0x111] sm:$0xff] }
 0x3e9   : > { %v7321_v60 = vpop.f32.mrf.mxu1  ;;  %v7029_v46 = vadd.f32 %v14023_v23, %v6635_v24  ;;  %v7030_v5 = vadd.f32 %v6967_v15, %v6636_v53 }
 0x3ea   : > { %7550 = vst.msk [vmem:[%s13943_s30 + $0x78] sm:$0xff] %vm332_vm0, %v7518_v29  ;;  %v7517_v59 = vadd.f32 %v8561_v49, %v7453_v39  ;;  %v7456_v38 = vadd.f32 %v13921_v1, %v7417_v40  ;;  %v7416_v3 = vadd.f32 %v7321_v60, %v7022_v9  ;;  %v14531_v9 = vld [vmem:[#allocation50_spill] sm:$0xff]  ;;  %v14532_v40 = vld [vmem:[#allocation35_spill] sm:$0xff]  ;;  %v6977_v48 = vpop.f32.mrf.mxu0 }
 0x3eb   : > { %v10438_v20 = vpop.f32.mrf.mxu1  ;;  %v6637_v49 = vadd.f32 %v14531_v9, %v6242_v19  ;;  %v6244_v28 = vadd.f32 %v14533_v57, %v14532_v40  ;;  %v8571_v9 = vld [vmem:[%s10700_s10 + $0x139] sm:$0xff] }
 0x3ec   : > { %7549 = vst.msk [vmem:[%s13943_s30 + $0x70] sm:$0xff] %vm332_vm0, %v7517_v59  ;;  %v7520_v63 = vadd.f32 %v8564_v55, %v7456_v38  ;;  %v7455_v51 = vadd.f32 %v13921_v1, %v7416_v3  ;;  %v7419_v33 = vadd.f32 %v10438_v20, %v7025_v30  ;;  %v8567_v55 = vld [vmem:[%s10700_s10 + $0x109] sm:$0xff]  ;;  %v7028_v30 = vadd.f32 %v14041_v47, %v6634_v18  ;;  %v14535_v3 = vld [vmem:[#allocation36_spill] sm:$0xff]  ;;  %v10389_v16 = vpop.f32.mrf.mxu0 }
 0x3ed   : > { %v7331_v56 = vpop.f32.mrf.mxu1  ;;  %v6243_v45 = vadd.f32 %v14536_v61, %v14535_v3  ;;  %v7031_v43 = vadd.f32 %v14059_v44, %v6637_v49  ;;  %v14540_v44 = vld [vmem:[#allocation77_spill] sm:$0xff] }
 0x3ee   : > { %7552 = vst.msk [vmem:[%s13943_s30 + $0x88] sm:$0xff] %vm332_vm0, %v7520_v63  ;;  %v7519_v34 = vadd.f32 %v8563_v35, %v7455_v51  ;;  %v7458_v10 = vadd.f32 %v13921_v1, %v7419_v33  ;;  %v7418_v22 = vadd.f32 %v7331_v56, %v7024_v36  ;;  %v14537_v35 = vld [vmem:[#allocation75_spill] sm:$0xff]  ;;  %v14538_v51 = vld [vmem:[#allocation37_spill] sm:$0xff]  ;;  %v14539_v33 = vld [vmem:[#allocation38_spill] sm:$0xff]  ;;  %v6987_v14 = vpop.f32.mrf.mxu0 }
 0x3ef   : > { %v10441_v27 = vpop.f32.mrf.mxu1  ;;  %v6639_v20 = vadd.f32 %v14537_v35, %v6244_v28  ;;  %v6246_v42 = vadd.f32 %v14539_v33, %v14538_v51  ;;  %v6638_v56 = vadd.f32 %v14540_v44, %v6243_v45  ;;  %v8574_v28 = vld [vmem:[%s10700_s10 + $0x159] sm:$0xff] }
 0x3f0   : > { %7551 = vst.msk [vmem:[%s13943_s30 + $0x80] sm:$0xff] %vm332_vm0, %v7519_v34  ;;  %v7522_v4 = vadd.f32 %v8566_v25, %v7458_v10  ;;  %v7457_v41 = vadd.f32 %v13921_v1, %v7418_v22  ;;  %v7421_v62 = vadd.f32 %v10441_v27, %v7027_v13  ;;  %v8569_v13 = vld [vmem:[%s10700_s10 + $0x121] sm:$0xff]  ;;  %v14542_v22 = vld [vmem:[#allocation39_spill] sm:$0xff]  ;;  %v10392_v57 = vpop.f32.mrf.mxu0 }
 0x3f1   : > { %v7341_v26 = vpop.f32.mrf.mxu1  ;;  %v14541_v10 = vld [vmem:[#allocation41_spill] sm:$0xff]  ;;  %v6641_v19 = vadd.f32 %v14543_v11, %v6246_v42 }
 0x3f2   : > { %7554 = vst.msk [vmem:[%s13943_s30 + $0x98] sm:$0xff] %vm332_vm0, %v7522_v4  ;;  %v7521_v32 = vadd.f32 %v8565_v58, %v7457_v41  ;;  %v7460_v29 = vadd.f32 %v13921_v1, %v7421_v62  ;;  %v7420_v39 = vadd.f32 %v7341_v26, %v7026_v37  ;;  %v6245_v0 = vadd.f32 %v14542_v22, %v14541_v10  ;;  %v8572_v37 = vld [vmem:[%s10700_s10 + $0x141] sm:$0xff]  ;;  %v14545_v41 = vld [vmem:[#allocation40_spill] sm:$0xff]  ;;  %v6997_v45 = vpop.f32.mrf.mxu0 }
 0x3f3   : > { %v10444_v60 = vpop.f32.mrf.mxu1  ;;  %v7033_v58 = vadd.f32 %v10386_v8, %v6639_v20  ;;  %v14544_v4 = vld [vmem:[#allocation42_spill] sm:$0xff]  ;;  %v7035_v40 = vadd.f32 %v10389_v16, %v6641_v19 }
 0x3f4   : > { %7553 = vst.msk [vmem:[%s13943_s30 + $0x90] sm:$0xff] %vm332_vm0, %v7521_v32  ;;  %v7524_v23 = vadd.f32 %v8568_v12, %v7460_v29  ;;  %v7459_v59 = vadd.f32 %v13921_v1, %v7420_v39  ;;  %v7423_v38 = vadd.f32 %v10444_v60, %v7029_v46  ;;  %v6248_v62 = vadd.f32 %v14545_v41, %v14544_v4  ;;  %v14547_v32 = vld [vmem:[#allocation44_spill] sm:$0xff]  ;;  %v14548_v29 = vld [vmem:[#allocation71_spill] sm:$0xff] }
 0x3f5   : > { %v7351_v52 = vpop.f32.mrf.mxu1  ;;  %v6640_v6 = vadd.f32 %v14546_v7, %v6245_v0  ;;  %v7032_v12 = vadd.f32 %v6977_v48, %v6638_v56  ;;  %v6247_v39 = vadd.f32 %v14548_v29, %v14547_v32  ;;  %v8577_v56 = vld [vmem:[%s10700_s10 + $0x181] sm:$0xff] }
 0x3f6   : > { %7556 = vst.msk [vmem:[%s13943_s30 + $0xa8] sm:$0xff] %vm332_vm0, %v7524_v23  ;;  %v7523_v47 = vadd.f32 %v8567_v55, %v7459_v59  ;;  %v7462_v36 = vadd.f32 %v13921_v1, %v7423_v38  ;;  %v7422_v63 = vadd.f32 %v7351_v52, %v7028_v30  ;;  %v6643_v53 = vadd.f32 %v13905_v50, %v6248_v62  ;;  %v8573_v23 = vld [vmem:[%s10700_s10 + $0x151] sm:$0xff] }
 0x3f7   : > { %v10447_v25 = vpop.f32.mrf.mxu1  ;;  %v7034_v30 = vadd.f32 %v6987_v14, %v6640_v6  ;;  %v6642_v38 = vadd.f32 %v13909_v2, %v6247_v39 }
 0x3f8   : > { %7555 = vst.msk [vmem:[%s13943_s30 + $0xa0] sm:$0xff] %vm332_vm0, %v7523_v47  ;;  %v7526_v17 = vadd.f32 %v8570_v31, %v7462_v36  ;;  %v7461_v24 = vadd.f32 %v13921_v1, %v7422_v63  ;;  %v7425_v34 = vadd.f32 %v10447_v25, %v7031_v43  ;;  %v8576_v43 = vld [vmem:[%s10700_s10 + $0x171] sm:$0xff]  ;;  %v7037_v52 = vadd.f32 %v10392_v57, %v6643_v53  ;;  %v8575_v47 = vld [vmem:[%s10700_s10 + $0x169] sm:$0xff] }
 0x3f9   : > { %v7361_v15 = vpop.f32.mrf.mxu1  ;;  %v7036_v63 = vadd.f32 %v6997_v45, %v6642_v38 }
 0x3fa   : > { %7558 = vst.msk [vmem:[%s13943_s30 + $0xb8] sm:$0xff] %vm332_vm0, %v7526_v17  ;;  %v7525_v27 = vadd.f32 %v8569_v13, %v7461_v24  ;;  %v7464_v54 = vadd.f32 %v13921_v1, %v7425_v34  ;;  %v7424_v18 = vadd.f32 %v7361_v15, %v7030_v5  ;;  %v8578_v5 = vld [vmem:[%s10700_s10 + $0x189] sm:$0xff]  ;;  %s10501_s10 = scalar_lea.vmem %s14178_s12, 4096 }
 0x3fb   : > { %v10450_v49 = vpop.f32.mrf.mxu1  ;;  %p10502_p11 = scmp.ne.s32.totalorder %s14178_s12, %s10501_s10  ;;  %p10509_p1 = scmp.lt.s32.totalorder %s10507_s18, %s10501_s10 }
 0x3fc   : > { %7557 = vst.msk [vmem:[%s13943_s30 + $0xb0] sm:$0xff] %vm332_vm0, %v7525_v27  ;;  %v7528_v8 = vadd.f32 %v8572_v37, %v7464_v54  ;;  %v7463_v26 = vadd.f32 %v13921_v1, %v7424_v18  ;;  %v7427_v46 = vadd.f32 %v10450_v49, %v7033_v58 }
 0x3fd   : > { %v7371_v21 = vpop.f32.mrf.mxu1  ;;  %p10503_p12 = pnand %p10502_p11, %p10643_p5  ;;  %p10510_p2 = por %p10509_p1, %p10508_p0 }
 0x3fe   : > { %7560 = vst.msk [vmem:[%s13943_s30 + $0xc8] sm:$0xff] %vm332_vm0, %v7528_v8  ;;  %v7527_v48 = vadd.f32 %v8571_v9, %v7463_v26  ;;  %v7466_v55 = vadd.f32 %v13921_v1, %v7427_v46  ;;  %v7426_v60 = vadd.f32 %v7371_v21, %v7032_v12 }
 0x3ff   : > { %v10453_v59 = vpop.f32.mrf.mxu1  ;;  %p10504_p13 = pneg %p10503_p12 }
 0x400   : > { %7559 = vst.msk [vmem:[%s13943_s30 + $0xc0] sm:$0xff] %vm332_vm0, %v7527_v48  ;;  %v7530_v3 = vadd.f32 %v8574_v28, %v7466_v55  ;;  %v7465_v61 = vadd.f32 %v13921_v1, %v7426_v60  ;;  %v7429_v50 = vadd.f32 %v10453_v59, %v7035_v40 }
 0x401   : > { %v7381_v31 = vpop.f32.mrf.mxu1  ;;  %p10511_p3 = pnand %p10510_p2, %p10504_p13 }
 0x402   : > { %7562 = vst.msk [vmem:[%s13943_s30 + $0xd8] sm:$0xff] %vm332_vm0, %v7530_v3  ;;  %v7529_v35 = vadd.f32 %v8573_v23, %v7465_v61  ;;  %v7468_v20 = vadd.f32 %v13921_v1, %v7429_v50  ;;  %v7428_v2 = vadd.f32 %v7381_v31, %v7034_v30 }
 0x403   : > { %v10456_v36 = vpop.f32.mrf.mxu1 }
 0x404   : > { %7561 = vst.msk [vmem:[%s13943_s30 + $0xd0] sm:$0xff] %vm332_vm0, %v7529_v35  ;;  %v7532_v51 = vadd.f32 %v8576_v43, %v7468_v20  ;;  %v7467_v33 = vadd.f32 %v13921_v1, %v7428_v2  ;;  %v7431_v42 = vadd.f32 %v10456_v36, %v7037_v52 }
 0x405   : > { %v7391_v16 = vpop.f32.mrf.mxu1 }
 0x406   : > { %7564 = vst.msk [vmem:[%s13943_s30 + $0xe8] sm:$0xff] %vm332_vm0, %v7532_v51  ;;  %v7531_v13 = vadd.f32 %v8575_v47, %v7467_v33  ;;  %v7470_v25 = vadd.f32 %v13921_v1, %v7431_v42  ;;  %v7430_v44 = vadd.f32 %v7391_v16, %v7036_v63 }
 0x408   : > { %7563 = vst.msk [vmem:[%s13943_s30 + $0xe0] sm:$0xff] %vm332_vm0, %v7531_v13  ;;  %v7534_v17 = vadd.f32 %v8578_v5, %v7470_v25  ;;  %v7469_v24 = vadd.f32 %v13921_v1, %v7430_v44 }
 0x40a   : > { %7566 = vst.msk [vmem:[%s13943_s30 + $0xf8] sm:$0xff] %vm332_vm0, %v7534_v17  ;;  %v7533_v34 = vadd.f32 %v8577_v56, %v7469_v24 }
 0x40c   : > { %7565 = vst.msk [vmem:[%s13943_s30 + $0xf0] sm:$0xff] %vm332_vm0, %v7533_v34 }
 0x40d   : > { %10514 = shalt.err (!%p10511_p3)
}
 0x40e   : > { %s10515_s19 = scalar_lea.hbm %s14176_s15, 4096  ;;  %s10519_s22 = scalar_lea.hbm %s14232_s6, 8192 }
 0x40f   : > { %p10516_p4 = scmp.ne.s32.totalorder %s14176_s15, %s10515_s19  ;;  %p10520_p9 = scmp.lt.s32.totalorder %s14176_s15, %s14232_s6 }
 0x410   : > { %p10521_p10 = scmp.lt.s32.totalorder %s10519_s22, %s10515_s19 }
 0x411   : > { %p10517_p7 = pnand %p10516_p4, %p10643_p5 }
 0x412   : > { %p10522_p11 = por %p10521_p10, %p10520_p9 }
 0x413   : > { %p10518_p8 = pneg %p10517_p7 }
 0x415   : > { %p10523_p12 = pnand %p10522_p11, %p10518_p8 }
 0x417   : > { %10526 = shalt.err (!%p10523_p12)
}
 0x418   : > { %s10565_s30 = smov 128   ;;  %s10566_s11 = smov 8  }
 0x419   : > { %10458 = dma.vmem_to_hbm [thread:$0]  (%p10643_p5), %s14178_s12, 4096, %s14176_s15, %s14186_s5, %s10565_s30, %s10565_s30, %s10566_s11  }
 0x41a PF: > { %p10464_p13 = scmp.ge.s32.totalorder %s10561_s26, 2  ;;  %s7596_s13 = sand.u32 1, %s10549_s23  }
 0x41b   : > { %s7597_s14 = scalar_lea.sflag [#allocation5], %s7596_s13 }
 0x41c   : > { %p10461_p0 = pnand %p10464_p13, %p10647_p6 }
 0x41e   : > { %p10462_p1 = pneg %p10461_p0 }
 0x420   : > { %10544 = dma.done.wait (%p10462_p1), %s7597_s14, 4096  }
 0x421   : > { %10546 = vsyncadd (%p10462_p1), %s7597_s14, 4294963200  ;;  %p17_p2 = scmp.ge.s32.totalorder %s10630_s28, 4   ;;  %s14549_s23 = smov %s10553_s24 }
 0x422   : > { %s14550_s24 = smov %s10557_s25  ;;  %s14551_s25 = smov %s10641_s7 }
 0x423   : > { %s14552_s26 = smov %s10630_s28  ;;  %19 = sbr.rel (!%p17_p2) target bundleno = 5 (0x5), region = 100 }
 0x428   :  { %7602 = vsyncpa [#allocation5], 1 }
 0x429   :  { %7604 = vsyncpa [#allocation5 + $0x1], 1 }

</bundles_post_ra>
